<compile_context>
chip_gen: v7x
topology: tpu7x:2x2x1
jax: 0.10.0
libtpu: 0.0.40
codegen_flags: <defaults>
</compile_context>

<pallas_src>
import math
from functools import partial

import numpy as np
import jax
import jax.numpy as jnp
from jax.experimental import pallas as pl
from jax.experimental.pallas import tpu as pltpu

F32 = jnp.float32
BF16 = jnp.bfloat16

AGV_ROWS = 16     # audio(2) + geowarp(2) + view(7) + zero pad(5)


# --------------------------------- fused kernel -------------------------------

def _binauralgrad_kernel(agv_ref, dproj_ref, w_in_ref, wA_ref, wB_ref, wC_ref,
                         wdil_ref, wcp_ref, wop_ref, wsk_ref, wout_ref, b_ref,
                         o_ref, *, dilations):
    T = agv_ref.shape[2]
    C = wsk_ref.shape[0]
    M = wC_ref.shape[1]
    NL = len(dilations)

    def mm(w, x):
        # bf16 MXU operands, f32 accumulation.
        return jnp.dot(w, x.astype(BF16), preferred_element_type=F32)

    def shift(x, d, sign):
        # sign=+1: x(t-d), zeros for t<d.  sign=-1: x(t+d), zeros for t>=T-d.
        r = pltpu.roll(x, d if sign > 0 else T - d, 1)
        idx = jax.lax.broadcasted_iota(jnp.int32, x.shape, 1)
        valid = (idx >= d) if sign > 0 else (idx < T - d)
        return jnp.where(valid, r, 0.0)

    def conv3(x, w0, w1, w2, b, d):
        # 'same' Conv1d, kernel=3, dilation=d, in [C, T] layout: per-tap matmuls on
        # lane-rolled inputs (no halo scratch, no band stores).
        return mm(w0, shift(x, d, +1)) + mm(w1, x) + mm(w2, shift(x, d, -1)) + b

    def lrelu(t):
        return jnp.where(t >= 0, t, 0.4 * t)

    bb = b_ref[...]                                        # packed biases [80, 6+2NL]
    agv = agv_ref[0]                                       # [16, T]

    # input_projection (Conv1d k=1) + ReLU.  Weight columns for geo/view/pad are zero.
    x = jnp.maximum(mm(w_in_ref[...], agv) + bb[0:C, 0:1], 0.0)                  # [C, T]

    # BinauralPreNet: dsp & view branches fused as block-diagonal convs.
    h1 = lrelu(conv3(agv, wA_ref[0], wA_ref[1], wA_ref[2], bb[0:40, 1:2], 1))    # [40, T]
    h2 = lrelu(conv3(h1, wB_ref[0], wB_ref[1], wB_ref[2], bb[0:80, 2:3], 1))     # [80, T]
    spec = lrelu(conv3(h2, wC_ref[0], wC_ref[1], wC_ref[2], bb[0:M, 3:4], 1))    # [M, T]

    # Residual stack.
    dpT = dproj_ref[0]                                     # [C, NL] per-layer diffusion proj
    skip = jnp.zeros((C, T), F32)
    inv_sqrt2 = 1.0 / math.sqrt(2.0)
    for l in range(NL):
        d = dilations[l]
        y = x + dpT[:, l:l + 1]
        z = conv3(y, wdil_ref[l, 0], wdil_ref[l, 1], wdil_ref[l, 2],
                  bb[0:2 * C, 4 + l:5 + l], d)
        z = z + mm(wcp_ref[l], spec)                       # conditioner projection (k=1)
        h = jax.nn.sigmoid(z[0:C, :]) * jnp.tanh(z[C:2 * C, :])
        o = mm(wop_ref[l], h) + bb[0:2 * C, 4 + NL + l:5 + NL + l]
        x = (x + o[0:C, :]) * inv_sqrt2
        skip = skip + o[C:2 * C, :]

    # Output head: skip_projection (k=1) + ReLU + output_projection (k=1).
    s = skip * (1.0 / math.sqrt(NL))
    hh = jnp.maximum(mm(wsk_ref[...], s) + bb[0:C, 4 + 2 * NL:5 + 2 * NL], 0.0)
    out = mm(wout_ref[...], hh) + bb[0:8, 5 + 2 * NL:6 + 2 * NL]                 # [8, T]
    o_ref[0] = out[0:2, :].astype(o_ref.dtype)             # lane-dense NCL output


# ------------------------------ pallas wrapper --------------------------------

def _rep_spec(arr):
    zeros = (0,) * arr.ndim
    return pl.BlockSpec(arr.shape, lambda b, _z=zeros: _z)


def _batch_spec(arr):
    tail = (0,) * (arr.ndim - 1)
    return pl.BlockSpec((1,) + arr.shape[1:], lambda b, _t=tail: (b,) + _t)


def _silu(x):
    return x * jax.nn.sigmoid(x)


def pack_params(P):
    """Pack PyTorch-style parameters into channel-major [Cout, Cin] tap weights and a
    single bias blob; called once, outside the per-step forward."""
    C = P["in_w"].shape[1]
    M = P["pn_wc"].shape[2]
    layers = P["layers"]
    NL = len(layers)

    # input projection: pad Cin 2 -> 16 with zero columns (geo/view/pad rows contribute 0).
    w_in = jnp.zeros((C, AGV_ROWS), F32).at[:, 0:2].set(P["in_w"].T)
    # prenet stage A: block-diagonal fusion of conv_dsp1 (geo rows 2-3) and conv_view1
    # (view rows 4-10); stage B fuses conv_dsp2 / conv_view2; stage C is the final conv.
    wA = jnp.zeros((3, 40, AGV_ROWS), F32)
    wB = jnp.zeros((3, 80, 40), F32)
    wC = jnp.zeros((3, M, 80), F32)
    for k in range(3):
        wA = wA.at[k, 0:20, 2:4].set(P["pn_wd1"][k].T)
        wA = wA.at[k, 20:40, 4:11].set(P["pn_wv1"][k].T)
        wB = wB.at[k, 0:40, 0:20].set(P["pn_wd2"][k].T)
        wB = wB.at[k, 40:80, 20:40].set(P["pn_wv2"][k].T)
        wC = wC.at[k].set(P["pn_wc"][k].T)
    wdil = jnp.stack([jnp.stack([lp["wdil"][k].T for k in range(3)]) for lp in layers])
    wcp = jnp.stack([lp["wcp"].T for lp in layers])
    wop = jnp.stack([lp["wop"].T for lp in layers])
    wsk = P["sk_w"].T
    wout = jnp.zeros((8, C), F32).at[0:2, :].set(P["out_w"].T)

    nb = 6 + 2 * NL
    rows = max(80, 2 * C)
    bias = jnp.zeros((rows, nb), F32)
    bias = bias.at[0:C, 0].set(P["in_b"][0])
    bias = bias.at[0:40, 1].set(jnp.concatenate([P["pn_bd1"][0], P["pn_bv1"][0]]))
    bias = bias.at[0:80, 2].set(jnp.concatenate([P["pn_bd2"][0], P["pn_bv2"][0]]))
    bias = bias.at[0:M, 3].set(P["pn_bc"][0])
    for l, lp in enumerate(layers):
        bias = bias.at[0:2 * C, 4 + l].set(lp["bdil"][0] + lp["bcp"][0])
        bias = bias.at[0:2 * C, 4 + NL + l].set(lp["bop"][0])
    bias = bias.at[0:C, 4 + 2 * NL].set(P["sk_b"][0])
    bias = bias.at[0:2, 5 + 2 * NL].set(P["out_b"][0])

    return dict(
        w_in=w_in.astype(BF16), wA=wA.astype(BF16), wB=wB.astype(BF16), wC=wC.astype(BF16),
        wdil=wdil.astype(BF16), wcp=wcp.astype(BF16), wop=wop.astype(BF16),
        wsk=wsk.astype(BF16), wout=wout.astype(BF16), bias=bias,
        table=P["table"],
        de_w1=P["de_w1"].astype(BF16), de_b1=P["de_b1"],
        de_w2=P["de_w2"].astype(BF16), de_b2=P["de_b2"],
        wdp=jnp.stack([lp["wdp"] for lp in layers]).astype(BF16),
        bdp=jnp.stack([lp["bdp"][0] for lp in layers]),
        dilations=tuple(int(lp["dilation"]) for lp in layers),
        C=int(C), M=int(M),
    )


def binauralgrad_forward(PK, audio, diffusion_step, spectrogram=None, geowarp=None,
                         view=None, mono=None, mean_condition=None):
    """Inputs in PyTorch NCL layout; returns (x [B, 2, T], geowarp)."""
    B, _, T = audio.shape
    C, M = PK["C"], PK["M"]
    dilations = PK["dilations"]
    NL = len(dilations)
    assert all(0 < d < T for d in dilations)

    # Stacked NCL input block (no transposes): rows 0-1 audio, 2-3 geo, 4-10 view, 11-15 pad.
    agv = jnp.concatenate([audio.astype(F32), geowarp.astype(F32), view.astype(F32),
                           jnp.zeros((B, AGV_ROWS - 11, T), F32)], axis=1)   # [B, 16, T]

    # DiffusionEmbedding MLP + per-layer diffusion projections: tiny -> plain XLA,
    # emitted channel-major as dprojT[B, C, NL].
    emb = PK["table"][diffusion_step]                                         # [B, 128]
    h = _silu(jnp.dot(emb.astype(BF16), PK["de_w1"], preferred_element_type=F32) + PK["de_b1"])
    demb = _silu(jnp.dot(h.astype(BF16), PK["de_w2"], preferred_element_type=F32) + PK["de_b2"])
    dprojT = jnp.einsum("bk,lkc->bcl", demb.astype(BF16), PK["wdp"],
                        preferred_element_type=F32) + PK["bdp"].T[None]       # [B, C, NL]

    # Advisory cost estimate so XLA schedules the surrounding ops sensibly.
    mk = (C * AGV_ROWS + 3 * 40 * AGV_ROWS + 3 * 80 * 40 + 3 * M * 80
          + NL * (3 * (2 * C) * C + (2 * C) * M + (2 * C) * C)
          + C * C + 8 * C)
    flops = 2 * B * T * mk
    trans = B * T * NL * 2 * C
    weight_bytes = sum(int(np.prod(PK[k].shape)) * 2
                       for k in ("w_in", "wA", "wB", "wC", "wdil", "wcp", "wop", "wsk", "wout"))
    bytes_acc = (B * AGV_ROWS * T * 4 + B * C * NL * 4 + B * 2 * T * 4
                 + weight_bytes + int(np.prod(PK["bias"].shape)) * 4)

    args = (agv, dprojT, PK["w_in"], PK["wA"], PK["wB"], PK["wC"],
            PK["wdil"], PK["wcp"], PK["wop"], PK["wsk"], PK["wout"], PK["bias"])
    in_specs = [_batch_spec(agv), _batch_spec(dprojT)] + [_rep_spec(a) for a in args[2:]]

    out = pl.pallas_call(
        partial(_binauralgrad_kernel, dilations=dilations),
        out_shape=jax.ShapeDtypeStruct((B, 2, T), F32),
        grid=(B,),
        in_specs=in_specs,
        out_specs=pl.BlockSpec((1, 2, T), lambda b: (b, 0, 0)),
        compiler_params=pltpu.CompilerParams(
            dimension_semantics=("parallel",),
            # Explicit budget (re-derive tile sizes against v7x's 64 MiB when T-tiling).
            vmem_limit_bytes=32 * 1024 * 1024),
        cost_estimate=pl.CostEstimate(flops=flops, transcendentals=trans,
                                      bytes_accessed=bytes_acc),
    )(*args)
    return out, geowarp


# --------------------------- parameters & reference ---------------------------

def init_params(key, *, residual_channels=32, n_mels=16, residual_layers=4,
                dilation_cycle_length=2, max_steps=50):
    C, M = residual_channels, n_mels
    keys = iter(jax.random.split(key, 128))

    def nrm(shape, scale=0.1):
        return scale * jax.random.normal(next(keys), shape, dtype=F32)

    P = {}
    steps = jnp.arange(max_steps, dtype=F32)[:, None]
    dims = jnp.arange(64, dtype=F32)[None, :]
    table = steps * 10.0 ** (dims * 4.0 / 63.0)
    P["table"] = jnp.concatenate([jnp.sin(table), jnp.cos(table)], axis=1)   # [max_steps,128]
    P["de_w1"], P["de_b1"] = nrm((128, 512)), nrm((1, 512))
    P["de_w2"], P["de_b2"] = nrm((512, 512)), nrm((1, 512))
    P["in_w"], P["in_b"] = nrm((2, C)), nrm((1, C))
    P["pn_wd1"], P["pn_bd1"] = nrm((3, 2, 20)), nrm((1, 20))
    P["pn_wd2"], P["pn_bd2"] = nrm((3, 20, 40)), nrm((1, 40))
    P["pn_wv1"], P["pn_bv1"] = nrm((3, 7, 20)), nrm((1, 20))
    P["pn_wv2"], P["pn_bv2"] = nrm((3, 20, 40)), nrm((1, 40))
    P["pn_wc"], P["pn_bc"] = nrm((3, 80, M)), nrm((1, M))
    layers = []
    for i in range(residual_layers):
        layers.append(dict(
            wdil=nrm((3, C, 2 * C)), bdil=nrm((1, 2 * C)),
            wdp=nrm((512, C)), bdp=nrm((1, C)),
            wcp=nrm((M, 2 * C)), bcp=nrm((1, 2 * C)),
            wop=nrm((C, 2 * C)), bop=nrm((1, 2 * C)),
            dilation=2 ** (i % dilation_cycle_length),
        ))
    P["layers"] = layers
    P["sk_w"], P["sk_b"] = nrm((C, C)), nrm((1, C))
    # NOTE: PyTorch zero-inits output_projection.weight; small random values keep the
    # end-to-end numeric check meaningful.
    P["out_w"], P["out_b"] = nrm((C, 2)), nrm((1, 2))
    return P


def _ref_mm(a, b):
    # Same numerics as the kernel: bf16 operands, f32 accumulation.
    return jnp.einsum("...k,ko->...o", a.astype(BF16), b.astype(BF16),
                      preferred_element_type=F32)


def _ref_conv3(x, w, b, dilation=1):
    T = x.shape[1]
    xp = jnp.pad(x, ((0, 0), (dilation, dilation), (0, 0)))
    acc = 0.0
    for k in range(3):
        acc = acc + _ref_mm(xp[:, k * dilation:k * dilation + T, :], w[k])
    return acc + b


def ref_forward(P, audio, diffusion_step, geowarp, view):
    a = jnp.transpose(audio, (0, 2, 1)).astype(F32)
    g = jnp.transpose(geowarp, (0, 2, 1)).astype(F32)
    v = jnp.transpose(view, (0, 2, 1)).astype(F32)
    C = P["in_w"].shape[1]
    x = jnp.maximum(_ref_mm(a, P["in_w"]) + P["in_b"], 0.0)
    emb = P["table"][diffusion_step]
    d = _silu(_ref_mm(emb, P["de_w1"]) + P["de_b1"])
    d = _silu(_ref_mm(d, P["de_w2"]) + P["de_b2"])
    lrelu = lambda t: jnp.where(t >= 0, t, 0.4 * t)
    gg = lrelu(_ref_conv3(g, P["pn_wd1"], P["pn_bd1"]))
    gg = lrelu(_ref_conv3(gg, P["pn_wd2"], P["pn_bd2"]))
    vv = lrelu(_ref_conv3(v, P["pn_wv1"], P["pn_bv1"]))
    vv = lrelu(_ref_conv3(vv, P["pn_wv2"], P["pn_bv2"]))
    spec = lrelu(_ref_conv3(jnp.concatenate([gg, vv], axis=-1), P["pn_wc"], P["pn_bc"]))
    skip = 0.0
    for lp in P["layers"]:
        dp = _ref_mm(d, lp["wdp"]) + lp["bdp"]
        y = x + dp[:, None, :]
        z = _ref_conv3(y, lp["wdil"], lp["bdil"], dilation=lp["dilation"])
        z = z + _ref_mm(spec, lp["wcp"]) + lp["bcp"]
        gate, filt = z[..., :C], z[..., C:]
        h = jax.nn.sigmoid(gate) * jnp.tanh(filt)
        o = _ref_mm(h, lp["wop"]) + lp["bop"]
        x = (x + o[..., :C]) * (1.0 / math.sqrt(2.0))
        skip = skip + o[..., C:]
    xo = skip * (1.0 / math.sqrt(len(P["layers"])))
    xo = jnp.maximum(_ref_mm(xo, P["sk_w"]) + P["sk_b"], 0.0)
    xo = _ref_mm(xo, P["out_w"]) + P["out_b"]
    return jnp.transpose(xo, (0, 2, 1)), geowarp


# ----------------------------------- main --------------------------------------

if __name__ == "__main__":
    B, T = 2, 128
    C, M, NL, MAX_STEPS = 32, 16, 4, 50

    root = jax.random.PRNGKey(0)
    kparam, k1, k2, k3, k4 = jax.random.split(root, 5)
    P = init_params(kparam, residual_channels=C, n_mels=M, residual_layers=NL,
                    dilation_cycle_length=2, max_steps=MAX_STEPS)
    PK = pack_params(P)

    audio = jax.random.normal(k1, (B, 2, T), dtype=F32)
    geowarp = jax.random.normal(k2, (B, 2, T), dtype=F32)
    view = jax.random.normal(k3, (B, 7, T), dtype=F32)
    diffusion_step = jax.random.randint(k4, (B,), 0, MAX_STEPS, dtype=jnp.int32)

    out, geo_out = binauralgrad_forward(PK, audio, diffusion_step,
                                        geowarp=geowarp, view=view)
    out = jax.block_until_ready(out)
    assert out.shape == (B, 2, T)

    ref_out, _ = ref_forward(P, audio, diffusion_step, geowarp, view)
    # bf16 MXU operands on both sides -> tolerance reflects bf16 rounding of activations
    # at slightly different f32 accumulation orders.
    np.testing.assert_allclose(np.asarray(out), np.asarray(ref_out),
                               rtol=2e-2, atol=5e-3)

    print("KERNEL_OK")
</pallas_src>

<mosaic_0001>
module attributes {stable_mosaic.version = 11 : i64} {
  func.func @_binauralgrad_kernel(%arg0: i32, %arg1: memref<1x16x128xf32, #tpu.memory_space<vmem>>, %arg2: memref<1x32x4xf32, #tpu.memory_space<vmem>>, %arg3: memref<32x16xbf16, #tpu.memory_space<vmem>>, %arg4: memref<3x40x16xbf16, #tpu.memory_space<vmem>>, %arg5: memref<3x80x40xbf16, #tpu.memory_space<vmem>>, %arg6: memref<3x16x80xbf16, #tpu.memory_space<vmem>>, %arg7: memref<4x3x64x32xbf16, #tpu.memory_space<vmem>>, %arg8: memref<4x64x16xbf16, #tpu.memory_space<vmem>>, %arg9: memref<4x64x32xbf16, #tpu.memory_space<vmem>>, %arg10: memref<32x32xbf16, #tpu.memory_space<vmem>>, %arg11: memref<8x32xbf16, #tpu.memory_space<vmem>>, %arg12: memref<80x14xf32, #tpu.memory_space<vmem>>, %arg13: memref<1x2x128xf32, #tpu.memory_space<vmem>>) attributes {dimension_semantics = [#tpu.dimension_semantics<parallel>], iteration_bounds = array<i64: 2>, scalar_prefetch = 0 : i64, scratch_operands = 0 : i64, tpu.core_type = #tpu.core_type<tc>, window_params = [{transform_indices = @transform_0, window_bounds = array<i64: 1, 16, 128>}, {transform_indices = @transform_1, window_bounds = array<i64: 1, 32, 4>}, {pipeline_mode = #tpu.pipeline_mode<synchronous>, transform_indices = @transform_2, window_bounds = array<i64: 32, 16>}, {pipeline_mode = #tpu.pipeline_mode<synchronous>, transform_indices = @transform_3, window_bounds = array<i64: 3, 40, 16>}, {pipeline_mode = #tpu.pipeline_mode<synchronous>, transform_indices = @transform_4, window_bounds = array<i64: 3, 80, 40>}, {pipeline_mode = #tpu.pipeline_mode<synchronous>, transform_indices = @transform_5, window_bounds = array<i64: 3, 16, 80>}, {pipeline_mode = #tpu.pipeline_mode<synchronous>, transform_indices = @transform_6, window_bounds = array<i64: 4, 3, 64, 32>}, {pipeline_mode = #tpu.pipeline_mode<synchronous>, transform_indices = @transform_7, window_bounds = array<i64: 4, 64, 16>}, {pipeline_mode = #tpu.pipeline_mode<synchronous>, transform_indices = @transform_8, window_bounds = array<i64: 4, 64, 32>}, {pipeline_mode = #tpu.pipeline_mode<synchronous>, transform_indices = @transform_9, window_bounds = array<i64: 32, 32>}, {pipeline_mode = #tpu.pipeline_mode<synchronous>, transform_indices = @transform_10, window_bounds = array<i64: 8, 32>}, {pipeline_mode = #tpu.pipeline_mode<synchronous>, transform_indices = @transform_11, window_bounds = array<i64: 80, 14>}, {transform_indices = @transform_12, window_bounds = array<i64: 1, 2, 128>}]} {
    %c0 = arith.constant 0 : index
    %c0_0 = arith.constant 0 : index
    %0 = vector.load %arg12[%c0, %c0_0] : memref<80x14xf32, #tpu.memory_space<vmem>>, vector<80x14xf32>
    %c0_1 = arith.constant 0 : index
    %c0_2 = arith.constant 0 : index
    %c0_3 = arith.constant 0 : index
    %1 = vector.load %arg1[%c0_1, %c0_2, %c0_3] : memref<1x16x128xf32, #tpu.memory_space<vmem>>, vector<1x16x128xf32>
    %2 = vector.shape_cast %1 : vector<1x16x128xf32> to vector<16x128xf32>
    %c0_4 = arith.constant 0 : index
    %c0_5 = arith.constant 0 : index
    %3 = vector.load %arg3[%c0_4, %c0_5] : memref<32x16xbf16, #tpu.memory_space<vmem>>, vector<32x16xbf16>
    %4 = arith.truncf %2 : vector<16x128xf32> to vector<16x128xbf16>
    %cst = arith.constant dense<0.000000e+00> : vector<32x128xf32>
    %5 = tpu.matmul %3, %4, %cst {dimension_numbers = #tpu.dot_dimension_numbers<[1], [0], [0], [1], [0, 0, 1, 1], [], []>} : vector<32x16xbf16>, vector<16x128xbf16>, vector<32x128xf32> -> vector<32x128xf32>
    %6 = vector.extract_strided_slice %0 {offsets = [0, 0], sizes = [32, 1], strides = [1, 1]} : vector<80x14xf32> to vector<32x1xf32>
    %7 = vector.broadcast %6 : vector<32x1xf32> to vector<32x128xf32>
    %8 = arith.addf %5, %7 : vector<32x128xf32>
    %cst_6 = arith.constant 0.000000e+00 : f32
    %9 = vector.broadcast %cst_6 : f32 to vector<32x128xf32>
    %10 = arith.maximumf %8, %9 : vector<32x128xf32>
    %c0_7 = arith.constant 0 : index
    %c0_8 = arith.constant 0 : index
    %c0_9 = arith.constant 0 : index
    %11 = vector.load %arg4[%c0_7, %c0_8, %c0_9] : memref<3x40x16xbf16, #tpu.memory_space<vmem>>, vector<1x40x16xbf16>
    %12 = vector.shape_cast %11 : vector<1x40x16xbf16> to vector<40x16xbf16>
    %c1 = arith.constant 1 : index
    %c0_10 = arith.constant 0 : index
    %c0_11 = arith.constant 0 : index
    %13 = vector.load %arg4[%c1, %c0_10, %c0_11] : memref<3x40x16xbf16, #tpu.memory_space<vmem>>, vector<1x40x16xbf16>
    %14 = vector.shape_cast %13 : vector<1x40x16xbf16> to vector<40x16xbf16>
    %c2 = arith.constant 2 : index
    %c0_12 = arith.constant 0 : index
    %c0_13 = arith.constant 0 : index
    %15 = vector.load %arg4[%c2, %c0_12, %c0_13] : memref<3x40x16xbf16, #tpu.memory_space<vmem>>, vector<1x40x16xbf16>
    %16 = vector.shape_cast %15 : vector<1x40x16xbf16> to vector<40x16xbf16>
    %17 = vector.extract_strided_slice %0 {offsets = [0, 1], sizes = [40, 1], strides = [1, 1]} : vector<80x14xf32> to vector<40x1xf32>
    %c1_i32 = arith.constant 1 : i32
    %18 = tpu.dynamic_rotate %2 by %c1_i32 dim 1 : vector<16x128xf32>, i32 -> vector<16x128xf32>
    %19 = tpu.iota {dimensions = array<i32: 1>} : vector<16x128xi32>
    %c1_i32_14 = arith.constant 1 : i32
    %20 = vector.broadcast %c1_i32_14 : i32 to vector<16x128xi32>
    %21 = arith.cmpi sge, %19, %20 : vector<16x128xi32>
    %cst_15 = arith.constant 0.000000e+00 : f32
    %22 = vector.broadcast %cst_15 : f32 to vector<16x128xf32>
    %23 = arith.select %21, %18, %22 : vector<16x128xi1>, vector<16x128xf32>
    %24 = arith.truncf %23 : vector<16x128xf32> to vector<16x128xbf16>
    %cst_16 = arith.constant dense<0.000000e+00> : vector<40x128xf32>
    %25 = tpu.matmul %12, %24, %cst_16 {dimension_numbers = #tpu.dot_dimension_numbers<[1], [0], [0], [1], [0, 0, 1, 1], [], []>} : vector<40x16xbf16>, vector<16x128xbf16>, vector<40x128xf32> -> vector<40x128xf32>
    %26 = arith.truncf %2 : vector<16x128xf32> to vector<16x128xbf16>
    %cst_17 = arith.constant dense<0.000000e+00> : vector<40x128xf32>
    %27 = tpu.matmul %14, %26, %cst_17 {dimension_numbers = #tpu.dot_dimension_numbers<[1], [0], [0], [1], [0, 0, 1, 1], [], []>} : vector<40x16xbf16>, vector<16x128xbf16>, vector<40x128xf32> -> vector<40x128xf32>
    %28 = arith.addf %25, %27 : vector<40x128xf32>
    %c127_i32 = arith.constant 127 : i32
    %29 = tpu.dynamic_rotate %2 by %c127_i32 dim 1 : vector<16x128xf32>, i32 -> vector<16x128xf32>
    %30 = tpu.iota {dimensions = array<i32: 1>} : vector<16x128xi32>
    %c127_i32_18 = arith.constant 127 : i32
    %31 = vector.broadcast %c127_i32_18 : i32 to vector<16x128xi32>
    %32 = arith.cmpi slt, %30, %31 : vector<16x128xi32>
    %cst_19 = arith.constant 0.000000e+00 : f32
    %33 = vector.broadcast %cst_19 : f32 to vector<16x128xf32>
    %34 = arith.select %32, %29, %33 : vector<16x128xi1>, vector<16x128xf32>
    %35 = arith.truncf %34 : vector<16x128xf32> to vector<16x128xbf16>
    %cst_20 = arith.constant dense<0.000000e+00> : vector<40x128xf32>
    %36 = tpu.matmul %16, %35, %cst_20 {dimension_numbers = #tpu.dot_dimension_numbers<[1], [0], [0], [1], [0, 0, 1, 1], [], []>} : vector<40x16xbf16>, vector<16x128xbf16>, vector<40x128xf32> -> vector<40x128xf32>
    %37 = arith.addf %28, %36 : vector<40x128xf32>
    %38 = vector.broadcast %17 : vector<40x1xf32> to vector<40x128xf32>
    %39 = arith.addf %37, %38 : vector<40x128xf32>
    %cst_21 = arith.constant 0.000000e+00 : f32
    %40 = vector.broadcast %cst_21 : f32 to vector<40x128xf32>
    %41 = arith.cmpf oge, %39, %40 : vector<40x128xf32>
    %cst_22 = arith.constant 4.000000e-01 : f32
    %42 = vector.broadcast %cst_22 : f32 to vector<40x128xf32>
    %43 = arith.mulf %42, %39 : vector<40x128xf32>
    %44 = arith.select %41, %39, %43 : vector<40x128xi1>, vector<40x128xf32>
    %c0_23 = arith.constant 0 : index
    %c0_24 = arith.constant 0 : index
    %c0_25 = arith.constant 0 : index
    %45 = vector.load %arg5[%c0_23, %c0_24, %c0_25] : memref<3x80x40xbf16, #tpu.memory_space<vmem>>, vector<1x80x40xbf16>
    %46 = vector.shape_cast %45 : vector<1x80x40xbf16> to vector<80x40xbf16>
    %c1_26 = arith.constant 1 : index
    %c0_27 = arith.constant 0 : index
    %c0_28 = arith.constant 0 : index
    %47 = vector.load %arg5[%c1_26, %c0_27, %c0_28] : memref<3x80x40xbf16, #tpu.memory_space<vmem>>, vector<1x80x40xbf16>
    %48 = vector.shape_cast %47 : vector<1x80x40xbf16> to vector<80x40xbf16>
    %c2_29 = arith.constant 2 : index
    %c0_30 = arith.constant 0 : index
    %c0_31 = arith.constant 0 : index
    %49 = vector.load %arg5[%c2_29, %c0_30, %c0_31] : memref<3x80x40xbf16, #tpu.memory_space<vmem>>, vector<1x80x40xbf16>
    %50 = vector.shape_cast %49 : vector<1x80x40xbf16> to vector<80x40xbf16>
    %51 = vector.extract_strided_slice %0 {offsets = [0, 2], sizes = [80, 1], strides = [1, 1]} : vector<80x14xf32> to vector<80x1xf32>
    %c1_i32_32 = arith.constant 1 : i32
    %52 = tpu.dynamic_rotate %44 by %c1_i32_32 dim 1 : vector<40x128xf32>, i32 -> vector<40x128xf32>
    %53 = tpu.iota {dimensions = array<i32: 1>} : vector<40x128xi32>
    %c1_i32_33 = arith.constant 1 : i32
    %54 = vector.broadcast %c1_i32_33 : i32 to vector<40x128xi32>
    %55 = arith.cmpi sge, %53, %54 : vector<40x128xi32>
    %cst_34 = arith.constant 0.000000e+00 : f32
    %56 = vector.broadcast %cst_34 : f32 to vector<40x128xf32>
    %57 = arith.select %55, %52, %56 : vector<40x128xi1>, vector<40x128xf32>
    %58 = arith.truncf %57 : vector<40x128xf32> to vector<40x128xbf16>
    %cst_35 = arith.constant dense<0.000000e+00> : vector<80x128xf32>
    %59 = tpu.matmul %46, %58, %cst_35 {dimension_numbers = #tpu.dot_dimension_numbers<[1], [0], [0], [1], [0, 0, 1, 1], [], []>} : vector<80x40xbf16>, vector<40x128xbf16>, vector<80x128xf32> -> vector<80x128xf32>
    %60 = arith.truncf %44 : vector<40x128xf32> to vector<40x128xbf16>
    %cst_36 = arith.constant dense<0.000000e+00> : vector<80x128xf32>
    %61 = tpu.matmul %48, %60, %cst_36 {dimension_numbers = #tpu.dot_dimension_numbers<[1], [0], [0], [1], [0, 0, 1, 1], [], []>} : vector<80x40xbf16>, vector<40x128xbf16>, vector<80x128xf32> -> vector<80x128xf32>
    %62 = arith.addf %59, %61 : vector<80x128xf32>
    %c127_i32_37 = arith.constant 127 : i32
    %63 = tpu.dynamic_rotate %44 by %c127_i32_37 dim 1 : vector<40x128xf32>, i32 -> vector<40x128xf32>
    %64 = tpu.iota {dimensions = array<i32: 1>} : vector<40x128xi32>
    %c127_i32_38 = arith.constant 127 : i32
    %65 = vector.broadcast %c127_i32_38 : i32 to vector<40x128xi32>
    %66 = arith.cmpi slt, %64, %65 : vector<40x128xi32>
    %cst_39 = arith.constant 0.000000e+00 : f32
    %67 = vector.broadcast %cst_39 : f32 to vector<40x128xf32>
    %68 = arith.select %66, %63, %67 : vector<40x128xi1>, vector<40x128xf32>
    %69 = arith.truncf %68 : vector<40x128xf32> to vector<40x128xbf16>
    %cst_40 = arith.constant dense<0.000000e+00> : vector<80x128xf32>
    %70 = tpu.matmul %50, %69, %cst_40 {dimension_numbers = #tpu.dot_dimension_numbers<[1], [0], [0], [1], [0, 0, 1, 1], [], []>} : vector<80x40xbf16>, vector<40x128xbf16>, vector<80x128xf32> -> vector<80x128xf32>
    %71 = arith.addf %62, %70 : vector<80x128xf32>
    %72 = vector.broadcast %51 : vector<80x1xf32> to vector<80x128xf32>
    %73 = arith.addf %71, %72 : vector<80x128xf32>
    %cst_41 = arith.constant 0.000000e+00 : f32
    %74 = vector.broadcast %cst_41 : f32 to vector<80x128xf32>
    %75 = arith.cmpf oge, %73, %74 : vector<80x128xf32>
    %cst_42 = arith.constant 4.000000e-01 : f32
    %76 = vector.broadcast %cst_42 : f32 to vector<80x128xf32>
    %77 = arith.mulf %76, %73 : vector<80x128xf32>
    %78 = arith.select %75, %73, %77 : vector<80x128xi1>, vector<80x128xf32>
    %c0_43 = arith.constant 0 : index
    %c0_44 = arith.constant 0 : index
    %c0_45 = arith.constant 0 : index
    %79 = vector.load %arg6[%c0_43, %c0_44, %c0_45] : memref<3x16x80xbf16, #tpu.memory_space<vmem>>, vector<1x16x80xbf16>
    %80 = vector.shape_cast %79 : vector<1x16x80xbf16> to vector<16x80xbf16>
    %c1_46 = arith.constant 1 : index
    %c0_47 = arith.constant 0 : index
    %c0_48 = arith.constant 0 : index
    %81 = vector.load %arg6[%c1_46, %c0_47, %c0_48] : memref<3x16x80xbf16, #tpu.memory_space<vmem>>, vector<1x16x80xbf16>
    %82 = vector.shape_cast %81 : vector<1x16x80xbf16> to vector<16x80xbf16>
    %c2_49 = arith.constant 2 : index
    %c0_50 = arith.constant 0 : index
    %c0_51 = arith.constant 0 : index
    %83 = vector.load %arg6[%c2_49, %c0_50, %c0_51] : memref<3x16x80xbf16, #tpu.memory_space<vmem>>, vector<1x16x80xbf16>
    %84 = vector.shape_cast %83 : vector<1x16x80xbf16> to vector<16x80xbf16>
    %85 = vector.extract_strided_slice %0 {offsets = [0, 3], sizes = [16, 1], strides = [1, 1]} : vector<80x14xf32> to vector<16x1xf32>
    %c1_i32_52 = arith.constant 1 : i32
    %86 = tpu.dynamic_rotate %78 by %c1_i32_52 dim 1 : vector<80x128xf32>, i32 -> vector<80x128xf32>
    %87 = tpu.iota {dimensions = array<i32: 1>} : vector<80x128xi32>
    %c1_i32_53 = arith.constant 1 : i32
    %88 = vector.broadcast %c1_i32_53 : i32 to vector<80x128xi32>
    %89 = arith.cmpi sge, %87, %88 : vector<80x128xi32>
    %cst_54 = arith.constant 0.000000e+00 : f32
    %90 = vector.broadcast %cst_54 : f32 to vector<80x128xf32>
    %91 = arith.select %89, %86, %90 : vector<80x128xi1>, vector<80x128xf32>
    %92 = arith.truncf %91 : vector<80x128xf32> to vector<80x128xbf16>
    %cst_55 = arith.constant dense<0.000000e+00> : vector<16x128xf32>
    %93 = tpu.matmul %80, %92, %cst_55 {dimension_numbers = #tpu.dot_dimension_numbers<[1], [0], [0], [1], [0, 0, 1, 1], [], []>} : vector<16x80xbf16>, vector<80x128xbf16>, vector<16x128xf32> -> vector<16x128xf32>
    %94 = arith.truncf %78 : vector<80x128xf32> to vector<80x128xbf16>
    %cst_56 = arith.constant dense<0.000000e+00> : vector<16x128xf32>
    %95 = tpu.matmul %82, %94, %cst_56 {dimension_numbers = #tpu.dot_dimension_numbers<[1], [0], [0], [1], [0, 0, 1, 1], [], []>} : vector<16x80xbf16>, vector<80x128xbf16>, vector<16x128xf32> -> vector<16x128xf32>
    %96 = arith.addf %93, %95 : vector<16x128xf32>
    %c127_i32_57 = arith.constant 127 : i32
    %97 = tpu.dynamic_rotate %78 by %c127_i32_57 dim 1 : vector<80x128xf32>, i32 -> vector<80x128xf32>
    %98 = tpu.iota {dimensions = array<i32: 1>} : vector<80x128xi32>
    %c127_i32_58 = arith.constant 127 : i32
    %99 = vector.broadcast %c127_i32_58 : i32 to vector<80x128xi32>
    %100 = arith.cmpi slt, %98, %99 : vector<80x128xi32>
    %cst_59 = arith.constant 0.000000e+00 : f32
    %101 = vector.broadcast %cst_59 : f32 to vector<80x128xf32>
    %102 = arith.select %100, %97, %101 : vector<80x128xi1>, vector<80x128xf32>
    %103 = arith.truncf %102 : vector<80x128xf32> to vector<80x128xbf16>
    %cst_60 = arith.constant dense<0.000000e+00> : vector<16x128xf32>
    %104 = tpu.matmul %84, %103, %cst_60 {dimension_numbers = #tpu.dot_dimension_numbers<[1], [0], [0], [1], [0, 0, 1, 1], [], []>} : vector<16x80xbf16>, vector<80x128xbf16>, vector<16x128xf32> -> vector<16x128xf32>
    %105 = arith.addf %96, %104 : vector<16x128xf32>
    %106 = vector.broadcast %85 : vector<16x1xf32> to vector<16x128xf32>
    %107 = arith.addf %105, %106 : vector<16x128xf32>
    %cst_61 = arith.constant 0.000000e+00 : f32
    %108 = vector.broadcast %cst_61 : f32 to vector<16x128xf32>
    %109 = arith.cmpf oge, %107, %108 : vector<16x128xf32>
    %cst_62 = arith.constant 4.000000e-01 : f32
    %110 = vector.broadcast %cst_62 : f32 to vector<16x128xf32>
    %111 = arith.mulf %110, %107 : vector<16x128xf32>
    %112 = arith.select %109, %107, %111 : vector<16x128xi1>, vector<16x128xf32>
    %c0_63 = arith.constant 0 : index
    %c0_64 = arith.constant 0 : index
    %c0_65 = arith.constant 0 : index
    %113 = vector.load %arg2[%c0_63, %c0_64, %c0_65] : memref<1x32x4xf32, #tpu.memory_space<vmem>>, vector<1x32x4xf32>
    %114 = vector.shape_cast %113 : vector<1x32x4xf32> to vector<32x4xf32>
    %cst_66 = arith.constant 0.000000e+00 : f32
    %115 = vector.broadcast %cst_66 : f32 to vector<32x128xf32>
    %116 = vector.extract_strided_slice %114 {offsets = [0, 0], sizes = [32, 1], strides = [1, 1]} : vector<32x4xf32> to vector<32x1xf32>
    %117 = vector.broadcast %116 : vector<32x1xf32> to vector<32x128xf32>
    %118 = arith.addf %10, %117 : vector<32x128xf32>
    %c0_67 = arith.constant 0 : index
    %c0_68 = arith.constant 0 : index
    %c0_69 = arith.constant 0 : index
    %c0_70 = arith.constant 0 : index
    %119 = vector.load %arg7[%c0_67, %c0_68, %c0_69, %c0_70] : memref<4x3x64x32xbf16, #tpu.memory_space<vmem>>, vector<1x1x64x32xbf16>
    %120 = vector.shape_cast %119 : vector<1x1x64x32xbf16> to vector<64x32xbf16>
    %c0_71 = arith.constant 0 : index
    %c1_72 = arith.constant 1 : index
    %c0_73 = arith.constant 0 : index
    %c0_74 = arith.constant 0 : index
    %121 = vector.load %arg7[%c0_71, %c1_72, %c0_73, %c0_74] : memref<4x3x64x32xbf16, #tpu.memory_space<vmem>>, vector<1x1x64x32xbf16>
    %122 = vector.shape_cast %121 : vector<1x1x64x32xbf16> to vector<64x32xbf16>
    %c0_75 = arith.constant 0 : index
    %c2_76 = arith.constant 2 : index
    %c0_77 = arith.constant 0 : index
    %c0_78 = arith.constant 0 : index
    %123 = vector.load %arg7[%c0_75, %c2_76, %c0_77, %c0_78] : memref<4x3x64x32xbf16, #tpu.memory_space<vmem>>, vector<1x1x64x32xbf16>
    %124 = vector.shape_cast %123 : vector<1x1x64x32xbf16> to vector<64x32xbf16>
    %125 = vector.extract_strided_slice %0 {offsets = [0, 4], sizes = [64, 1], strides = [1, 1]} : vector<80x14xf32> to vector<64x1xf32>
    %c1_i32_79 = arith.constant 1 : i32
    %126 = tpu.dynamic_rotate %118 by %c1_i32_79 dim 1 : vector<32x128xf32>, i32 -> vector<32x128xf32>
    %127 = tpu.iota {dimensions = array<i32: 1>} : vector<32x128xi32>
    %c1_i32_80 = arith.constant 1 : i32
    %128 = vector.broadcast %c1_i32_80 : i32 to vector<32x128xi32>
    %129 = arith.cmpi sge, %127, %128 : vector<32x128xi32>
    %cst_81 = arith.constant 0.000000e+00 : f32
    %130 = vector.broadcast %cst_81 : f32 to vector<32x128xf32>
    %131 = arith.select %129, %126, %130 : vector<32x128xi1>, vector<32x128xf32>
    %132 = arith.truncf %131 : vector<32x128xf32> to vector<32x128xbf16>
    %cst_82 = arith.constant dense<0.000000e+00> : vector<64x128xf32>
    %133 = tpu.matmul %120, %132, %cst_82 {dimension_numbers = #tpu.dot_dimension_numbers<[1], [0], [0], [1], [0, 0, 1, 1], [], []>} : vector<64x32xbf16>, vector<32x128xbf16>, vector<64x128xf32> -> vector<64x128xf32>
    %134 = arith.truncf %118 : vector<32x128xf32> to vector<32x128xbf16>
    %cst_83 = arith.constant dense<0.000000e+00> : vector<64x128xf32>
    %135 = tpu.matmul %122, %134, %cst_83 {dimension_numbers = #tpu.dot_dimension_numbers<[1], [0], [0], [1], [0, 0, 1, 1], [], []>} : vector<64x32xbf16>, vector<32x128xbf16>, vector<64x128xf32> -> vector<64x128xf32>
    %136 = arith.addf %133, %135 : vector<64x128xf32>
    %c127_i32_84 = arith.constant 127 : i32
    %137 = tpu.dynamic_rotate %118 by %c127_i32_84 dim 1 : vector<32x128xf32>, i32 -> vector<32x128xf32>
    %138 = tpu.iota {dimensions = array<i32: 1>} : vector<32x128xi32>
    %c127_i32_85 = arith.constant 127 : i32
    %139 = vector.broadcast %c127_i32_85 : i32 to vector<32x128xi32>
    %140 = arith.cmpi slt, %138, %139 : vector<32x128xi32>
    %cst_86 = arith.constant 0.000000e+00 : f32
    %141 = vector.broadcast %cst_86 : f32 to vector<32x128xf32>
    %142 = arith.select %140, %137, %141 : vector<32x128xi1>, vector<32x128xf32>
    %143 = arith.truncf %142 : vector<32x128xf32> to vector<32x128xbf16>
    %cst_87 = arith.constant dense<0.000000e+00> : vector<64x128xf32>
    %144 = tpu.matmul %124, %143, %cst_87 {dimension_numbers = #tpu.dot_dimension_numbers<[1], [0], [0], [1], [0, 0, 1, 1], [], []>} : vector<64x32xbf16>, vector<32x128xbf16>, vector<64x128xf32> -> vector<64x128xf32>
    %145 = arith.addf %136, %144 : vector<64x128xf32>
    %146 = vector.broadcast %125 : vector<64x1xf32> to vector<64x128xf32>
    %147 = arith.addf %145, %146 : vector<64x128xf32>
    %c0_88 = arith.constant 0 : index
    %c0_89 = arith.constant 0 : index
    %c0_90 = arith.constant 0 : index
    %148 = vector.load %arg8[%c0_88, %c0_89, %c0_90] : memref<4x64x16xbf16, #tpu.memory_space<vmem>>, vector<1x64x16xbf16>
    %149 = vector.shape_cast %148 : vector<1x64x16xbf16> to vector<64x16xbf16>
    %150 = arith.truncf %112 : vector<16x128xf32> to vector<16x128xbf16>
    %cst_91 = arith.constant dense<0.000000e+00> : vector<64x128xf32>
    %151 = tpu.matmul %149, %150, %cst_91 {dimension_numbers = #tpu.dot_dimension_numbers<[1], [0], [0], [1], [0, 0, 1, 1], [], []>} : vector<64x16xbf16>, vector<16x128xbf16>, vector<64x128xf32> -> vector<64x128xf32>
    %152 = arith.addf %147, %151 : vector<64x128xf32>
    %153 = vector.extract_strided_slice %152 {offsets = [0, 0], sizes = [32, 128], strides = [1, 1]} : vector<64x128xf32> to vector<32x128xf32>
    %154 = arith.negf %153 : vector<32x128xf32>
    %155 = math.exp %154 : vector<32x128xf32>
    %cst_92 = arith.constant 1.000000e+00 : f32
    %156 = vector.broadcast %cst_92 : f32 to vector<32x128xf32>
    %157 = arith.addf %156, %155 : vector<32x128xf32>
    %158 = arith.divf %156, %157 : vector<32x128xf32>
    %159 = vector.extract_strided_slice %152 {offsets = [32, 0], sizes = [32, 128], strides = [1, 1]} : vector<64x128xf32> to vector<32x128xf32>
    %160 = math.tanh %159 : vector<32x128xf32>
    %161 = arith.mulf %158, %160 : vector<32x128xf32>
    %c0_93 = arith.constant 0 : index
    %c0_94 = arith.constant 0 : index
    %c0_95 = arith.constant 0 : index
    %162 = vector.load %arg9[%c0_93, %c0_94, %c0_95] : memref<4x64x32xbf16, #tpu.memory_space<vmem>>, vector<1x64x32xbf16>
    %163 = vector.shape_cast %162 : vector<1x64x32xbf16> to vector<64x32xbf16>
    %164 = arith.truncf %161 : vector<32x128xf32> to vector<32x128xbf16>
    %cst_96 = arith.constant dense<0.000000e+00> : vector<64x128xf32>
    %165 = tpu.matmul %163, %164, %cst_96 {dimension_numbers = #tpu.dot_dimension_numbers<[1], [0], [0], [1], [0, 0, 1, 1], [], []>} : vector<64x32xbf16>, vector<32x128xbf16>, vector<64x128xf32> -> vector<64x128xf32>
    %166 = vector.extract_strided_slice %0 {offsets = [0, 8], sizes = [64, 1], strides = [1, 1]} : vector<80x14xf32> to vector<64x1xf32>
    %167 = vector.broadcast %166 : vector<64x1xf32> to vector<64x128xf32>
    %168 = arith.addf %165, %167 : vector<64x128xf32>
    %169 = vector.extract_strided_slice %168 {offsets = [0, 0], sizes = [32, 128], strides = [1, 1]} : vector<64x128xf32> to vector<32x128xf32>
    %170 = arith.addf %10, %169 : vector<32x128xf32>
    %cst_97 = arith.constant 0.707106769 : f32
    %171 = vector.broadcast %cst_97 : f32 to vector<32x128xf32>
    %172 = arith.mulf %170, %171 : vector<32x128xf32>
    %173 = vector.extract_strided_slice %168 {offsets = [32, 0], sizes = [32, 128], strides = [1, 1]} : vector<64x128xf32> to vector<32x128xf32>
    %174 = arith.addf %115, %173 : vector<32x128xf32>
    %175 = vector.extract_strided_slice %114 {offsets = [0, 1], sizes = [32, 1], strides = [1, 1]} : vector<32x4xf32> to vector<32x1xf32>
    %176 = vector.broadcast %175 : vector<32x1xf32> to vector<32x128xf32>
    %177 = arith.addf %172, %176 : vector<32x128xf32>
    %c1_98 = arith.constant 1 : index
    %c0_99 = arith.constant 0 : index
    %c0_100 = arith.constant 0 : index
    %c0_101 = arith.constant 0 : index
    %178 = vector.load %arg7[%c1_98, %c0_99, %c0_100, %c0_101] : memref<4x3x64x32xbf16, #tpu.memory_space<vmem>>, vector<1x1x64x32xbf16>
    %179 = vector.shape_cast %178 : vector<1x1x64x32xbf16> to vector<64x32xbf16>
    %c1_102 = arith.constant 1 : index
    %c1_103 = arith.constant 1 : index
    %c0_104 = arith.constant 0 : index
    %c0_105 = arith.constant 0 : index
    %180 = vector.load %arg7[%c1_102, %c1_103, %c0_104, %c0_105] : memref<4x3x64x32xbf16, #tpu.memory_space<vmem>>, vector<1x1x64x32xbf16>
    %181 = vector.shape_cast %180 : vector<1x1x64x32xbf16> to vector<64x32xbf16>
    %c1_106 = arith.constant 1 : index
    %c2_107 = arith.constant 2 : index
    %c0_108 = arith.constant 0 : index
    %c0_109 = arith.constant 0 : index
    %182 = vector.load %arg7[%c1_106, %c2_107, %c0_108, %c0_109] : memref<4x3x64x32xbf16, #tpu.memory_space<vmem>>, vector<1x1x64x32xbf16>
    %183 = vector.shape_cast %182 : vector<1x1x64x32xbf16> to vector<64x32xbf16>
    %184 = vector.extract_strided_slice %0 {offsets = [0, 5], sizes = [64, 1], strides = [1, 1]} : vector<80x14xf32> to vector<64x1xf32>
    %c2_i32 = arith.constant 2 : i32
    %185 = tpu.dynamic_rotate %177 by %c2_i32 dim 1 : vector<32x128xf32>, i32 -> vector<32x128xf32>
    %186 = tpu.iota {dimensions = array<i32: 1>} : vector<32x128xi32>
    %c2_i32_110 = arith.constant 2 : i32
    %187 = vector.broadcast %c2_i32_110 : i32 to vector<32x128xi32>
    %188 = arith.cmpi sge, %186, %187 : vector<32x128xi32>
    %cst_111 = arith.constant 0.000000e+00 : f32
    %189 = vector.broadcast %cst_111 : f32 to vector<32x128xf32>
    %190 = arith.select %188, %185, %189 : vector<32x128xi1>, vector<32x128xf32>
    %191 = arith.truncf %190 : vector<32x128xf32> to vector<32x128xbf16>
    %cst_112 = arith.constant dense<0.000000e+00> : vector<64x128xf32>
    %192 = tpu.matmul %179, %191, %cst_112 {dimension_numbers = #tpu.dot_dimension_numbers<[1], [0], [0], [1], [0, 0, 1, 1], [], []>} : vector<64x32xbf16>, vector<32x128xbf16>, vector<64x128xf32> -> vector<64x128xf32>
    %193 = arith.truncf %177 : vector<32x128xf32> to vector<32x128xbf16>
    %cst_113 = arith.constant dense<0.000000e+00> : vector<64x128xf32>
    %194 = tpu.matmul %181, %193, %cst_113 {dimension_numbers = #tpu.dot_dimension_numbers<[1], [0], [0], [1], [0, 0, 1, 1], [], []>} : vector<64x32xbf16>, vector<32x128xbf16>, vector<64x128xf32> -> vector<64x128xf32>
    %195 = arith.addf %192, %194 : vector<64x128xf32>
    %c126_i32 = arith.constant 126 : i32
    %196 = tpu.dynamic_rotate %177 by %c126_i32 dim 1 : vector<32x128xf32>, i32 -> vector<32x128xf32>
    %197 = tpu.iota {dimensions = array<i32: 1>} : vector<32x128xi32>
    %c126_i32_114 = arith.constant 126 : i32
    %198 = vector.broadcast %c126_i32_114 : i32 to vector<32x128xi32>
    %199 = arith.cmpi slt, %197, %198 : vector<32x128xi32>
    %cst_115 = arith.constant 0.000000e+00 : f32
    %200 = vector.broadcast %cst_115 : f32 to vector<32x128xf32>
    %201 = arith.select %199, %196, %200 : vector<32x128xi1>, vector<32x128xf32>
    %202 = arith.truncf %201 : vector<32x128xf32> to vector<32x128xbf16>
    %cst_116 = arith.constant dense<0.000000e+00> : vector<64x128xf32>
    %203 = tpu.matmul %183, %202, %cst_116 {dimension_numbers = #tpu.dot_dimension_numbers<[1], [0], [0], [1], [0, 0, 1, 1], [], []>} : vector<64x32xbf16>, vector<32x128xbf16>, vector<64x128xf32> -> vector<64x128xf32>
    %204 = arith.addf %195, %203 : vector<64x128xf32>
    %205 = vector.broadcast %184 : vector<64x1xf32> to vector<64x128xf32>
    %206 = arith.addf %204, %205 : vector<64x128xf32>
    %c1_117 = arith.constant 1 : index
    %c0_118 = arith.constant 0 : index
    %c0_119 = arith.constant 0 : index
    %207 = vector.load %arg8[%c1_117, %c0_118, %c0_119] : memref<4x64x16xbf16, #tpu.memory_space<vmem>>, vector<1x64x16xbf16>
    %208 = vector.shape_cast %207 : vector<1x64x16xbf16> to vector<64x16xbf16>
    %209 = arith.truncf %112 : vector<16x128xf32> to vector<16x128xbf16>
    %cst_120 = arith.constant dense<0.000000e+00> : vector<64x128xf32>
    %210 = tpu.matmul %208, %209, %cst_120 {dimension_numbers = #tpu.dot_dimension_numbers<[1], [0], [0], [1], [0, 0, 1, 1], [], []>} : vector<64x16xbf16>, vector<16x128xbf16>, vector<64x128xf32> -> vector<64x128xf32>
    %211 = arith.addf %206, %210 : vector<64x128xf32>
    %212 = vector.extract_strided_slice %211 {offsets = [0, 0], sizes = [32, 128], strides = [1, 1]} : vector<64x128xf32> to vector<32x128xf32>
    %213 = arith.negf %212 : vector<32x128xf32>
    %214 = math.exp %213 : vector<32x128xf32>
    %cst_121 = arith.constant 1.000000e+00 : f32
    %215 = vector.broadcast %cst_121 : f32 to vector<32x128xf32>
    %216 = arith.addf %215, %214 : vector<32x128xf32>
    %217 = arith.divf %215, %216 : vector<32x128xf32>
    %218 = vector.extract_strided_slice %211 {offsets = [32, 0], sizes = [32, 128], strides = [1, 1]} : vector<64x128xf32> to vector<32x128xf32>
    %219 = math.tanh %218 : vector<32x128xf32>
    %220 = arith.mulf %217, %219 : vector<32x128xf32>
    %c1_122 = arith.constant 1 : index
    %c0_123 = arith.constant 0 : index
    %c0_124 = arith.constant 0 : index
    %221 = vector.load %arg9[%c1_122, %c0_123, %c0_124] : memref<4x64x32xbf16, #tpu.memory_space<vmem>>, vector<1x64x32xbf16>
    %222 = vector.shape_cast %221 : vector<1x64x32xbf16> to vector<64x32xbf16>
    %223 = arith.truncf %220 : vector<32x128xf32> to vector<32x128xbf16>
    %cst_125 = arith.constant dense<0.000000e+00> : vector<64x128xf32>
    %224 = tpu.matmul %222, %223, %cst_125 {dimension_numbers = #tpu.dot_dimension_numbers<[1], [0], [0], [1], [0, 0, 1, 1], [], []>} : vector<64x32xbf16>, vector<32x128xbf16>, vector<64x128xf32> -> vector<64x128xf32>
    %225 = vector.extract_strided_slice %0 {offsets = [0, 9], sizes = [64, 1], strides = [1, 1]} : vector<80x14xf32> to vector<64x1xf32>
    %226 = vector.broadcast %225 : vector<64x1xf32> to vector<64x128xf32>
    %227 = arith.addf %224, %226 : vector<64x128xf32>
    %228 = vector.extract_strided_slice %227 {offsets = [0, 0], sizes = [32, 128], strides = [1, 1]} : vector<64x128xf32> to vector<32x128xf32>
    %229 = arith.addf %172, %228 : vector<32x128xf32>
    %cst_126 = arith.constant 0.707106769 : f32
    %230 = vector.broadcast %cst_126 : f32 to vector<32x128xf32>
    %231 = arith.mulf %229, %230 : vector<32x128xf32>
    %232 = vector.extract_strided_slice %227 {offsets = [32, 0], sizes = [32, 128], strides = [1, 1]} : vector<64x128xf32> to vector<32x128xf32>
    %233 = arith.addf %174, %232 : vector<32x128xf32>
    %234 = vector.extract_strided_slice %114 {offsets = [0, 2], sizes = [32, 1], strides = [1, 1]} : vector<32x4xf32> to vector<32x1xf32>
    %235 = vector.broadcast %234 : vector<32x1xf32> to vector<32x128xf32>
    %236 = arith.addf %231, %235 : vector<32x128xf32>
    %c2_127 = arith.constant 2 : index
    %c0_128 = arith.constant 0 : index
    %c0_129 = arith.constant 0 : index
    %c0_130 = arith.constant 0 : index
    %237 = vector.load %arg7[%c2_127, %c0_128, %c0_129, %c0_130] : memref<4x3x64x32xbf16, #tpu.memory_space<vmem>>, vector<1x1x64x32xbf16>
    %238 = vector.shape_cast %237 : vector<1x1x64x32xbf16> to vector<64x32xbf16>
    %c2_131 = arith.constant 2 : index
    %c1_132 = arith.constant 1 : index
    %c0_133 = arith.constant 0 : index
    %c0_134 = arith.constant 0 : index
    %239 = vector.load %arg7[%c2_131, %c1_132, %c0_133, %c0_134] : memref<4x3x64x32xbf16, #tpu.memory_space<vmem>>, vector<1x1x64x32xbf16>
    %240 = vector.shape_cast %239 : vector<1x1x64x32xbf16> to vector<64x32xbf16>
    %c2_135 = arith.constant 2 : index
    %c2_136 = arith.constant 2 : index
    %c0_137 = arith.constant 0 : index
    %c0_138 = arith.constant 0 : index
    %241 = vector.load %arg7[%c2_135, %c2_136, %c0_137, %c0_138] : memref<4x3x64x32xbf16, #tpu.memory_space<vmem>>, vector<1x1x64x32xbf16>
    %242 = vector.shape_cast %241 : vector<1x1x64x32xbf16> to vector<64x32xbf16>
    %243 = vector.extract_strided_slice %0 {offsets = [0, 6], sizes = [64, 1], strides = [1, 1]} : vector<80x14xf32> to vector<64x1xf32>
    %c1_i32_139 = arith.constant 1 : i32
    %244 = tpu.dynamic_rotate %236 by %c1_i32_139 dim 1 : vector<32x128xf32>, i32 -> vector<32x128xf32>
    %245 = tpu.iota {dimensions = array<i32: 1>} : vector<32x128xi32>
    %c1_i32_140 = arith.constant 1 : i32
    %246 = vector.broadcast %c1_i32_140 : i32 to vector<32x128xi32>
    %247 = arith.cmpi sge, %245, %246 : vector<32x128xi32>
    %cst_141 = arith.constant 0.000000e+00 : f32
    %248 = vector.broadcast %cst_141 : f32 to vector<32x128xf32>
    %249 = arith.select %247, %244, %248 : vector<32x128xi1>, vector<32x128xf32>
    %250 = arith.truncf %249 : vector<32x128xf32> to vector<32x128xbf16>
    %cst_142 = arith.constant dense<0.000000e+00> : vector<64x128xf32>
    %251 = tpu.matmul %238, %250, %cst_142 {dimension_numbers = #tpu.dot_dimension_numbers<[1], [0], [0], [1], [0, 0, 1, 1], [], []>} : vector<64x32xbf16>, vector<32x128xbf16>, vector<64x128xf32> -> vector<64x128xf32>
    %252 = arith.truncf %236 : vector<32x128xf32> to vector<32x128xbf16>
    %cst_143 = arith.constant dense<0.000000e+00> : vector<64x128xf32>
    %253 = tpu.matmul %240, %252, %cst_143 {dimension_numbers = #tpu.dot_dimension_numbers<[1], [0], [0], [1], [0, 0, 1, 1], [], []>} : vector<64x32xbf16>, vector<32x128xbf16>, vector<64x128xf32> -> vector<64x128xf32>
    %254 = arith.addf %251, %253 : vector<64x128xf32>
    %c127_i32_144 = arith.constant 127 : i32
    %255 = tpu.dynamic_rotate %236 by %c127_i32_144 dim 1 : vector<32x128xf32>, i32 -> vector<32x128xf32>
    %256 = tpu.iota {dimensions = array<i32: 1>} : vector<32x128xi32>
    %c127_i32_145 = arith.constant 127 : i32
    %257 = vector.broadcast %c127_i32_145 : i32 to vector<32x128xi32>
    %258 = arith.cmpi slt, %256, %257 : vector<32x128xi32>
    %cst_146 = arith.constant 0.000000e+00 : f32
    %259 = vector.broadcast %cst_146 : f32 to vector<32x128xf32>
    %260 = arith.select %258, %255, %259 : vector<32x128xi1>, vector<32x128xf32>
    %261 = arith.truncf %260 : vector<32x128xf32> to vector<32x128xbf16>
    %cst_147 = arith.constant dense<0.000000e+00> : vector<64x128xf32>
    %262 = tpu.matmul %242, %261, %cst_147 {dimension_numbers = #tpu.dot_dimension_numbers<[1], [0], [0], [1], [0, 0, 1, 1], [], []>} : vector<64x32xbf16>, vector<32x128xbf16>, vector<64x128xf32> -> vector<64x128xf32>
    %263 = arith.addf %254, %262 : vector<64x128xf32>
    %264 = vector.broadcast %243 : vector<64x1xf32> to vector<64x128xf32>
    %265 = arith.addf %263, %264 : vector<64x128xf32>
    %c2_148 = arith.constant 2 : index
    %c0_149 = arith.constant 0 : index
    %c0_150 = arith.constant 0 : index
    %266 = vector.load %arg8[%c2_148, %c0_149, %c0_150] : memref<4x64x16xbf16, #tpu.memory_space<vmem>>, vector<1x64x16xbf16>
    %267 = vector.shape_cast %266 : vector<1x64x16xbf16> to vector<64x16xbf16>
    %268 = arith.truncf %112 : vector<16x128xf32> to vector<16x128xbf16>
    %cst_151 = arith.constant dense<0.000000e+00> : vector<64x128xf32>
    %269 = tpu.matmul %267, %268, %cst_151 {dimension_numbers = #tpu.dot_dimension_numbers<[1], [0], [0], [1], [0, 0, 1, 1], [], []>} : vector<64x16xbf16>, vector<16x128xbf16>, vector<64x128xf32> -> vector<64x128xf32>
    %270 = arith.addf %265, %269 : vector<64x128xf32>
    %271 = vector.extract_strided_slice %270 {offsets = [0, 0], sizes = [32, 128], strides = [1, 1]} : vector<64x128xf32> to vector<32x128xf32>
    %272 = arith.negf %271 : vector<32x128xf32>
    %273 = math.exp %272 : vector<32x128xf32>
    %cst_152 = arith.constant 1.000000e+00 : f32
    %274 = vector.broadcast %cst_152 : f32 to vector<32x128xf32>
    %275 = arith.addf %274, %273 : vector<32x128xf32>
    %276 = arith.divf %274, %275 : vector<32x128xf32>
    %277 = vector.extract_strided_slice %270 {offsets = [32, 0], sizes = [32, 128], strides = [1, 1]} : vector<64x128xf32> to vector<32x128xf32>
    %278 = math.tanh %277 : vector<32x128xf32>
    %279 = arith.mulf %276, %278 : vector<32x128xf32>
    %c2_153 = arith.constant 2 : index
    %c0_154 = arith.constant 0 : index
    %c0_155 = arith.constant 0 : index
    %280 = vector.load %arg9[%c2_153, %c0_154, %c0_155] : memref<4x64x32xbf16, #tpu.memory_space<vmem>>, vector<1x64x32xbf16>
    %281 = vector.shape_cast %280 : vector<1x64x32xbf16> to vector<64x32xbf16>
    %282 = arith.truncf %279 : vector<32x128xf32> to vector<32x128xbf16>
    %cst_156 = arith.constant dense<0.000000e+00> : vector<64x128xf32>
    %283 = tpu.matmul %281, %282, %cst_156 {dimension_numbers = #tpu.dot_dimension_numbers<[1], [0], [0], [1], [0, 0, 1, 1], [], []>} : vector<64x32xbf16>, vector<32x128xbf16>, vector<64x128xf32> -> vector<64x128xf32>
    %284 = vector.extract_strided_slice %0 {offsets = [0, 10], sizes = [64, 1], strides = [1, 1]} : vector<80x14xf32> to vector<64x1xf32>
    %285 = vector.broadcast %284 : vector<64x1xf32> to vector<64x128xf32>
    %286 = arith.addf %283, %285 : vector<64x128xf32>
    %287 = vector.extract_strided_slice %286 {offsets = [0, 0], sizes = [32, 128], strides = [1, 1]} : vector<64x128xf32> to vector<32x128xf32>
    %288 = arith.addf %231, %287 : vector<32x128xf32>
    %cst_157 = arith.constant 0.707106769 : f32
    %289 = vector.broadcast %cst_157 : f32 to vector<32x128xf32>
    %290 = arith.mulf %288, %289 : vector<32x128xf32>
    %291 = vector.extract_strided_slice %286 {offsets = [32, 0], sizes = [32, 128], strides = [1, 1]} : vector<64x128xf32> to vector<32x128xf32>
    %292 = arith.addf %233, %291 : vector<32x128xf32>
    %293 = vector.extract_strided_slice %114 {offsets = [0, 3], sizes = [32, 1], strides = [1, 1]} : vector<32x4xf32> to vector<32x1xf32>
    %294 = vector.broadcast %293 : vector<32x1xf32> to vector<32x128xf32>
    %295 = arith.addf %290, %294 : vector<32x128xf32>
    %c3 = arith.constant 3 : index
    %c0_158 = arith.constant 0 : index
    %c0_159 = arith.constant 0 : index
    %c0_160 = arith.constant 0 : index
    %296 = vector.load %arg7[%c3, %c0_158, %c0_159, %c0_160] : memref<4x3x64x32xbf16, #tpu.memory_space<vmem>>, vector<1x1x64x32xbf16>
    %297 = vector.shape_cast %296 : vector<1x1x64x32xbf16> to vector<64x32xbf16>
    %c3_161 = arith.constant 3 : index
    %c1_162 = arith.constant 1 : index
    %c0_163 = arith.constant 0 : index
    %c0_164 = arith.constant 0 : index
    %298 = vector.load %arg7[%c3_161, %c1_162, %c0_163, %c0_164] : memref<4x3x64x32xbf16, #tpu.memory_space<vmem>>, vector<1x1x64x32xbf16>
    %299 = vector.shape_cast %298 : vector<1x1x64x32xbf16> to vector<64x32xbf16>
    %c3_165 = arith.constant 3 : index
    %c2_166 = arith.constant 2 : index
    %c0_167 = arith.constant 0 : index
    %c0_168 = arith.constant 0 : index
    %300 = vector.load %arg7[%c3_165, %c2_166, %c0_167, %c0_168] : memref<4x3x64x32xbf16, #tpu.memory_space<vmem>>, vector<1x1x64x32xbf16>
    %301 = vector.shape_cast %300 : vector<1x1x64x32xbf16> to vector<64x32xbf16>
    %302 = vector.extract_strided_slice %0 {offsets = [0, 7], sizes = [64, 1], strides = [1, 1]} : vector<80x14xf32> to vector<64x1xf32>
    %c2_i32_169 = arith.constant 2 : i32
    %303 = tpu.dynamic_rotate %295 by %c2_i32_169 dim 1 : vector<32x128xf32>, i32 -> vector<32x128xf32>
    %304 = tpu.iota {dimensions = array<i32: 1>} : vector<32x128xi32>
    %c2_i32_170 = arith.constant 2 : i32
    %305 = vector.broadcast %c2_i32_170 : i32 to vector<32x128xi32>
    %306 = arith.cmpi sge, %304, %305 : vector<32x128xi32>
    %cst_171 = arith.constant 0.000000e+00 : f32
    %307 = vector.broadcast %cst_171 : f32 to vector<32x128xf32>
    %308 = arith.select %306, %303, %307 : vector<32x128xi1>, vector<32x128xf32>
    %309 = arith.truncf %308 : vector<32x128xf32> to vector<32x128xbf16>
    %cst_172 = arith.constant dense<0.000000e+00> : vector<64x128xf32>
    %310 = tpu.matmul %297, %309, %cst_172 {dimension_numbers = #tpu.dot_dimension_numbers<[1], [0], [0], [1], [0, 0, 1, 1], [], []>} : vector<64x32xbf16>, vector<32x128xbf16>, vector<64x128xf32> -> vector<64x128xf32>
    %311 = arith.truncf %295 : vector<32x128xf32> to vector<32x128xbf16>
    %cst_173 = arith.constant dense<0.000000e+00> : vector<64x128xf32>
    %312 = tpu.matmul %299, %311, %cst_173 {dimension_numbers = #tpu.dot_dimension_numbers<[1], [0], [0], [1], [0, 0, 1, 1], [], []>} : vector<64x32xbf16>, vector<32x128xbf16>, vector<64x128xf32> -> vector<64x128xf32>
    %313 = arith.addf %310, %312 : vector<64x128xf32>
    %c126_i32_174 = arith.constant 126 : i32
    %314 = tpu.dynamic_rotate %295 by %c126_i32_174 dim 1 : vector<32x128xf32>, i32 -> vector<32x128xf32>
    %315 = tpu.iota {dimensions = array<i32: 1>} : vector<32x128xi32>
    %c126_i32_175 = arith.constant 126 : i32
    %316 = vector.broadcast %c126_i32_175 : i32 to vector<32x128xi32>
    %317 = arith.cmpi slt, %315, %316 : vector<32x128xi32>
    %cst_176 = arith.constant 0.000000e+00 : f32
    %318 = vector.broadcast %cst_176 : f32 to vector<32x128xf32>
    %319 = arith.select %317, %314, %318 : vector<32x128xi1>, vector<32x128xf32>
    %320 = arith.truncf %319 : vector<32x128xf32> to vector<32x128xbf16>
    %cst_177 = arith.constant dense<0.000000e+00> : vector<64x128xf32>
    %321 = tpu.matmul %301, %320, %cst_177 {dimension_numbers = #tpu.dot_dimension_numbers<[1], [0], [0], [1], [0, 0, 1, 1], [], []>} : vector<64x32xbf16>, vector<32x128xbf16>, vector<64x128xf32> -> vector<64x128xf32>
    %322 = arith.addf %313, %321 : vector<64x128xf32>
    %323 = vector.broadcast %302 : vector<64x1xf32> to vector<64x128xf32>
    %324 = arith.addf %322, %323 : vector<64x128xf32>
    %c3_178 = arith.constant 3 : index
    %c0_179 = arith.constant 0 : index
    %c0_180 = arith.constant 0 : index
    %325 = vector.load %arg8[%c3_178, %c0_179, %c0_180] : memref<4x64x16xbf16, #tpu.memory_space<vmem>>, vector<1x64x16xbf16>
    %326 = vector.shape_cast %325 : vector<1x64x16xbf16> to vector<64x16xbf16>
    %327 = arith.truncf %112 : vector<16x128xf32> to vector<16x128xbf16>
    %cst_181 = arith.constant dense<0.000000e+00> : vector<64x128xf32>
    %328 = tpu.matmul %326, %327, %cst_181 {dimension_numbers = #tpu.dot_dimension_numbers<[1], [0], [0], [1], [0, 0, 1, 1], [], []>} : vector<64x16xbf16>, vector<16x128xbf16>, vector<64x128xf32> -> vector<64x128xf32>
    %329 = arith.addf %324, %328 : vector<64x128xf32>
    %330 = vector.extract_strided_slice %329 {offsets = [0, 0], sizes = [32, 128], strides = [1, 1]} : vector<64x128xf32> to vector<32x128xf32>
    %331 = arith.negf %330 : vector<32x128xf32>
    %332 = math.exp %331 : vector<32x128xf32>
    %cst_182 = arith.constant 1.000000e+00 : f32
    %333 = vector.broadcast %cst_182 : f32 to vector<32x128xf32>
    %334 = arith.addf %333, %332 : vector<32x128xf32>
    %335 = arith.divf %333, %334 : vector<32x128xf32>
    %336 = vector.extract_strided_slice %329 {offsets = [32, 0], sizes = [32, 128], strides = [1, 1]} : vector<64x128xf32> to vector<32x128xf32>
    %337 = math.tanh %336 : vector<32x128xf32>
    %338 = arith.mulf %335, %337 : vector<32x128xf32>
    %c3_183 = arith.constant 3 : index
    %c0_184 = arith.constant 0 : index
    %c0_185 = arith.constant 0 : index
    %339 = vector.load %arg9[%c3_183, %c0_184, %c0_185] : memref<4x64x32xbf16, #tpu.memory_space<vmem>>, vector<1x64x32xbf16>
    %340 = vector.shape_cast %339 : vector<1x64x32xbf16> to vector<64x32xbf16>
    %341 = arith.truncf %338 : vector<32x128xf32> to vector<32x128xbf16>
    %cst_186 = arith.constant dense<0.000000e+00> : vector<64x128xf32>
    %342 = tpu.matmul %340, %341, %cst_186 {dimension_numbers = #tpu.dot_dimension_numbers<[1], [0], [0], [1], [0, 0, 1, 1], [], []>} : vector<64x32xbf16>, vector<32x128xbf16>, vector<64x128xf32> -> vector<64x128xf32>
    %343 = vector.extract_strided_slice %0 {offsets = [0, 11], sizes = [64, 1], strides = [1, 1]} : vector<80x14xf32> to vector<64x1xf32>
    %344 = vector.broadcast %343 : vector<64x1xf32> to vector<64x128xf32>
    %345 = arith.addf %342, %344 : vector<64x128xf32>
    %346 = vector.extract_strided_slice %345 {offsets = [32, 0], sizes = [32, 128], strides = [1, 1]} : vector<64x128xf32> to vector<32x128xf32>
    %347 = arith.addf %292, %346 : vector<32x128xf32>
    %cst_187 = arith.constant 5.000000e-01 : f32
    %348 = vector.broadcast %cst_187 : f32 to vector<32x128xf32>
    %349 = arith.mulf %347, %348 : vector<32x128xf32>
    %c0_188 = arith.constant 0 : index
    %c0_189 = arith.constant 0 : index
    %350 = vector.load %arg10[%c0_188, %c0_189] : memref<32x32xbf16, #tpu.memory_space<vmem>>, vector<32x32xbf16>
    %351 = arith.truncf %349 : vector<32x128xf32> to vector<32x128xbf16>
    %cst_190 = arith.constant dense<0.000000e+00> : vector<32x128xf32>
    %352 = tpu.matmul %350, %351, %cst_190 {dimension_numbers = #tpu.dot_dimension_numbers<[1], [0], [0], [1], [0, 0, 1, 1], [], []>} : vector<32x32xbf16>, vector<32x128xbf16>, vector<32x128xf32> -> vector<32x128xf32>
    %353 = vector.extract_strided_slice %0 {offsets = [0, 12], sizes = [32, 1], strides = [1, 1]} : vector<80x14xf32> to vector<32x1xf32>
    %354 = vector.broadcast %353 : vector<32x1xf32> to vector<32x128xf32>
    %355 = arith.addf %352, %354 : vector<32x128xf32>
    %cst_191 = arith.constant 0.000000e+00 : f32
    %356 = vector.broadcast %cst_191 : f32 to vector<32x128xf32>
    %357 = arith.maximumf %355, %356 : vector<32x128xf32>
    %c0_192 = arith.constant 0 : index
    %c0_193 = arith.constant 0 : index
    %358 = vector.load %arg11[%c0_192, %c0_193] : memref<8x32xbf16, #tpu.memory_space<vmem>>, vector<8x32xbf16>
    %359 = arith.truncf %357 : vector<32x128xf32> to vector<32x128xbf16>
    %cst_194 = arith.constant dense<0.000000e+00> : vector<8x128xf32>
    %360 = tpu.matmul %358, %359, %cst_194 {dimension_numbers = #tpu.dot_dimension_numbers<[1], [0], [0], [1], [0, 0, 1, 1], [], []>} : vector<8x32xbf16>, vector<32x128xbf16>, vector<8x128xf32> -> vector<8x128xf32>
    %361 = vector.extract_strided_slice %0 {offsets = [0, 13], sizes = [8, 1], strides = [1, 1]} : vector<80x14xf32> to vector<8x1xf32>
    %362 = vector.broadcast %361 : vector<8x1xf32> to vector<8x128xf32>
    %363 = arith.addf %360, %362 : vector<8x128xf32>
    %364 = vector.extract_strided_slice %363 {offsets = [0, 0], sizes = [2, 128], strides = [1, 1]} : vector<8x128xf32> to vector<2x128xf32>
    %c0_195 = arith.constant 0 : index
    %c0_196 = arith.constant 0 : index
    %c0_197 = arith.constant 0 : index
    %365 = vector.load %arg13[%c0_195, %c0_196, %c0_197] : memref<1x2x128xf32, #tpu.memory_space<vmem>>, vector<1x2x128xf32>
    %366 = vector.shape_cast %365 : vector<1x2x128xf32> to vector<2x128xf32>
    %367 = vector.shape_cast %364 : vector<2x128xf32> to vector<1x2x128xf32>
    tpu.vector_store %arg13[%c0_195, %c0_196, %c0_197], %367 {strides = array<i32>} : memref<1x2x128xf32, #tpu.memory_space<vmem>>, vector<1x2x128xf32>,
    return
  }
  func.func @transform_0(%arg0: i32) -> (i32, i32, i32) {
    %c0_i32 = arith.constant 0 : i32
    %c0_i32_0 = arith.constant 0 : i32
    %c0_i32_1 = arith.constant 0 : i32
    return %arg0, %c0_i32, %c0_i32_0 : i32, i32, i32
  }
  func.func @transform_1(%arg0: i32) -> (i32, i32, i32) {
    %c0_i32 = arith.constant 0 : i32
    %c0_i32_0 = arith.constant 0 : i32
    %c0_i32_1 = arith.constant 0 : i32
    return %arg0, %c0_i32, %c0_i32_0 : i32, i32, i32
  }
  func.func @transform_2(%arg0: i32) -> (i32, i32) {
    %c0_i32 = arith.constant 0 : i32
    %c0_i32_0 = arith.constant 0 : i32
    %c0_i32_1 = arith.constant 0 : i32
    return %c0_i32, %c0_i32_0 : i32, i32
  }
  func.func @transform_3(%arg0: i32) -> (i32, i32, i32) {
    %c0_i32 = arith.constant 0 : i32
    %c0_i32_0 = arith.constant 0 : i32
    %c0_i32_1 = arith.constant 0 : i32
    %c0_i32_2 = arith.constant 0 : i32
    return %c0_i32, %c0_i32_0, %c0_i32_1 : i32, i32, i32
  }
  func.func @transform_4(%arg0: i32) -> (i32, i32, i32) {
    %c0_i32 = arith.constant 0 : i32
    %c0_i32_0 = arith.constant 0 : i32
    %c0_i32_1 = arith.constant 0 : i32
    %c0_i32_2 = arith.constant 0 : i32
    return %c0_i32, %c0_i32_0, %c0_i32_1 : i32, i32, i32
  }
  func.func @transform_5(%arg0: i32) -> (i32, i32, i32) {
    %c0_i32 = arith.constant 0 : i32
    %c0_i32_0 = arith.constant 0 : i32
    %c0_i32_1 = arith.constant 0 : i32
    %c0_i32_2 = arith.constant 0 : i32
    return %c0_i32, %c0_i32_0, %c0_i32_1 : i32, i32, i32
  }
  func.func @transform_6(%arg0: i32) -> (i32, i32, i32, i32) {
    %c0_i32 = arith.constant 0 : i32
    %c0_i32_0 = arith.constant 0 : i32
    %c0_i32_1 = arith.constant 0 : i32
    %c0_i32_2 = arith.constant 0 : i32
    %c0_i32_3 = arith.constant 0 : i32
    return %c0_i32, %c0_i32_0, %c0_i32_1, %c0_i32_2 : i32, i32, i32, i32
  }
  func.func @transform_7(%arg0: i32) -> (i32, i32, i32) {
    %c0_i32 = arith.constant 0 : i32
    %c0_i32_0 = arith.constant 0 : i32
    %c0_i32_1 = arith.constant 0 : i32
    %c0_i32_2 = arith.constant 0 : i32
    return %c0_i32, %c0_i32_0, %c0_i32_1 : i32, i32, i32
  }
  func.func @transform_8(%arg0: i32) -> (i32, i32, i32) {
    %c0_i32 = arith.constant 0 : i32
    %c0_i32_0 = arith.constant 0 : i32
    %c0_i32_1 = arith.constant 0 : i32
    %c0_i32_2 = arith.constant 0 : i32
    return %c0_i32, %c0_i32_0, %c0_i32_1 : i32, i32, i32
  }
  func.func @transform_9(%arg0: i32) -> (i32, i32) {
    %c0_i32 = arith.constant 0 : i32
    %c0_i32_0 = arith.constant 0 : i32
    %c0_i32_1 = arith.constant 0 : i32
    return %c0_i32, %c0_i32_0 : i32, i32
  }
  func.func @transform_10(%arg0: i32) -> (i32, i32) {
    %c0_i32 = arith.constant 0 : i32
    %c0_i32_0 = arith.constant 0 : i32
    %c0_i32_1 = arith.constant 0 : i32
    return %c0_i32, %c0_i32_0 : i32, i32
  }
  func.func @transform_11(%arg0: i32) -> (i32, i32) {
    %c0_i32 = arith.constant 0 : i32
    %c0_i32_0 = arith.constant 0 : i32
    %c0_i32_1 = arith.constant 0 : i32
    return %c0_i32, %c0_i32_0 : i32, i32
  }
  func.func @transform_12(%arg0: i32) -> (i32, i32, i32) {
    %c0_i32 = arith.constant 0 : i32
    %c0_i32_0 = arith.constant 0 : i32
    %c0_i32_1 = arith.constant 0 : i32
    return %arg0, %c0_i32, %c0_i32_0 : i32, i32, i32
  }
}

</mosaic_0001>

<bundles_post_ra>
// kernel: tpu_custom_call.1
= control target key start
LH: loop header
LB: loop body
LE: loop exit
PB: predicated region body
PF: predicated region fallthrough
CT: control target
= control target key end

     0   :  { %s7773_s0 = inlined_call_operand.vmem [shape: f32[2,16,128], index: 0, kind: input, shape index: {}]   ;;  %s7774_s1 = inlined_call_operand.vmem [shape: f32[2,32,4], index: 1, kind: input, shape index: {}]   ;;  %s7775_s2 = inlined_call_operand.vmem [shape: bf16[32,16], index: 2, kind: input, shape index: {}]   ;;  %s7776_s3 = inlined_call_operand.vmem [shape: bf16[3,40,16], index: 3, kind: input, shape index: {}]   ;;  %s7777_s4 = inlined_call_operand.vmem [shape: bf16[3,80,40], index: 4, kind: input, shape index: {}]   ;;  %s7778_s5 = inlined_call_operand.vmem [shape: bf16[3,16,80], index: 5, kind: input, shape index: {}]   ;;  %s7779_s6 = inlined_call_operand.vmem [shape: bf16[4,3,64,32], index: 6, kind: input, shape index: {}]   ;;  %s7780_s7 = inlined_call_operand.vmem [shape: bf16[4,64,16], index: 7, kind: input, shape index: {}]   ;;  %s7781_s8 = inlined_call_operand.vmem [shape: bf16[4,64,32], index: 8, kind: input, shape index: {}]   ;;  %s7782_s9 = inlined_call_operand.vmem [shape: bf16[32,32], index: 9, kind: input, shape index: {}]   ;;  %s7783_s10 = inlined_call_operand.vmem [shape: bf16[8,32], index: 10, kind: input, shape index: {}]   ;;  %s7784_s11 = inlined_call_operand.vmem [shape: f32[80,14], index: 11, kind: input, shape index: {}]   ;;  %s7785_s12 = inlined_call_operand.hbm [shape: f32[2,2,128], index: 12, kind: output, shape index: {}]  }
   0x1   :  { %7792 = sst [smem:[#allocation6_spill]] %s7773_s0 }
   0x2   :  { %7793 = sst [smem:[#allocation7_spill]] %s7774_s1 }
   0x3   :  { %17 = vsyncpa [#allocation3], 0 }
   0x4   :  { %19 = vsyncpa [#allocation3 + $0x1], 0  ;;  %s6614_s21 = smov 0   ;;  %s6616_s22 = smov 0  }
   0x5   :  { %s6618_s23 = smov 0   ;;  %s6620_s24 = smov 0  }
   0x6 LB: > { %s6635_s25 = sadd.s32 4294967295, %s6526_s24   ;;  %s4700_s26 = sadd.s32 4294967294, %s6526_s24   ;;  %s6526_s24 = sphi %s6620_s24, %s7814_s24   ;;  %s6522_s23 = sphi %s6618_s23, %s7813_s23   ;;  %s6518_s22 = sphi %s6616_s22, %s7812_s22   ;;  %s6514_s21 = sphi %s6614_s21, %s7811_s21  }
   0x7   : > { %s6639_s27 = sadd.s32 1, %s6526_s24   ;;  %s294_s28 = sadd.s32 1, %s6522_s23 }
   0x8   : > { %s291_s29 = ssub.s32 %s6526_s24, %s6639_s27  ;;  %p304_p0 = scmp.ne.s32.totalorder %s6522_s23, %s6518_s22 }
   0x9   : > { %p292_p1 = scmp.eq.s32.totalorder %s291_s29, 0  ;;  %p305_p2 = scmp.eq.s32.totalorder %s6635_s25, 1 }
   0xa   : > { %p310_p3 = scmp.ne.s32.totalorder %s6518_s22, %s6514_s21  ;;  %p311_p4 = scmp.eq.s32.totalorder %s4700_s26, 1 }
   0xb   : > { %s6650_s30 = scalar_select %p292_p1, %s6522_s23, %s294_s28  }
   0xc   : > { %p6652_p5 = por %p305_p2, %p304_p0  ;;  %p6656_p6 = por %p311_p4, %p310_p3 }
   0xd   : > { %7794 = sst [smem:[#allocation5_spill]] %s6650_s30  ;;  %p4703_p7 = scmp.ge.s32.totalorder %s6526_s24, 1 }
   0xe   : > { %p375_p8 = scmp.lt.s32.totalorder %s6526_s24, 3 }
  0x10   : > { %p376_p9 = pnand %p4703_p7, %p375_p8 }
  0x11   : > { %p422_p10 = scmp.lt.s32.totalorder (!%p376_p9), %s6635_s25, 1  ;;  %v6528_v0 = vmov (!%p376_p9), 0.0   ;;  %vm6529_vm0 = vmmov (!%p376_p9), 0   ;;  %vm480_vm1 = vcmask (!%p376_p9), 130048   ;;  %v6242_v1 = vld [vmem:[%s7775_s2] sm:$0xff] (!%p376_p9)   ;;  %s7797_s0 = sld [smem:[#allocation6_spill]] (!%p376_p9)  ;;  %v561_v16 = vlaneseq (!%p376_p9) }
  0x12   : > { %379 = sbr.rel (%p376_p9) target bundleno = 3990 (0xf96), region = 68  ;;  %5406 = vmatprep.subr.bf16.mxu1 (!%p376_p9), %v6528_v0  ;;  %5408 = vmatprep.mubr.msk.bf16.mxu1 (!%p376_p9), %vm6529_vm0, %v6528_v0  ;;  %v6240_v6 = vld [vmem:[%s7776_s3 + $0x14] sm:$0xff] (!%p376_p9)   ;;  %s7786_s30 = smov (!%p376_p9), 1   ;;  %v6243_v7 = vld [vmem:[%s7775_s2 + $0x8] sm:$0xff] (!%p376_p9)   ;;  %v6241_v8 = vld [vmem:[%s7776_s3 + $0x1c] sm:$0xff] (!%p376_p9)   ;;  %v6532_v11 = vmov (!%p376_p9), 1  }
  0x13   : > { %5402 = vmatprep.mubr.msk.bf16.mxu0 (!%p376_p9), %vm480_vm1, %v6242_v1  ;;  %v6244_v9 = vld [vmem:[%s7776_s3 + $0x24] ss:$0 sps:$4 sm:$0xff] (!%p376_p9)   ;;  %6047 = vset.pattern.permute.xlu1 (!%p376_p9), %v6532_v11  ;;  %v6711_v12 = vld [vmem:[%s7784_s11 + $0x8] sm:$0xff] (!%p376_p9)  ;;  %v6717_v13 = vld [vmem:[%s7784_s11 + $0x10] sm:$0xff] (!%p376_p9)  ;;  %v6737_v17 = vand.u32 (!%p376_p9), 127, %v561_v16  ;;  %vm949_vm11 = vcmask (!%p376_p9), 1043456  }
  0x14   : > { %v6705_v10 = vld [vmem:[%s7784_s11] sm:$0xff] (!%p376_p9)  ;;  %6048 = vset.pattern.permute.xlu0 (!%p376_p9), %v6532_v11  ;;  %v6725_v14 = vld [vmem:[%s7784_s11 + $0x18] sm:$0xff] (!%p376_p9)  ;;  %v6246_v29 = vld [vmem:[%s7776_s3 + $0x28] sm:$0xff] (!%p376_p9)   ;;  %vm933_vm12 = vcmask (!%p376_p9), 326656   ;;  %s7803_s29 = smov (!%p376_p9), 127   ;;  %s7804_s1 = sld [smem:[#allocation7_spill]] (!%p376_p9) }
  0x15   : > { %815 = vperm.xlu1 (!%p376_p9), %6047, %v6705_v10   ;;  %v6733_v15 = vld [vmem:[%s7784_s11 + $0x20] sm:$0xff] (!%p376_p9)  ;;  %vm563_vm2 = vcmp.ge.s32.totalorder (!%p376_p9), %v6737_v17, 1  ;;  %vm727_vm4 = vcmp.lt.s32.totalorder (!%p376_p9), %v6737_v17, 127  ;;  %v6247_v30 = vld [vmem:[%s7776_s3 + $0x8] sm:$0xff] (!%p376_p9)   ;;  %v6248_v31 = vld [vmem:[%s7776_s3 + $0x30] sm:$0xff] (!%p376_p9)   ;;  %s7809_s19 = smov (!%p376_p9), 2  }
  0x16   : > { %vm6743_vm3 = vmpackc.low (!%p376_p9), %vm563_vm2, %vm563_vm2  ;;  %v6245_v24 = vld [vmem:[%s7776_s3] sm:$0xff] (!%p376_p9)   ;;  %v6249_v32 = vld [vmem:[%s7776_s3 + $0x10] ss:$0 sps:$4 sm:$0xff] (!%p376_p9)  }
  0x17   : > { %vm6756_vm5 = vmpackc.low (!%p376_p9), %vm727_vm4, %vm727_vm4  ;;  %v6250_v33 = vld [vmem:[%s7776_s3 + $0x38] ss:$0 sps:$4 sm:$0xff] (!%p376_p9)  }
  0x18   : > { %v6314_v21 = vld [vmem:[%s7779_s6 + $0xd8] sm:$0xff] (!%p376_p9)  }
  0x19   : > { %s6667_s15 = scalar_select %p422_p10, %s6635_s25, 1  ;;  %819 = vperm.xlu1 %6047, %v6711_v12   ;;  %v6318_v27 = vld [vmem:[%s7779_s6 + $0x118] sm:$0xff]  }
  0x1b   : > { %s5218_s18 = sshll.u32 %s6667_s15, 4 }
  0x1c   : > { %s426_s26 = scalar_lea.vmem %s7797_s0, %s5218_s18  ;;  %s7788_s18 = smov 127  }
  0x1d   : > { %v443_v2 = vld [vmem:[%s426_s26] sm:$0xff]  ;;  %v444_v3 = vld [vmem:[%s426_s26 + $0x8] sm:$0xff]  ;;  %827 = vperm.xlu1 %6047, %v6725_v14   ;;  %s7802_s26 = smov 1   ;;  %s7790_s0 = smov 2  }
  0x1e   : > { %v6037_v4 = vpack.i.bf16 %v444_v3, %v443_v2  ;;  %v449_v5 = vpack.c.bf16 %v444_v3, %v443_v2 }
  0x20   : > { %6038 = vrot.lane.b32.xlu0 %v6037_v4, %s7786_s30  ;;  %5407 = vmatpush3.bf16.msra.mxu1 %v449_v5  ;;  %s5219_s30 = sshll.u32 %s6667_s15, 5  ;;  %s5215_s15 = sshll.u32 %s6635_s25, 5 }
  0x21   : > { %5400 = vmatprep.subr.bf16.mxu0 %v449_v5  ;;  %5434 = vmatprep.subr.bf16.mxu1 %v6528_v0  ;;  %s6998_s20 = scalar_lea.vmem %s7804_s1, %s5219_s30  ;;  %s6539_s30 = smov 126  }
  0x22   : > { %5401 = vmatpush3.bf16.msra.mxu0 %v449_v5  ;;  %832 = vperm.xlu1 %6047, %v6733_v15   ;;  %s7731_s17 = scalar_lea.hbm %s7785_s12, %s5215_s15 }
  0x23   : > { %5409 = vmatmul.mubr.msk.bf16.vlgmr.msra.gmra.mrb[0].mxu1 %vm480_vm1, %v6240_v6  ;;  %5420 = vmatprep.subr.bf16.mxu0 %v6528_v0 }
  0x24   : > { %6043 = vrot.lane.b32.xlu0 %v6037_v4, %s7788_s18  ;;  %5412 = vmatprep.mubr.msk.bf16.mxu1 %vm6529_vm0, %v6528_v0 }
  0x25   : > { %5403 = vmatmul.mubr.msk.bf16.vlgmr.msra.gmra.mrb[0].mxu0 %vm480_vm1, %v6243_v7 }
  0x26   : > { %5422 = vmatprep.mubr.msk.bf16.mxu0 %vm6529_vm0, %v6528_v0 }
  0x28   : > { %823 = vperm.xlu0 %6048, %v6717_v13  }
  0x2b   : > { %5413 = vmatmul.mubr.msk.bf16.gmra.mrb[4].mxu1 %vm480_vm1, %v6241_v8 }
  0x2c   : > { %5416 = vmatprep.mubr.msk.bf16.mxu1 %vm6529_vm0, %v6528_v0 }
  0x33   : > { %5417 = vmatmul.mubr.msk.bf16.gmra.mrb[8].mxu1 %vm480_vm1, %v6244_v9 }
  0x34   : > { %5436 = vmatprep.mubr.msk.bf16.mxu1 %vm6529_vm0, %v6528_v0 }
  0x92   : > { %v6039_v18 = vpop.permute.xlu0 %6038 }
  0x93   : > { %v6041_v19 = vunpack.i.h.bf16 %v6039_v18  ;;  %v6040_v20 = vunpack.i.l.bf16 %v6039_v18 }
  0x94   : > { %v816_v54 = vpop.permute.xlu1 %815 }
  0x95   : > { %v4733_v22 = vpack.c.bf16 %v6041_v19, %v6040_v20 }
  0x96   : > { %v6044_v23 = vpop.permute.xlu0 %6043 }
  0x97   : > { %v6046_v25 = vunpack.i.h.bf16 %v6044_v23  ;;  %v6045_v26 = vunpack.i.l.bf16 %v6044_v23  ;;  %5421 = vmatpush3.bf16.msk.msra.mxu0 %vm6743_vm3, %v4733_v22 }
  0x98   : > { %5448 = vmatprep.subr.bf16.mxu0 %v6528_v0  ;;  %v820_v1 = vpop.permute.xlu1 %819 }
  0x99   : > { %v4742_v28 = vpack.c.bf16 %v6046_v25, %v6045_v26 }
  0x9a   : > { %5423 = vmatmul.mubr.msk.bf16.vlgmr.msra.gmra.mrb[4].mxu0 %vm480_vm1, %v6245_v24 }
  0x9b   : > { %5435 = vmatpush3.bf16.msk.msra.mxu1 %vm6756_vm5, %v4742_v28  ;;  %5426 = vmatprep.mubr.msk.bf16.mxu0 %vm6529_vm0, %v6528_v0 }
  0x9c   : > { %5816 = vmatprep.subr.bf16.mxu1 %v6528_v0 }
  0x9e   : > { %5437 = vmatmul.mubr.msk.bf16.vlgmr.msra.gmra.mrb[12].mxu1 %vm480_vm1, %v6246_v29 }
  0x9f   : > { %5440 = vmatprep.mubr.msk.bf16.mxu1 %vm6529_vm0, %v6528_v0 }
  0xa2   : > { %5427 = vmatmul.mubr.msk.bf16.gmra.mrb[8].mxu0 %vm480_vm1, %v6247_v30 }
  0xa3   : > { %5430 = vmatprep.mubr.msk.bf16.mxu0 %vm6529_vm0, %v6528_v0 }
  0xa6   : > { %5441 = vmatmul.mubr.msk.bf16.gmra.mrb[16].mxu1 %vm480_vm1, %v6248_v31 }
  0xa7   : > { %5444 = vmatprep.mubr.msk.bf16.mxu1 %vm6529_vm0, %v6528_v0  ;;  %v824_v19 = vpop.permute.xlu0 %823 }
  0xaa   : > { %5431 = vmatmul.mubr.msk.bf16.gmra.mrb[12].mxu0 %vm480_vm1, %v6249_v32  ;;  %v828_v32 = vpop.permute.xlu1 %827 }
  0xab   : > { %5454 = vmatprep.mubr.msk.bf16.mxu0 %vm6529_vm0, %v6528_v0 }
  0xae   : > { %5445 = vmatmul.mubr.msk.bf16.gmra.mrb[20].mxu1 %vm480_vm1, %v6250_v33 }
  0xaf   : > { %5462 = vmatprep.mubr.msk.bf16.mxu1 %vm6529_vm0, %v6528_v0 }
  0xf6   : > { %v623_v34 = vpop.f32.mrb[0].mxu1 }
  0xf7   : > { %v5410_v35 = vpop.f32.mrb[1].mxu1 }
  0xf8   : > { %v626_v36 = vpop.f32.mrb[2].mxu1  ;;  %v6797_v37 = vpop.f32.mrb[0].mxu0 }
  0xf9   : > { %v5411_v38 = vpop.f32.mrb[3].mxu1  ;;  %v6799_v39 = vpop.f32.mrb[1].mxu0 }
  0xfa   : > { %v6801_v40 = vpop.f32.mrb[2].mxu0 }
  0xfb   : > { %v6803_v41 = vpop.f32.mrb[3].mxu0 }
  0xfe   : > { %v631_v42 = vpop.f32.mrb[4].mxu1 }
  0xff   : > { %v5414_v43 = vpop.f32.mrb[5].mxu1 }
 0x100   : > { %v634_v44 = vpop.f32.mrb[6].mxu1 }
 0x101   : > { %v5415_v45 = vpop.f32.mrb[7].mxu1 }
 0x106   : > { %v639_v46 = vpop.f32.mrb[8].mxu1 }
 0x107   : > { %v5418_v47 = vpop.f32.mrb[9].mxu1 }
 0x108   : > { %v642_v48 = vpop.f32.mrb[10].mxu1 }
 0x109   : > { %v5419_v49 = vpop.f32.mrb[11].mxu1 }
 0x16d   : > { %v701_v50 = vpop.f32.mrb[4].mxu0 }
 0x16e   : > { %v702_v51 = vadd.f32 %v701_v50, %v623_v34  ;;  %v5424_v52 = vpop.f32.mrb[5].mxu0 }
 0x16f   : > { %v704_v53 = vpop.f32.mrb[6].mxu0 }
 0x170   : > { %v705_v55 = vadd.f32 %v704_v53, %v626_v36  ;;  %v5425_v56 = vpop.f32.mrb[7].mxu0 }
 0x171   : > { %v787_v57 = vpop.f32.mrb[12].mxu1 }
 0x172   : > { %v809_v58 = vadd.f32 %v787_v57, %v702_v51  ;;  %v5438_v59 = vpop.f32.mrb[13].mxu1  ;;  %v833_v51 = vpop.permute.xlu1 %832 }
 0x173   : > { %v790_v60 = vpop.f32.mrb[14].mxu1 }
 0x174   : > { %v835_v61 = vadd.f32 %v816_v54, %v809_v58  ;;  %v810_v62 = vadd.f32 %v790_v60, %v705_v55  ;;  %v5439_v63 = vpop.f32.mrb[15].mxu1  ;;  %v6251_v60 = vld [vmem:[%s7777_s4 + $0x38] sm:$0xff]  }
 0x175   : > { %v709_v2 = vpop.f32.mrb[8].mxu0  ;;  %v6255_v63 = vld [vmem:[%s7777_s4 + $0x30] sm:$0xff]  }
 0x176   : > { %v845_v3 = vmul.f32 0.4, %v835_v61  ;;  %v836_v4 = vadd.f32 %v820_v1, %v810_v62  ;;  %v710_v5 = vadd.f32 %v709_v2, %v631_v42  ;;  %v5428_v6 = vpop.f32.mrb[9].mxu0  ;;  %vm840_vm6 = vcmp.ge.f32.partialorder %v835_v61, 0.0  ;;  %v6252_v62 = vld [vmem:[%s7777_s4 + $0x40] sm:$0xff]   ;;  %v6254_v1 = vld [vmem:[%s7777_s4 + $0x48] sm:$0xff]  }
 0x177   : > { %v712_v7 = vpop.f32.mrb[10].mxu0  ;;  %v6533_v2 = vmov 2  }
 0x178   : > { %vm841_vm7 = vcmp.ge.f32.partialorder %v836_v4, 0.0  ;;  %v846_v8 = vmul.f32 0.4, %v836_v4  ;;  %v713_v9 = vadd.f32 %v712_v7, %v634_v44  ;;  %v5429_v16 = vpop.f32.mrb[11].mxu0  ;;  %v850_v23 = vsel %vm840_vm6, %v835_v61, %v845_v3  ;;  %v6253_v61 = vld [vmem:[%s7777_s4 + $0x28] sm:$0xff]   ;;  %6069 = vset.pattern.permute.xlu0 %v6533_v2  ;;  %6070 = vset.pattern.permute.xlu1 %v6533_v2 }
 0x179   : > { %v795_v18 = vpop.f32.mrb[16].mxu1  ;;  %v6857_v3 = vld [vmem:[%s7784_s11 + $0x28] sm:$0xff] }
 0x17a   : > { %v811_v20 = vadd.f32 %v795_v18, %v710_v5  ;;  %v5442_v22 = vpop.f32.mrb[17].mxu1  ;;  %v851_v24 = vsel %vm841_vm7, %v836_v4, %v846_v8  ;;  %v6864_v4 = vld [vmem:[%s7784_s11 + $0x38] sm:$0xff] }
 0x17b   : > { %v798_v25 = vpop.f32.mrb[18].mxu1  ;;  %v6054_v26 = vpack.i.bf16 %v851_v24, %v850_v23  ;;  %v905_v28 = vpack.c.bf16 %v851_v24, %v850_v23 }
 0x17c   : > { %v837_v29 = vadd.f32 %v824_v19, %v811_v20  ;;  %v812_v30 = vadd.f32 %v798_v25, %v713_v9  ;;  %v5443_v31 = vpop.f32.mrb[19].mxu1 }
 0x17d   : > { %6055 = vrot.lane.b32.xlu1 %v6054_v26, %s7788_s18  ;;  %6050 = vrot.lane.b32.xlu0 %v6054_v26, %s7802_s26  ;;  %v717_v33 = vpop.f32.mrb[12].mxu0 }
 0x17e   : > { %v847_v34 = vmul.f32 0.4, %v837_v29  ;;  %v838_v35 = vadd.f32 %v828_v32, %v812_v30  ;;  %v718_v36 = vadd.f32 %v717_v33, %v639_v46  ;;  %5449 = vmatpush3.bf16.msra.mxu0 %v905_v28  ;;  %5819 = vmatpush3.bf16.msra.mxu1 %v905_v28  ;;  %v5432_v38 = vpop.f32.mrb[13].mxu0  ;;  %vm842_vm8 = vcmp.ge.f32.partialorder %v837_v29, 0.0  ;;  %v6256_v33 = vld [vmem:[%s7777_s4] sm:$0xff]  }
 0x17f   : > { %5450 = vmatprep.subr.bf16.mxu0 %v6528_v0  ;;  %5817 = vmatprep.subr.bf16.mxu1 %v6528_v0  ;;  %v720_v42 = vpop.f32.mrb[14].mxu0  ;;  %v6257_v38 = vld [vmem:[%s7777_s4 + $0x50] sm:$0xff]  }
 0x180   : > { %vm843_vm9 = vcmp.ge.f32.partialorder %v838_v35, 0.0  ;;  %v848_v43 = vmul.f32 0.4, %v838_v35  ;;  %v5433_v44 = vpop.f32.mrb[15].mxu0  ;;  %v852_v48 = vsel %vm842_vm8, %v837_v29, %v847_v34  ;;  %v6258_v42 = vld [vmem:[%s7777_s4 + $0x8] sm:$0xff]  }
 0x181   : > { %v803_v45 = vpop.f32.mrb[20].mxu1  ;;  %v6260_v44 = vld [vmem:[%s7777_s4 + $0x10] sm:$0xff]  }
 0x182   : > { %v813_v47 = vadd.f32 %v803_v45, %v718_v36  ;;  %v853_v49 = vsel %vm843_vm9, %v838_v35, %v848_v43  ;;  %v5446_v50 = vpop.f32.mrb[21].mxu1  ;;  %v6259_v43 = vld [vmem:[%s7777_s4 + $0x58] sm:$0xff]   ;;  %v6261_v45 = vld [vmem:[%s7777_s4 + $0x60] sm:$0xff]  }
 0x183   : > { %v6059_v52 = vpack.i.bf16 %v853_v49, %v852_v48  ;;  %v906_v46 = vpack.c.bf16 %v853_v49, %v852_v48  ;;  %v806_v53 = vpop.f32.mrb[22].mxu1  ;;  %v6263_v48 = vld [vmem:[%s7777_s4 + $0x68] sm:$0xff]   ;;  %v6264_v49 = vld [vmem:[%s7777_s4 + $0x20] sm:$0xff]   ;;  %v6265_v50 = vld [vmem:[%s7777_s4 + $0x70] sm:$0xff]  }
 0x184   : > { %v839_v54 = vadd.f32 %v833_v51, %v813_v47  ;;  %v5447_v55 = vpop.f32.mrb[23].mxu1  ;;  %v6262_v47 = vld [vmem:[%s7777_s4 + $0x18] sm:$0xff]  }
 0x185   : > { %6060 = vrot.lane.b32.xlu0 %v6059_v52, %s7802_s26  ;;  %5451 = vmatpush3.bf16.msra.mxu0 %v906_v46 }
 0x186   : > { %5820 = vmatpush3.bf16.msra.mxu1 %v906_v46  ;;  %vm844_vm10 = vcmp.ge.f32.partialorder %v839_v54, 0.0  ;;  %v849_v56 = vmul.f32 0.4, %v839_v54  ;;  %5452 = vmatprep.subr.bf16.mxu0 %v6528_v0 }
 0x187   : > { %5818 = vmatprep.subr.bf16.mxu1 %v6528_v0 }
 0x188   : > { %v854_v57 = vsel %vm844_vm10, %v839_v54, %v849_v56 }
 0x189   : > { %6065 = vrot.lane.b32.xlu0 %v6059_v52, %s7788_s18  ;;  %895 = vrot.lane.b32.xlu1 %v854_v57, %s7802_s26  ;;  %v907_v58 = vpack.c.bf16 %v854_v57, %v854_v57 }
 0x18b   : > { %v951_v59 = vsel %vm949_vm11, %v907_v58, 0 }
 0x18c   : > { %5453 = vmatpush3.bf16.msra.mxu0 %v951_v59  ;;  %5821 = vmatpush3.bf16.msra.mxu1 %v951_v59 }
 0x18d   : > { %1150 = vrot.lane.b32.xlu1 %v854_v57, %s7788_s18  ;;  %5474 = vmatprep.subr.bf16.mxu1 %v6528_v0 }
 0x18e   : > { %5500 = vmatprep.subr.bf16.mxu0 %v6528_v0  ;;  %1287 = vperm.xlu0 %6069, %v6705_v10   ;;  %v6869_v10 = vld [vmem:[%s7784_s11 + $0x30] sm:$0xff] }
 0x18f   : > { %5463 = vmatmul.mubr.msk.bf16.vlgmr.msra.gmra.mrb[24].mxu1 %vm933_vm12, %v6251_v60  ;;  %5455 = vmatmul.mubr.msk.bf16.vlgmr.msra.gmra.mrb[16].mxu0 %vm933_vm12, %v6253_v61 }
 0x190   : > { %5466 = vmatprep.mubr.msk.bf16.mxu1 %vm6529_vm0, %v6528_v0  ;;  %5458 = vmatprep.mubr.msk.bf16.mxu0 %vm6529_vm0, %v6528_v0 }
 0x191   : > { %1291 = vperm.xlu1 %6070, %v6711_v12   ;;  %v442_v12 = vld [vmem:[%s7784_s11 + $0x48] sm:$0xff] }
 0x192   : > { %1299 = vperm.xlu0 %6069, %v6725_v14  }
 0x195   : > { %1295 = vperm.xlu1 %6070, %v6717_v13   ;;  %v441_v13 = vld [vmem:[%s7784_s11 + $0x40] sm:$0xff] }
 0x196   : > { %1308 = vperm.xlu0 %6069, %v6857_v3  }
 0x197   : > { %5467 = vmatmul.mubr.msk.bf16.gmra.mrb[28].mxu1 %vm933_vm12, %v6252_v62  ;;  %5459 = vmatmul.mubr.msk.bf16.gmra.mrb[20].mxu0 %vm933_vm12, %v6255_v63 }
 0x198   : > { %5470 = vmatprep.mubr.msk.bf16.mxu1 %vm6529_vm0, %v6528_v0  ;;  %5506 = vmatprep.mubr.msk.bf16.mxu0 %vm6529_vm0, %v6528_v0 }
 0x199   : > { %1303 = vperm.xlu1 %6070, %v6733_v15  }
 0x19a   : > { %1318 = vperm.xlu0 %6069, %v6864_v4  }
 0x19d   : > { %1313 = vperm.xlu1 %6070, %v6869_v10  }
 0x19e   : > { %1328 = vperm.xlu0 %6069, %v442_v12  }
 0x19f   : > { %5471 = vmatmul.mubr.msk.bf16.gmra.mrb[32].mxu1 %vm933_vm12, %v6254_v1 }
 0x1a0   : > { %5480 = vmatprep.mubr.msk.bf16.mxu1 %vm6529_vm0, %v6528_v0 }
 0x1a1   : > { %1323 = vperm.xlu1 %6070, %v441_v13  }
 0x1ef   : > { %v6056_v14 = vpop.permute.xlu1 %6055  ;;  %v6051_v15 = vpop.permute.xlu0 %6050 }
 0x1f0   : > { %v6058_v5 = vunpack.i.h.bf16 %v6056_v14  ;;  %v6057_v6 = vunpack.i.l.bf16 %v6056_v14  ;;  %v6053_v7 = vunpack.i.h.bf16 %v6051_v15  ;;  %v6052_v8 = vunpack.i.l.bf16 %v6051_v15 }
 0x1f2   : > { %v4799_v9 = vpack.c.bf16 %v6058_v5, %v6057_v6  ;;  %v4783_v16 = vpack.c.bf16 %v6053_v7, %v6052_v8  ;;  %v6534_v6 = vmov 0  }
 0x1f3   : > { %6122 = vset.pattern.permute.xlu0 %v6534_v6  ;;  %6121 = vset.pattern.permute.xlu1 %v6534_v6 }
 0x1f4   : > { %5475 = vmatpush3.bf16.msk.msra.mxu1 %vm6743_vm3, %v4783_v16  ;;  %5501 = vmatpush3.bf16.msk.msra.mxu0 %vm6756_vm5, %v4799_v9 }
 0x1f5   : > { %5476 = vmatprep.subr.bf16.mxu1 %v6528_v0  ;;  %5502 = vmatprep.subr.bf16.mxu0 %v6528_v0 }
 0x1f7   : > { %v6061_v18 = vpop.permute.xlu0 %6060 }
 0x1f8   : > { %v6063_v19 = vunpack.i.h.bf16 %v6061_v18  ;;  %v6062_v20 = vunpack.i.l.bf16 %v6061_v18 }
 0x1fa   : > { %v4786_v22 = vpack.c.bf16 %v6063_v19, %v6062_v20 }
 0x1fb   : > { %v6066_v23 = vpop.permute.xlu0 %6065  ;;  %v896_v24 = vpop.permute.xlu1 %895 }
 0x1fc   : > { %v6068_v25 = vunpack.i.h.bf16 %v6066_v23  ;;  %v6067_v26 = vunpack.i.l.bf16 %v6066_v23  ;;  %v901_v28 = vsel %vm563_vm2, %v896_v24, 0.0  ;;  %5477 = vmatpush3.bf16.msk.msra.mxu1 %vm6743_vm3, %v4786_v22 }
 0x1fd   : > { %v904_v29 = vpack.c.bf16 %v901_v28, %v901_v28  ;;  %5478 = vmatprep.subr.bf16.mxu1 %v6528_v0 }
 0x1fe   : > { %v4802_v30 = vpack.c.bf16 %v6068_v25, %v6067_v26 }
 0x1ff   : > { %v1151_v31 = vpop.permute.xlu1 %1150  ;;  %v1067_v32 = vsel %vm949_vm11, %v904_v29, 0 }
 0x200   : > { %v1156_v34 = vsel %vm727_vm4, %v1151_v31, 0.0  ;;  %5479 = vmatpush3.bf16.msra.mxu1 %v1067_v32  ;;  %5503 = vmatpush3.bf16.msk.msra.mxu0 %vm6756_vm5, %v4802_v30 }
 0x201   : > { %v1159_v35 = vpack.c.bf16 %v1156_v34, %v1156_v34  ;;  %5504 = vmatprep.subr.bf16.mxu0 %v6528_v0  ;;  %5526 = vmatprep.subr.bf16.mxu1 %v6528_v0 }
 0x203   : > { %5481 = vmatmul.mubr.msk.bf16.vlgmr.msra.gmra.mrb[36].mxu1 %vm933_vm12, %v6256_v33  ;;  %v1201_v36 = vsel %vm949_vm11, %v1159_v35, 0  ;;  %vm1424_vm11 = vcmask 654336  }
 0x204   : > { %5505 = vmatpush3.bf16.msra.mxu0 %v1201_v36  ;;  %5484 = vmatprep.mubr.msk.bf16.mxu1 %vm6529_vm0, %v6528_v0 }
 0x205   : > { %5554 = vmatprep.subr.bf16.mxu0 %v6528_v0 }
 0x207   : > { %5507 = vmatmul.mubr.msk.bf16.vlgmr.msra.gmra.mrb[24].mxu0 %vm933_vm12, %v6257_v38 }
 0x208   : > { %5510 = vmatprep.mubr.msk.bf16.mxu0 %vm6529_vm0, %v6528_v0 }
 0x20b   : > { %5485 = vmatmul.mubr.msk.bf16.gmra.mrb[40].mxu1 %vm933_vm12, %v6258_v42 }
 0x20c   : > { %5488 = vmatprep.mubr.msk.bf16.mxu1 %vm6529_vm0, %v6528_v0 }
 0x20d   : > { %v1288_v22 = vpop.permute.xlu0 %1287 }
 0x20f   : > { %5511 = vmatmul.mubr.msk.bf16.gmra.mrb[28].mxu0 %vm933_vm12, %v6259_v43 }
 0x210   : > { %5514 = vmatprep.mubr.msk.bf16.mxu0 %vm6529_vm0, %v6528_v0  ;;  %v1292_v26 = vpop.permute.xlu1 %1291 }
 0x213   : > { %5489 = vmatmul.mubr.msk.bf16.gmra.mrb[44].mxu1 %vm933_vm12, %v6260_v44 }
 0x214   : > { %5492 = vmatprep.mubr.msk.bf16.mxu1 %vm6529_vm0, %v6528_v0 }
 0x217   : > { %5515 = vmatmul.mubr.msk.bf16.gmra.mrb[32].mxu0 %vm933_vm12, %v6261_v45 }
 0x218   : > { %5518 = vmatprep.mubr.msk.bf16.mxu0 %vm6529_vm0, %v6528_v0 }
 0x21b   : > { %5493 = vmatmul.mubr.msk.bf16.gmra.mrb[48].mxu1 %vm933_vm12, %v6262_v47 }
 0x21c   : > { %5496 = vmatprep.mubr.msk.bf16.mxu1 %vm6529_vm0, %v6528_v0 }
 0x21f   : > { %5519 = vmatmul.mubr.msk.bf16.gmra.mrb[36].mxu0 %vm933_vm12, %v6263_v48 }
 0x220   : > { %5522 = vmatprep.mubr.msk.bf16.mxu0 %vm6529_vm0, %v6528_v0 }
 0x223   : > { %5497 = vmatmul.mubr.msk.bf16.gmra.mrb[52].mxu1 %vm933_vm12, %v6264_v49 }
 0x224   : > { %5536 = vmatprep.mubr.msk.bf16.mxu1 %vm6529_vm0, %v6528_v0 }
 0x227   : > { %5523 = vmatmul.mubr.msk.bf16.gmra.mrb[40].mxu0 %vm933_vm12, %v6265_v50  ;;  %v1296_v50 = vpop.permute.xlu1 %1295  ;;  %vm1710_vm12 = vcmask 261120  }
 0x228   : > { %5564 = vmatprep.mubr.msk.bf16.mxu0 %vm6529_vm0, %v6528_v0 }
 0x262   : > { %v6959_v51 = vpop.f32.mrb[24].mxu1  ;;  %v987_v52 = vpop.f32.mrb[16].mxu0 }
 0x263   : > { %v5464_v46 = vpop.f32.mrb[25].mxu1  ;;  %v5456_v53 = vpop.f32.mrb[17].mxu0 }
 0x264   : > { %v6961_v54 = vpop.f32.mrb[26].mxu1  ;;  %v990_v55 = vpop.f32.mrb[18].mxu0 }
 0x265   : > { %v5465_v56 = vpop.f32.mrb[27].mxu1  ;;  %v5457_v57 = vpop.f32.mrb[19].mxu0 }
 0x26a   : > { %v6963_v58 = vpop.f32.mrb[28].mxu1  ;;  %v995_v59 = vpop.f32.mrb[20].mxu0 }
 0x26b   : > { %v5468_v60 = vpop.f32.mrb[29].mxu1  ;;  %v5460_v61 = vpop.f32.mrb[21].mxu0 }
 0x26c   : > { %v6965_v62 = vpop.f32.mrb[30].mxu1  ;;  %v998_v63 = vpop.f32.mrb[22].mxu0 }
 0x26d   : > { %v5469_v1 = vpop.f32.mrb[31].mxu1  ;;  %v5461_v12 = vpop.f32.mrb[23].mxu0 }
 0x272   : > { %v6967_v13 = vpop.f32.mrb[32].mxu1 }
 0x273   : > { %v5472_v14 = vpop.f32.mrb[33].mxu1 }
 0x274   : > { %v6969_v15 = vpop.f32.mrb[34].mxu1 }
 0x275   : > { %v5473_v5 = vpop.f32.mrb[35].mxu1 }
 0x2d6   : > { %v1103_v7 = vpop.f32.mrb[36].mxu1 }
 0x2d7   : > { %v1104_v8 = vadd.f32 %v1103_v7, %v987_v52  ;;  %v5482_v9 = vpop.f32.mrb[37].mxu1 }
 0x2d8   : > { %v1106_v16 = vpop.f32.mrb[38].mxu1 }
 0x2d9   : > { %v1107_v18 = vadd.f32 %v1106_v16, %v990_v55  ;;  %v5483_v19 = vpop.f32.mrb[39].mxu1 }
 0x2da   : > { %v1237_v20 = vpop.f32.mrb[24].mxu0 }
 0x2db   : > { %v1276_v23 = vadd.f32 %v1237_v20, %v1104_v8  ;;  %v5508_v24 = vpop.f32.mrb[25].mxu0  ;;  %v1304_v20 = vpop.permute.xlu1 %1303 }
 0x2dc   : > { %v1240_v25 = vpop.f32.mrb[26].mxu0 }
 0x2dd   : > { %v1331_v28 = vadd.f32 %v1288_v22, %v1276_v23  ;;  %v1277_v29 = vadd.f32 %v1240_v25, %v1107_v18  ;;  %v5509_v30 = vpop.f32.mrb[27].mxu0 }
 0x2de   : > { %v1111_v31 = vpop.f32.mrb[40].mxu1 }
 0x2df   : > { %v1351_v32 = vmul.f32 0.4, %v1331_v28  ;;  %v1332_v33 = vadd.f32 %v1292_v26, %v1277_v29  ;;  %v1112_v34 = vadd.f32 %v1111_v31, %v995_v59  ;;  %v5486_v35 = vpop.f32.mrb[41].mxu1  ;;  %vm1341_vm13 = vcmp.ge.f32.partialorder %v1331_v28, 0.0  ;;  %v1300_v59 = vpop.permute.xlu0 %1299 }
 0x2e0   : > { %v1114_v36 = vpop.f32.mrb[42].mxu1 }
 0x2e1   : > { %vm1342_vm14 = vcmp.ge.f32.partialorder %v1332_v33, 0.0  ;;  %v1352_v38 = vmul.f32 0.4, %v1332_v33  ;;  %v1115_v42 = vadd.f32 %v1114_v36, %v998_v63  ;;  %v5487_v43 = vpop.f32.mrb[43].mxu1  ;;  %v1361_v48 = vsel %vm1341_vm13, %v1331_v28, %v1351_v32 }
 0x2e2   : > { %v1245_v44 = vpop.f32.mrb[28].mxu0 }
 0x2e3   : > { %v1278_v45 = vadd.f32 %v1245_v44, %v1112_v34  ;;  %v5512_v47 = vpop.f32.mrb[29].mxu0  ;;  %v1362_v49 = vsel %vm1342_vm14, %v1332_v33, %v1352_v38  ;;  %v1309_v28 = vpop.permute.xlu0 %1308 }
 0x2e4   : > { %v1248_v52 = vpop.f32.mrb[30].mxu0  ;;  %v6076_v46 = vpack.i.bf16 %v1362_v49, %v1361_v48  ;;  %v1414_v53 = vpack.c.bf16 %v1362_v49, %v1361_v48  ;;  %v1314_v47 = vpop.permute.xlu1 %1313 }
 0x2e5   : > { %v1333_v55 = vadd.f32 %v1296_v50, %v1278_v45  ;;  %v1279_v56 = vadd.f32 %v1248_v52, %v1115_v42  ;;  %v5513_v57 = vpop.f32.mrb[31].mxu0 }
 0x2e6   : > { %v1119_v60 = vpop.f32.mrb[44].mxu1  ;;  %6077 = vrot.lane.b32.xlu0 %v6076_v46, %s7803_s29  ;;  %6072 = vrot.lane.b32.xlu1 %v6076_v46, %s7802_s26 }
 0x2e7   : > { %v1353_v61 = vmul.f32 0.4, %v1333_v55  ;;  %v1334_v63 = vadd.f32 %v1300_v59, %v1279_v56  ;;  %v1120_v1 = vadd.f32 %v1119_v60, %v6959_v51  ;;  %5527 = vmatpush3.bf16.msra.mxu1 %v1414_v53  ;;  %v5490_v12 = vpop.f32.mrb[45].mxu1  ;;  %vm1343_vm15 = vcmp.ge.f32.partialorder %v1333_v55, 0.0  ;;  %v1319_v53 = vpop.permute.xlu0 %1318 }
 0x2e8   : > { %v1122_v14 = vpop.f32.mrb[46].mxu1  ;;  %5528 = vmatprep.subr.bf16.mxu1 %v6528_v0 }
 0x2e9   : > { %vm1344_vm2 = vcmp.ge.f32.partialorder %v1334_v63, 0.0  ;;  %v1354_v5 = vmul.f32 0.4, %v1334_v63  ;;  %v1123_v6 = vadd.f32 %v1122_v14, %v6961_v54  ;;  %v5491_v7 = vpop.f32.mrb[47].mxu1  ;;  %v1363_v18 = vsel %vm1343_vm15, %v1333_v55, %v1353_v61 }
 0x2ea   : > { %v1253_v8 = vpop.f32.mrb[32].mxu0  ;;  %vm2396_vm15 = vcmp.ge.s32.totalorder %v6737_v17, 2 }
 0x2eb   : > { %v1280_v9 = vadd.f32 %v1253_v8, %v1120_v1  ;;  %v5516_v16 = vpop.f32.mrb[33].mxu0  ;;  %v1364_v19 = vsel %vm1344_vm2, %v1334_v63, %v1354_v5  ;;  %v1324_v8 = vpop.permute.xlu1 %1323  ;;  %vm7305_vm2 = vmpackc.low %vm2396_vm15, %vm2396_vm15 }
 0x2ec   : > { %v1256_v22 = vpop.f32.mrb[34].mxu0  ;;  %v6086_v23 = vpack.i.bf16 %v1364_v19, %v1363_v18  ;;  %v1415_v51 = vpack.c.bf16 %v1364_v19, %v1363_v18 }
 0x2ed   : > { %v1335_v24 = vadd.f32 %v1304_v20, %v1280_v9  ;;  %v1281_v25 = vadd.f32 %v1256_v22, %v1123_v6  ;;  %v5517_v26 = vpop.f32.mrb[35].mxu0  ;;  %v1329_v22 = vpop.permute.xlu0 %1328 }
 0x2ee   : > { %v1127_v29 = vpop.f32.mrb[48].mxu1  ;;  %6087 = vrot.lane.b32.xlu0 %v6086_v23, %s7803_s29  ;;  %6082 = vrot.lane.b32.xlu1 %v6086_v23, %s7802_s26 }
 0x2ef   : > { %v1355_v54 = vmul.f32 0.4, %v1335_v24  ;;  %v1336_v30 = vadd.f32 %v1309_v28, %v1281_v25  ;;  %v1128_v31 = vadd.f32 %v1127_v29, %v6963_v58  ;;  %5529 = vmatpush3.bf16.msra.mxu1 %v1415_v51  ;;  %v5494_v32 = vpop.f32.mrb[49].mxu1  ;;  %vm1345_vm4 = vcmp.ge.f32.partialorder %v1335_v24, 0.0  ;;  %v6266_v29 = vld [vmem:[%s7778_s5 + $0x8] sm:$0xff]  }
 0x2f0   : > { %v1130_v33 = vpop.f32.mrb[50].mxu1  ;;  %5530 = vmatprep.subr.bf16.mxu1 %v6528_v0  ;;  %v7023_v32 = vld [vmem:[%s7784_s11 + $0x10] sm:$0xff] }
 0x2f1   : > { %vm1346_vm6 = vcmp.ge.f32.partialorder %v1336_v30, 0.0  ;;  %v1356_v34 = vmul.f32 0.4, %v1336_v30  ;;  %v1131_v35 = vadd.f32 %v1130_v33, %v6965_v62  ;;  %v5495_v36 = vpop.f32.mrb[51].mxu1  ;;  %v1365_v44 = vsel %vm1345_vm4, %v1335_v24, %v1355_v54  ;;  %v7004_v54 = vld [vmem:[%s7784_s11 + $0x8] sm:$0xff]  ;;  %v7027_v33 = vld [vmem:[%s6998_s20 + $0x10] sm:$0xff] }
 0x2f2   : > { %v1261_v38 = vpop.f32.mrb[36].mxu0  ;;  %v7041_v36 = vld [vmem:[%s6998_s20 + $0x18] sm:$0xff]  ;;  %vm2607_vm4 = vcmp.lt.s32.totalorder %v6737_v17, 126  ;;  %v6295_v17 = vld [vmem:[%s7779_s6 + $0x70] sm:$0xff]  }
 0x2f3   : > { %v1282_v42 = vadd.f32 %v1261_v38, %v1128_v31  ;;  %v5520_v43 = vpop.f32.mrb[37].mxu0  ;;  %v1366_v45 = vsel %vm1346_vm6, %v1336_v30, %v1356_v34  ;;  %v7010_v30 = vld [vmem:[%s7784_s11] sm:$0xff]  ;;  %v7033_v34 = vld [vmem:[%s7784_s11 + $0x18] sm:$0xff]  ;;  %v6535_v38 = vmov 3   ;;  %vm7316_vm6 = vmpackc.low %vm2607_vm4, %vm2607_vm4 }
 0x2f4   : > { %v1264_v48 = vpop.f32.mrb[38].mxu0  ;;  %v6096_v49 = vpack.i.bf16 %v1366_v45, %v1365_v44  ;;  %v1416_v58 = vpack.c.bf16 %v1366_v45, %v1365_v44  ;;  %v7014_v31 = vld [vmem:[%s6998_s20] sm:$0xff] }
 0x2f5   : > { %v1337_v50 = vadd.f32 %v1314_v47, %v1282_v42  ;;  %v1283_v52 = vadd.f32 %v1264_v48, %v1131_v35  ;;  %v5521_v46 = vpop.f32.mrb[39].mxu0  ;;  %v7037_v35 = vld [vmem:[%s6998_s20 + $0x8] sm:$0xff] }
 0x2f6   : > { %v1135_v55 = vpop.f32.mrb[52].mxu1  ;;  %6097 = vrot.lane.b32.xlu0 %v6096_v49, %s7803_s29  ;;  %6092 = vrot.lane.b32.xlu1 %v6096_v49, %s7802_s26 }
 0x2f7   : > { %v1357_v62 = vmul.f32 0.4, %v1337_v50  ;;  %v1338_v56 = vadd.f32 %v1319_v53, %v1283_v52  ;;  %v1136_v57 = vadd.f32 %v1135_v55, %v6967_v13  ;;  %5531 = vmatpush3.bf16.msra.mxu1 %v1416_v58  ;;  %v5498_v59 = vpop.f32.mrb[53].mxu1  ;;  %vm1347_vm7 = vcmp.ge.f32.partialorder %v1337_v50, 0.0 }
 0x2f8   : > { %v1138_v60 = vpop.f32.mrb[54].mxu1  ;;  %5532 = vmatprep.subr.bf16.mxu1 %v6528_v0 }
 0x2f9   : > { %vm1348_vm8 = vcmp.ge.f32.partialorder %v1338_v56, 0.0  ;;  %v1358_v61 = vmul.f32 0.4, %v1338_v56  ;;  %v1139_v63 = vadd.f32 %v1138_v60, %v6969_v15  ;;  %v5499_v1 = vpop.f32.mrb[55].mxu1  ;;  %v1367_v6 = vsel %vm1347_vm7, %v1337_v50, %v1357_v62 }
 0x2fa   : > { %v1269_v12 = vpop.f32.mrb[40].mxu0 }
 0x2fb   : > { %v1284_v14 = vadd.f32 %v1269_v12, %v1136_v57  ;;  %v5524_v5 = vpop.f32.mrb[41].mxu0  ;;  %v1368_v7 = vsel %vm1348_vm8, %v1338_v56, %v1358_v61 }
 0x2fc   : > { %v1272_v9 = vpop.f32.mrb[42].mxu0  ;;  %v6106_v16 = vpack.i.bf16 %v1368_v7, %v1367_v6  ;;  %v1417_v13 = vpack.c.bf16 %v1368_v7, %v1367_v6 }
 0x2fd   : > { %v1339_v18 = vadd.f32 %v1324_v8, %v1284_v14  ;;  %v1285_v19 = vadd.f32 %v1272_v9, %v1139_v63  ;;  %v5525_v20 = vpop.f32.mrb[43].mxu0 }
 0x2fe   : > { %6107 = vrot.lane.b32.xlu0 %v6106_v16, %s7803_s29  ;;  %6102 = vrot.lane.b32.xlu1 %v6106_v16, %s7802_s26 }
 0x2ff   : > { %v1359_v15 = vmul.f32 0.4, %v1339_v18  ;;  %v1340_v23 = vadd.f32 %v1329_v22, %v1285_v19  ;;  %5533 = vmatpush3.bf16.msra.mxu1 %v1417_v13  ;;  %vm1349_vm9 = vcmp.ge.f32.partialorder %v1339_v18, 0.0 }
 0x300   : > { %5534 = vmatprep.subr.bf16.mxu1 %v6528_v0 }
 0x301   : > { %vm1350_vm10 = vcmp.ge.f32.partialorder %v1340_v23, 0.0  ;;  %v1360_v51 = vmul.f32 0.4, %v1340_v23  ;;  %v1369_v24 = vsel %vm1349_vm9, %v1339_v18, %v1359_v15 }
 0x303   : > { %v1370_v25 = vsel %vm1350_vm10, %v1340_v23, %v1360_v51 }
 0x304   : > { %v6116_v26 = vpack.i.bf16 %v1370_v25, %v1369_v24  ;;  %v1418_v28 = vpack.c.bf16 %v1370_v25, %v1369_v24 }
 0x306   : > { %6117 = vrot.lane.b32.xlu0 %v6116_v26, %s7803_s29  ;;  %6112 = vrot.lane.b32.xlu1 %v6116_v26, %s7802_s26 }
 0x307   : > { %5535 = vmatpush3.bf16.msra.mxu1 %v1418_v28  ;;  %v6267_v28 = vld [vmem:[%s7778_s5] sm:$0xff]  }
 0x308   : > { %5540 = vmatprep.subr.bf16.mxu1 %v6528_v0 }
 0x30a   : > { %457 = vperm.xlu0 %6122, %v7004_v54   ;;  %452 = vperm.xlu1 %6121, %v7010_v30  }
 0x30b   : > { %5537 = vmatmul.mubr.msk.bf16.vlgmr.msra.gmra.mrb[56].mxu1 %vm1424_vm11, %v6266_v29  ;;  %v6268_v29 = vld [vmem:[%s7778_s5 + $0x10] sm:$0xff]  }
 0x30c   : > { %5550 = vmatprep.mubr.msk.bf16.mxu1 %vm6529_vm0, %v6528_v0 }
 0x30e   : > { %1626 = vperm.xlu0 %6122, %v7014_v31   ;;  %462 = vperm.xlu1 %6121, %v7023_v32  }
 0x312   : > { %1636 = vperm.xlu0 %6122, %v7027_v33   ;;  %467 = vperm.xlu1 %6121, %v7033_v34  }
 0x316   : > { %1631 = vperm.xlu1 %6121, %v7037_v35   ;;  %6143 = vset.pattern.permute.xlu0 %v6535_v38 }
 0x31a   : > { %1641 = vperm.xlu1 %6121, %v7041_v36  }
 0x31e   : > { %6144 = vset.pattern.permute.xlu1 %v6535_v38 }
 0x358   : > { %v6078_v42 = vpop.permute.xlu0 %6077  ;;  %v6073_v43 = vpop.permute.xlu1 %6072 }
 0x359   : > { %v6080_v44 = vunpack.i.h.bf16 %v6078_v42  ;;  %v6079_v45 = vunpack.i.l.bf16 %v6078_v42  ;;  %v6075_v47 = vunpack.i.h.bf16 %v6073_v43  ;;  %v6074_v48 = vunpack.i.l.bf16 %v6073_v43  ;;  %v6269_v42 = vld [vmem:[%s7779_s6 + $0x20] sm:$0xff]  }
 0x35b   : > { %v4834_v49 = vpack.c.bf16 %v6080_v44, %v6079_v45  ;;  %v4817_v58 = vpack.c.bf16 %v6075_v47, %v6074_v48 }
 0x35d   : > { %5541 = vmatpush3.bf16.msk.msra.mxu1 %vm6743_vm3, %v4817_v58  ;;  %5555 = vmatpush3.bf16.msk.msra.mxu0 %vm6756_vm5, %v4834_v49 }
 0x35e   : > { %5542 = vmatprep.subr.bf16.mxu1 %v6528_v0  ;;  %5556 = vmatprep.subr.bf16.mxu0 %v6528_v0 }
 0x360   : > { %v6088_v50 = vpop.permute.xlu0 %6087  ;;  %v6083_v52 = vpop.permute.xlu1 %6082 }
 0x361   : > { %v6090_v46 = vunpack.i.h.bf16 %v6088_v50  ;;  %v6089_v53 = vunpack.i.l.bf16 %v6088_v50  ;;  %v6085_v55 = vunpack.i.h.bf16 %v6083_v52  ;;  %v6084_v62 = vunpack.i.l.bf16 %v6083_v52 }
 0x363   : > { %v4837_v56 = vpack.c.bf16 %v6090_v46, %v6089_v53  ;;  %v4820_v57 = vpack.c.bf16 %v6085_v55, %v6084_v62 }
 0x365   : > { %5543 = vmatpush3.bf16.msk.msra.mxu1 %vm6743_vm3, %v4820_v57  ;;  %5557 = vmatpush3.bf16.msk.msra.mxu0 %vm6756_vm5, %v4837_v56 }
 0x366   : > { %5544 = vmatprep.subr.bf16.mxu1 %v6528_v0  ;;  %5558 = vmatprep.subr.bf16.mxu0 %v6528_v0 }
 0x368   : > { %v6098_v59 = vpop.permute.xlu0 %6097  ;;  %v6093_v60 = vpop.permute.xlu1 %6092 }
 0x369   : > { %v6100_v61 = vunpack.i.h.bf16 %v6098_v59  ;;  %v6099_v63 = vunpack.i.l.bf16 %v6098_v59  ;;  %v6095_v1 = vunpack.i.h.bf16 %v6093_v60  ;;  %v6094_v12 = vunpack.i.l.bf16 %v6093_v60 }
 0x36b   : > { %v4840_v14 = vpack.c.bf16 %v6100_v61, %v6099_v63  ;;  %v4823_v5 = vpack.c.bf16 %v6095_v1, %v6094_v12  ;;  %v6270_v12 = vld [vmem:[%s7779_s6 + $0x28] sm:$0xff]  }
 0x36d   : > { %5545 = vmatpush3.bf16.msk.msra.mxu1 %vm6743_vm3, %v4823_v5  ;;  %5559 = vmatpush3.bf16.msk.msra.mxu0 %vm6756_vm5, %v4840_v14  ;;  %v6271_v14 = vld [vmem:[%s7779_s6 + $0x30] sm:$0xff]   ;;  %v6272_v5 = vld [vmem:[%s7779_s6 + $0x38] sm:$0xff]  }
 0x36e   : > { %5546 = vmatprep.subr.bf16.mxu1 %v6528_v0  ;;  %5560 = vmatprep.subr.bf16.mxu0 %v6528_v0 }
 0x370   : > { %v6108_v6 = vpop.permute.xlu0 %6107  ;;  %v6103_v7 = vpop.permute.xlu1 %6102 }
 0x371   : > { %v6110_v8 = vunpack.i.h.bf16 %v6108_v6  ;;  %v6109_v9 = vunpack.i.l.bf16 %v6108_v6  ;;  %v6105_v16 = vunpack.i.h.bf16 %v6103_v7  ;;  %v6104_v13 = vunpack.i.l.bf16 %v6103_v7  ;;  %v6273_v6 = vld [vmem:[%s7779_s6] sm:$0xff]  }
 0x373   : > { %v4843_v18 = vpack.c.bf16 %v6110_v8, %v6109_v9  ;;  %v4826_v19 = vpack.c.bf16 %v6105_v16, %v6104_v13  ;;  %v6536_v13 = vmov 4  }
 0x375   : > { %5547 = vmatpush3.bf16.msk.msra.mxu1 %vm6743_vm3, %v4826_v19  ;;  %5561 = vmatpush3.bf16.msk.msra.mxu0 %vm6756_vm5, %v4843_v18  ;;  %v7138_v18 = vld [vmem:[%s7784_s11 + $0x20] sm:$0xff] }
 0x376   : > { %5548 = vmatprep.subr.bf16.mxu1 %v6528_v0  ;;  %5562 = vmatprep.subr.bf16.mxu0 %v6528_v0 }
 0x378   : > { %v6118_v20 = vpop.permute.xlu0 %6117  ;;  %v6113_v22 = vpop.permute.xlu1 %6112 }
 0x379   : > { %v6120_v15 = vunpack.i.h.bf16 %v6118_v20  ;;  %v6119_v23 = vunpack.i.l.bf16 %v6118_v20  ;;  %v6115_v51 = vunpack.i.h.bf16 %v6113_v22  ;;  %v6114_v24 = vunpack.i.l.bf16 %v6113_v22 }
 0x37b   : > { %v4846_v25 = vpack.c.bf16 %v6120_v15, %v6119_v23  ;;  %v4829_v26 = vpack.c.bf16 %v6115_v51, %v6114_v24 }
 0x37d   : > { %5549 = vmatpush3.bf16.msk.msra.mxu1 %vm6743_vm3, %v4829_v26  ;;  %5563 = vmatpush3.bf16.msk.msra.mxu0 %vm6756_vm5, %v4846_v25 }
 0x380   : > { %5551 = vmatmul.mubr.msk.bf16.vlgmr.msra.gmra.mrb[60].mxu1 %vm1424_vm11, %v6267_v28  ;;  %5565 = vmatmul.mubr.msk.bf16.vlgmr.msra.gmra.mrb[44].mxu0 %vm1424_vm11, %v6268_v29 }
 0x381   : > { %5572 = vmatprep.mubr.msk.bf16.mxu1 %vm1710_vm12, %v6269_v42 }
 0x389   : > { %v453_v43 = vpop.permute.xlu1 %452  ;;  %v458_v44 = vpop.permute.xlu0 %457 }
 0x38a   : > { %v7087_v47 = vadd.f32 %v6799_v39, %v453_v43  ;;  %v7090_v48 = vadd.f32 %v6803_v41, %v458_v44  ;;  %v6274_v43 = vld [vmem:[%s7779_s6 + $0x8] sm:$0xff]   ;;  %v6275_v44 = vld [vmem:[%s7779_s6 + $0x10] sm:$0xff]  }
 0x38c   : > { %v536_v50 = vmax.f32 %v7087_v47, 0.0  ;;  %v537_v46 = vmax.f32 %v7090_v48, 0.0 }
 0x38d   : > { %v463_v45 = vpop.permute.xlu1 %462  ;;  %v1627_v49 = vpop.permute.xlu0 %1626 }
 0x38e   : > { %v7094_v52 = vadd.f32 %v6797_v37, %v463_v45  ;;  %v1644_v39 = vadd.f32 %v1627_v49, %v536_v50  ;;  %v6276_v49 = vld [vmem:[%s7779_s6 + $0x18] sm:$0xff]  }
 0x390   : > { %v538_v62 = vmax.f32 %v7094_v52, 0.0 }
 0x391   : > { %v468_v58 = vpop.permute.xlu1 %467  ;;  %v1637_v56 = vpop.permute.xlu0 %1636 }
 0x392   : > { %v7098_v53 = vadd.f32 %v6801_v40, %v468_v58  ;;  %v1646_v61 = vadd.f32 %v1637_v56, %v538_v62  ;;  %v6277_v58 = vld [vmem:[%s7779_s6 + $0x40] sm:$0xff]  }
 0x393   : > { %v6281_v56 = vld [vmem:[%s7780_s7] sm:$0xff]  }
 0x394   : > { %v539_v57 = vmax.f32 %v7098_v53, 0.0 }
 0x395   : > { %v1632_v55 = vpop.permute.xlu1 %1631 }
 0x396   : > { %v1645_v41 = vadd.f32 %v1632_v55, %v537_v46  ;;  %v6278_v55 = vld [vmem:[%s7779_s6 + $0x48] sm:$0xff]  }
 0x398   : > { %v6123_v59 = vpack.i.bf16 %v1645_v41, %v1644_v39  ;;  %v1688_v37 = vpack.c.bf16 %v1645_v41, %v1644_v39  ;;  %v6279_v39 = vld [vmem:[%s7779_s6 + $0x50] sm:$0xff]   ;;  %v6280_v41 = vld [vmem:[%s7779_s6 + $0x58] sm:$0xff]  }
 0x399   : > { %v1642_v60 = vpop.permute.xlu1 %1641 }
 0x39a   : > { %v1647_v40 = vadd.f32 %v1642_v60, %v539_v57  ;;  %6124 = vrot.lane.b32.xlu0 %v6123_v59, %s7802_s26  ;;  %5568 = vmatprep.subr.bf16.mxu1 %v1688_v37 }
 0x39b   : > { %5569 = vmatpush3.bf16.msra.mxu1 %v1688_v37 }
 0x39c   : > { %v6128_v63 = vpack.i.bf16 %v1647_v40, %v1646_v61  ;;  %v1689_v1 = vpack.c.bf16 %v1647_v40, %v1646_v61 }
 0x39e   : > { %6134 = vrot.lane.b32.xlu0 %v6123_v59, %s7803_s29  ;;  %6129 = vrot.lane.b32.xlu1 %v6128_v63, %s7802_s26 }
 0x39f   : > { %5570 = vmatprep.subr.bf16.mxu1 %v1689_v1 }
 0x3a0   : > { %5571 = vmatpush3.bf16.msra.mxu1 %v1689_v1 }
 0x3a2   : > { %6139 = vrot.lane.b32.xlu1 %v6128_v63, %s7803_s29  ;;  %1605 = vperm.xlu0 %6143, %v7010_v30  }
 0x3a3   : > { %5573 = vmatmul.mubr.msk.bf16.vlgmr.msra.gmra.mrb[64].mxu1 %vm1710_vm12, %v6270_v12 }
 0x3a4   : > { %5576 = vmatprep.mubr.msk.bf16.mxu1 %vm1710_vm12, %v6271_v14 }
 0x3a6   : > { %1609 = vperm.xlu1 %6144, %v7004_v54   ;;  %6146 = vset.pattern.permute.xlu0 %v6536_v13 }
 0x3a7   : > { %2009 = vperm.xlu0 %6146, %v7004_v54  }
 0x3aa   : > { %6145 = vset.pattern.permute.xlu1 %v6536_v13 }
 0x3ab   : > { %5577 = vmatmul.mubr.msk.bf16.gmra.mrb[68].mxu1 %vm1710_vm12, %v6272_v5  ;;  %2005 = vperm.xlu1 %6145, %v7010_v30  }
 0x3ac   : > { %5584 = vmatprep.mubr.msk.bf16.mxu1 %vm1710_vm12, %v6273_v6  ;;  %2021 = vperm.xlu0 %6146, %v7138_v18  }
 0x3af   : > { %2013 = vperm.xlu1 %6145, %v7023_v32  }
 0x3b0   : > { %2029 = vperm.xlu0 %6146, %v6869_v10  }
 0x3b3   : > { %2017 = vperm.xlu1 %6145, %v7033_v34  }
 0x3b7   : > { %2025 = vperm.xlu1 %6145, %v6857_v3  }
 0x3bb   : > { %2033 = vperm.xlu1 %6145, %v6864_v4  }
 0x3de   : > { %v1462_v7 = vpop.f32.mrb[56].mxu1 }
 0x3df   : > { %v5538_v8 = vpop.f32.mrb[57].mxu1 }
 0x3e0   : > { %v1465_v9 = vpop.f32.mrb[58].mxu1 }
 0x3e1   : > { %v5539_v16 = vpop.f32.mrb[59].mxu1 }
 0x40c   : > { %v6125_v19 = vpop.permute.xlu0 %6124 }
 0x40d   : > { %v6127_v20 = vunpack.i.h.bf16 %v6125_v19  ;;  %v6126_v22 = vunpack.i.l.bf16 %v6125_v19 }
 0x40f   : > { %v4878_v15 = vpack.c.bf16 %v6127_v20, %v6126_v22 }
 0x410   : > { %v6135_v23 = vpop.permute.xlu0 %6134  ;;  %v6130_v51 = vpop.permute.xlu1 %6129 }
 0x411   : > { %v6137_v24 = vunpack.i.h.bf16 %v6135_v23  ;;  %v6136_v25 = vunpack.i.l.bf16 %v6135_v23  ;;  %v6132_v26 = vunpack.i.h.bf16 %v6130_v51  ;;  %v6131_v28 = vunpack.i.l.bf16 %v6130_v51  ;;  %5580 = vmatprep.subr.msk.bf16.mxu1 %vm6743_vm3, %v4878_v15 }
 0x412   : > { %5581 = vmatpush3.bf16.msk.msra.mxu1 %vm6743_vm3, %v4878_v15 }
 0x413   : > { %v4881_v10 = vpack.c.bf16 %v6132_v26, %v6131_v28  ;;  %v4892_v29 = vpack.c.bf16 %v6137_v24, %v6136_v25  ;;  %v6284_v25 = vld [vmem:[%s7780_s7 + $0x18] sm:$0xff]   ;;  %v6285_v26 = vld [vmem:[%s7781_s8] sm:$0xff]   ;;  %v6537_v28 = vmov 8  }
 0x414   : > { %v6140_v3 = vpop.permute.xlu1 %6139  ;;  %5618 = vmatprep.mubr.msk.bf16.mxu0 %vm1710_vm12, %v6285_v26  ;;  %6148 = vset.pattern.permute.xlu1 %v6537_v28 }
 0x415   : > { %v6142_v4 = vunpack.i.h.bf16 %v6140_v3  ;;  %v6141_v42 = vunpack.i.l.bf16 %v6140_v3  ;;  %5582 = vmatprep.subr.msk.bf16.mxu1 %vm6743_vm3, %v4881_v10  ;;  %6147 = vset.pattern.permute.xlu0 %v6537_v28 }
 0x416   : > { %5583 = vmatpush3.bf16.msk.msra.mxu1 %vm6743_vm3, %v4881_v10  ;;  %2205 = vperm.xlu1 %6148, %v7004_v54  }
 0x417   : > { %5592 = vmatprep.subr.msk.bf16.mxu1 %vm6756_vm5, %v4892_v29  ;;  %v4895_v45 = vpack.c.bf16 %v6142_v4, %v6141_v42  ;;  %2201 = vperm.xlu0 %6147, %v7010_v30  }
 0x419   : > { %5585 = vmatmul.mubr.msk.bf16.vlgmr.msra.gmra.mrb[64].mxu1 %vm1710_vm12, %v6274_v43 }
 0x41a   : > { %5593 = vmatpush3.bf16.msk.msra.mxu1 %vm6756_vm5, %v4892_v29  ;;  %5588 = vmatprep.mubr.msk.bf16.mxu1 %vm1710_vm12, %v6275_v44 }
 0x41b   : > { %5594 = vmatprep.subr.msk.bf16.mxu1 %vm6756_vm5, %v4895_v45  ;;  %2209 = vperm.xlu1 %6148, %v7023_v32  }
 0x41c   : > { %2213 = vperm.xlu0 %6147, %v7033_v34  }
 0x41e   : > { %5595 = vmatpush3.bf16.msk.msra.mxu1 %vm6756_vm5, %v4895_v45 }
 0x41f   : > { %6149 = vset.pattern.permute.xlu1 %v6532_v11 }
 0x420   : > { %6150 = vset.pattern.permute.xlu0 %v6532_v11  ;;  %2342 = vperm.xlu1 %6149, %v7014_v31  }
 0x421   : > { %5589 = vmatmul.mubr.msk.bf16.gmra.mrb[68].mxu1 %vm1710_vm12, %v6276_v49  ;;  %v1606_v59 = vpop.permute.xlu0 %1605  ;;  %2346 = vperm.xlu0 %6150, %v7037_v35  }
 0x422   : > { %5596 = vmatprep.mubr.msk.bf16.mxu1 %vm1710_vm12, %v6277_v58 }
 0x424   : > { %2350 = vperm.xlu1 %6149, %v7027_v33  }
 0x425   : > { %v1610_v16 = vpop.permute.xlu1 %1609 }
 0x426   : > { %v2010_v29 = vpop.permute.xlu0 %2009 }
 0x428   : > { %2354 = vperm.xlu1 %6149, %v7041_v36  }
 0x429   : > { %5597 = vmatmul.mubr.msk.bf16.vlgmr.msra.gmra.mrb[64].mxu1 %vm1710_vm12, %v6278_v55 }
 0x42a   : > { %5600 = vmatprep.mubr.msk.bf16.mxu1 %vm1710_vm12, %v6279_v39  ;;  %v2006_v10 = vpop.permute.xlu1 %2005 }
 0x42b   : > { %v2022_v39 = vpop.permute.xlu0 %2021 }
 0x42e   : > { %v2014_v3 = vpop.permute.xlu1 %2013 }
 0x431   : > { %5601 = vmatmul.mubr.msk.bf16.gmra.mrb[68].mxu1 %vm1710_vm12, %v6280_v41 }
 0x432   : > { %5606 = vmatprep.mubr.msk.bf16.mxu1 %vm480_vm1, %v6281_v56  ;;  %v2018_v4 = vpop.permute.xlu1 %2017 }
 0x453   : > { %v1511_v37 = vpop.f32.mrb[60].mxu1  ;;  %v1595_v60 = vpop.f32.mrb[44].mxu0 }
 0x454   : > { %v1512_v61 = vadd.f32 %v1511_v37, %v1462_v7  ;;  %v5552_v40 = vpop.f32.mrb[61].mxu1  ;;  %v5566_v63 = vpop.f32.mrb[45].mxu0  ;;  %v6282_v7 = vld [vmem:[%s7780_s7 + $0x8] sm:$0xff]  }
 0x455   : > { %v1514_v1 = vpop.f32.mrb[62].mxu1  ;;  %v1598_v12 = vpop.f32.mrb[46].mxu0 }
 0x456   : > { %v1515_v14 = vadd.f32 %v1514_v1, %v1465_v9  ;;  %v1602_v5 = vadd.f32 %v1595_v60, %v1512_v61  ;;  %v5553_v6 = vpop.f32.mrb[63].mxu1  ;;  %v5567_v8 = vpop.f32.mrb[47].mxu0  ;;  %v6283_v9 = vld [vmem:[%s7780_s7 + $0x10] sm:$0xff]  }
 0x457   : > { %v2026_v37 = vpop.permute.xlu1 %2025  ;;  %v2030_v40 = vpop.permute.xlu0 %2029 }
 0x458   : > { %v1612_v13 = vadd.f32 %v1606_v59, %v1602_v5  ;;  %v1603_v19 = vadd.f32 %v1598_v12, %v1515_v14 }
 0x45a   : > { %v1616_v20 = vmul.f32 0.4, %v1612_v13  ;;  %v1613_v22 = vadd.f32 %v1610_v16, %v1603_v19  ;;  %vm1614_vm13 = vcmp.ge.f32.partialorder %v1612_v13, 0.0 }
 0x45b   : > { %v2034_v5 = vpop.permute.xlu1 %2033 }
 0x45c   : > { %vm1615_vm14 = vcmp.ge.f32.partialorder %v1613_v22, 0.0  ;;  %v1617_v15 = vmul.f32 0.4, %v1613_v22  ;;  %v1618_v23 = vsel %vm1614_vm13, %v1612_v13, %v1616_v20 }
 0x45e   : > { %v1619_v51 = vsel %vm1615_vm14, %v1613_v22, %v1617_v15 }
 0x45f   : > { %v7193_v24 = vpack.c.bf16 %v1619_v51, %v1618_v23 }
 0x461   : > { %5604 = vmatprep.subr.bf16.mxu1 %v7193_v24 }
 0x462   : > { %5605 = vmatpush3.bf16.msra.mxu1 %v7193_v24 }
 0x465   : > { %5607 = vmatmul.mubr.msk.bf16.vlgmr.msra.gmra.mrb[64].mxu1 %vm480_vm1, %v6282_v7 }
 0x466   : > { %5610 = vmatprep.mubr.msk.bf16.mxu1 %vm480_vm1, %v6283_v9 }
 0x46d   : > { %5611 = vmatmul.mubr.msk.bf16.gmra.mrb[68].mxu1 %vm480_vm1, %v6284_v25 }
 0x538   : > { %v5608_v42 = vpop.f32.mrb[64].mxu1 }
 0x539   : > { %v5822_v43 = vadd.f32 %v5608_v42, %v2014_v3  ;;  %v2119_v44 = vpop.f32.mrb[65].mxu1 }
 0x53a   : > { %v5823_v45 = vadd.f32 %v2119_v44, %v2006_v10  ;;  %v5609_v49 = vpop.f32.mrb[66].mxu1 }
 0x53b   : > { %v4911_v58 = vmul.f32 -1.442695, %v5822_v43  ;;  %v5824_v55 = vadd.f32 %v5609_v49, %v2018_v4  ;;  %v2122_v11 = vpop.f32.mrb[67].mxu1 }
 0x53c   : > { %v4909_v41 = vmul.f32 -1.442695, %v5823_v45  ;;  %v5825_v56 = vadd.f32 %v2122_v11, %v2010_v29  ;;  %v6286_v11 = vld [vmem:[%s7781_s8 + $0x8] sm:$0xff]  }
 0x53d   : > { %6351 = vpow2.f32 %v4911_v58  ;;  %v4912_v59 = vmul.f32 -1.442695, %v5824_v55 }
 0x53e   : > { %6353 = vpow2.f32 %v4909_v41  ;;  %v4910_v60 = vmul.f32 -1.442695, %v5825_v56  ;;  %v6288_v41 = vld [vmem:[%s7781_s8 + $0x18] sm:$0xff]   ;;  %v6289_v56 = vld [vmem:[%s7779_s6 + $0x80] sm:$0xff]  }
 0x53f   : > { %6355 = vpow2.f32 %v4912_v59  ;;  %v2206_v59 = vpop.permute.xlu1 %2205 }
 0x540   : > { %6357 = vpow2.f32 %v4910_v60  ;;  %v5612_v61 = vpop.f32.mrb[68].mxu1  ;;  %v2202_v60 = vpop.permute.xlu0 %2201 }
 0x541   : > { %v2135_v63 = vpop.f32.mrb[69].mxu1  ;;  %v5826_v1 = vadd.f32 %v5612_v61, %v2030_v40 }
 0x542   : > { %v5613_v12 = vpop.f32.mrb[70].mxu1  ;;  %v5827_v14 = vadd.f32 %v2135_v63, %v2022_v39  ;;  %v6287_v39 = vld [vmem:[%s7781_s8 + $0x10] sm:$0xff]  }
 0x543   : > { %v2138_v6 = vpop.f32.mrb[71].mxu1  ;;  %v5828_v8 = vadd.f32 %v5613_v12, %v2034_v5  ;;  %6359 = vtanh.f32 %v5826_v1 }
 0x544   : > { %v5829_v16 = vadd.f32 %v2138_v6, %v2026_v37  ;;  %6361 = vtanh.f32 %v5827_v14  ;;  %v2210_v37 = vpop.permute.xlu1 %2209  ;;  %v2214_v12 = vpop.permute.xlu0 %2213 }
 0x545   : > { %6363 = vtanh.f32 %v5828_v8 }
 0x546   : > { %6365 = vtanh.f32 %v5829_v16 }
 0x547   : > { %v6352_v13 = vpop.eup %6351 }
 0x548   : > { %v6354_v19 = vpop.eup %6353  ;;  %v2172_v20 = vadd.f32 1.0, %v6352_v13  ;;  %v2343_v61 = vpop.permute.xlu1 %2342 }
 0x549   : > { %v6356_v22 = vpop.eup %6355  ;;  %v2170_v15 = vadd.f32 1.0, %v6354_v19  ;;  %v2347_v52 = vpop.permute.xlu0 %2346 }
 0x54a   : > { %v6358_v23 = vpop.eup %6357  ;;  %6367 = vrcp.f32 %v2172_v20  ;;  %v2173_v51 = vadd.f32 1.0, %v6356_v22 }
 0x54b   : > { %6369 = vrcp.f32 %v2170_v15  ;;  %v2171_v7 = vadd.f32 1.0, %v6358_v23 }
 0x54c   : > { %6371 = vrcp.f32 %v2173_v51  ;;  %v2351_v6 = vpop.permute.xlu1 %2350 }
 0x54d   : > { %6373 = vrcp.f32 %v2171_v7  ;;  %v6360_v9 = vpop.eup %6359 }
 0x54e   : > { %v6362_v25 = vpop.eup %6361 }
 0x54f   : > { %v6364_v26 = vpop.eup %6363 }
 0x550   : > { %v6366_v10 = vpop.eup %6365 }
 0x554   : > { %v6368_v3 = vpop.eup %6367 }
 0x555   : > { %v6370_v29 = vpop.eup %6369  ;;  %v2188_v4 = vmul.f32 %v6368_v3, %v6360_v9  ;;  %v6291_v3 = vld [vmem:[%s7779_s6 + $0x90] sm:$0xff]  }
 0x556   : > { %v6372_v42 = vpop.eup %6371  ;;  %v2186_v43 = vmul.f32 %v6370_v29, %v6362_v25  ;;  %v6292_v29 = vld [vmem:[%s7779_s6 + $0x98] sm:$0xff]  }
 0x557   : > { %v6374_v44 = vpop.eup %6373  ;;  %v2189_v45 = vmul.f32 %v6372_v42, %v6364_v26  ;;  %v6540_v42 = vmov 5  }
 0x558   : > { %v2187_v49 = vmul.f32 %v6374_v44, %v6366_v10  ;;  %6172 = vset.pattern.permute.xlu1 %v6540_v42  ;;  %6171 = vset.pattern.permute.xlu0 %v6540_v42  ;;  %v7295_v44 = vld [vmem:[%s7784_s11 + $0x30] sm:$0xff] }
 0x559   : > { %v2199_v58 = vpack.c.bf16 %v2189_v45, %v2188_v4  ;;  %v6293_v4 = vld [vmem:[%s7779_s6 + $0x60] sm:$0xff]   ;;  %v7301_v45 = vld [vmem:[%s7784_s11 + $0x38] sm:$0xff] }
 0x55a   : > { %v2198_v55 = vpack.c.bf16 %v2187_v49, %v2186_v43  ;;  %v7289_v43 = vld [vmem:[%s7784_s11 + $0x28] sm:$0xff] }
 0x55c   : > { %5614 = vmatprep.subr.bf16.mxu0 %v2198_v55 }
 0x55d   : > { %5615 = vmatpush3.bf16.msra.mxu0 %v2198_v55 }
 0x55e   : > { %5616 = vmatprep.subr.bf16.mxu0 %v2199_v58 }
 0x561   : > { %5617 = vmatpush3.bf16.msra.mxu0 %v2199_v58 }
 0x564   : > { %5619 = vmatmul.mubr.msk.bf16.vlgmr.msra.gmra.mrb[48].mxu0 %vm1710_vm12, %v6286_v11 }
 0x565   : > { %5622 = vmatprep.mubr.msk.bf16.mxu0 %vm1710_vm12, %v6287_v39 }
 0x56c   : > { %5623 = vmatmul.mubr.msk.bf16.gmra.mrb[52].mxu0 %vm1710_vm12, %v6288_v41 }
 0x56d   : > { %5630 = vmatprep.mubr.msk.bf16.mxu0 %vm1710_vm12, %v6289_v56  ;;  %v6336_v56 = vld [vmem:[%s7779_s6 + $0x138] sm:$0xff]  }
 0x637   : > { %v5620_v40 = vpop.f32.mrb[48].mxu0 }
 0x638   : > { %v2307_v63 = vadd.f32 %v5620_v40, %v2210_v37  ;;  %v2298_v1 = vpop.f32.mrb[49].mxu0 }
 0x639   : > { %v2299_v14 = vadd.f32 %v2298_v1, %v2202_v60  ;;  %v5621_v5 = vpop.f32.mrb[50].mxu0  ;;  %v6340_v1 = vld [vmem:[%s7779_s6 + $0x178] sm:$0xff]  }
 0x63a   : > { %v2331_v8 = vadd.f32 %v2307_v63, %v538_v62  ;;  %v2310_v16 = vadd.f32 %v5621_v5, %v2214_v12  ;;  %v2301_v13 = vpop.f32.mrb[51].mxu0  ;;  %v2355_v62 = vpop.permute.xlu1 %2354 }
 0x63b   : > { %v2329_v19 = vadd.f32 %v2299_v14, %v536_v50  ;;  %v2302_v20 = vadd.f32 %v2301_v13, %v2206_v59  ;;  %v6297_v13 = vld [vmem:[%s7779_s6 + $0xa0] sm:$0xff]  }
 0x63c   : > { %v2332_v22 = vadd.f32 %v2310_v16, %v539_v57  ;;  %v7247_v15 = vmul.f32 0.70710677, %v2331_v8  ;;  %v6296_v16 = vld [vmem:[%s7779_s6 + $0x78] sm:$0xff]  }
 0x63d   : > { %v7249_v23 = vmul.f32 0.70710677, %v2329_v19  ;;  %v2330_v51 = vadd.f32 %v2302_v20, %v537_v46  ;;  %v6290_v46 = vld [vmem:[%s7779_s6 + $0x88] sm:$0xff]   ;;  %v6299_v20 = vld [vmem:[%s7779_s6 + $0xb0] sm:$0xff]  }
 0x63e   : > { %v7253_v7 = vmul.f32 0.70710677, %v2332_v22  ;;  %v2359_v47 = vadd.f32 %v2351_v6, %v7247_v15  ;;  %v6294_v6 = vld [vmem:[%s7779_s6 + $0x68] sm:$0xff]   ;;  %v6300_v22 = vld [vmem:[%s7779_s6 + $0xb8] sm:$0xff]  }
 0x63f   : > { %v7255_v9 = vmul.f32 0.70710677, %v2330_v51  ;;  %v2357_v53 = vadd.f32 %v2343_v61, %v7249_v23  ;;  %v6298_v19 = vld [vmem:[%s7779_s6 + $0xa8] sm:$0xff]   ;;  %v6301_v51 = vld [vmem:[%s7780_s7 + $0x20] sm:$0xff]  }
 0x640   : > { %v2360_v50 = vadd.f32 %v2355_v62, %v7253_v7  ;;  %v6303_v62 = vld [vmem:[%s7780_s7 + $0x30] sm:$0xff]  }
 0x641   : > { %v2358_v57 = vadd.f32 %v2347_v52, %v7255_v9  ;;  %v6302_v52 = vld [vmem:[%s7780_s7 + $0x28] sm:$0xff]  }
 0x642   : > { %v6156_v25 = vpack.i.bf16 %v2360_v50, %v2359_v47  ;;  %v2404_v48 = vpack.c.bf16 %v2360_v50, %v2359_v47  ;;  %v6304_v47 = vld [vmem:[%s7780_s7 + $0x38] sm:$0xff]   ;;  %v6305_v50 = vld [vmem:[%s7781_s8 + $0x20] sm:$0xff]  }
 0x643   : > { %v6151_v26 = vpack.i.bf16 %v2358_v57, %v2357_v53  ;;  %v2403_v10 = vpack.c.bf16 %v2358_v57, %v2357_v53  ;;  %v6541_v53 = vmov 9  }
 0x644   : > { %6157 = vrot.lane.b32.xlu1 %v6156_v25, %s7790_s0 }
 0x645   : > { %6152 = vrot.lane.b32.xlu0 %v6151_v26, %s7790_s0  ;;  %5626 = vmatprep.subr.bf16.mxu0 %v2403_v10  ;;  %s419_s0 = sand.u32 1, %s6518_s22  }
 0x646   : > { %5627 = vmatpush3.bf16.msra.mxu0 %v2403_v10  ;;  %s4616_s18 = scalar_lea.sflag [#allocation3], %s419_s0 }
 0x647   : > { %5628 = vmatprep.subr.bf16.mxu0 %v2404_v48 }
 0x648   : > { %6167 = vrot.lane.b32.xlu1 %v6156_v25, %s6539_s30 }
 0x649   : > { %6162 = vrot.lane.b32.xlu0 %v6151_v26, %s6539_s30 }
 0x64a   : > { %5629 = vmatpush3.bf16.msra.mxu0 %v2404_v48 }
 0x64c   : > { %2724 = vperm.xlu1 %6172, %v7004_v54  }
 0x64d   : > { %5631 = vmatmul.mubr.msk.bf16.vlgmr.msra.gmra.mrb[56].mxu0 %vm1710_vm12, %v6290_v46  ;;  %2720 = vperm.xlu0 %6171, %v7010_v30  }
 0x64e   : > { %5634 = vmatprep.mubr.msk.bf16.mxu0 %vm1710_vm12, %v6291_v3 }
 0x650   : > { %2728 = vperm.xlu1 %6172, %v7023_v32  }
 0x651   : > { %2732 = vperm.xlu0 %6171, %v7033_v34  }
 0x654   : > { %2736 = vperm.xlu1 %6172, %v7138_v18  }
 0x655   : > { %5635 = vmatmul.mubr.msk.bf16.gmra.mrb[60].mxu0 %vm1710_vm12, %v6292_v29  ;;  %2740 = vperm.xlu0 %6171, %v7289_v43  }
 0x656   : > { %5642 = vmatprep.mubr.msk.bf16.mxu0 %vm1710_vm12, %v6293_v4 }
 0x658   : > { %2744 = vperm.xlu1 %6172, %v7295_v44  }
 0x659   : > { %2748 = vperm.xlu0 %6171, %v7301_v45  }
 0x65c   : > { %6173 = vset.pattern.permute.xlu1 %v6541_v53 }
 0x65d   : > { %6174 = vset.pattern.permute.xlu0 %v6541_v53  ;;  %2917 = vperm.xlu1 %6173, %v7010_v30  }
 0x65e   : > { %2921 = vperm.xlu0 %6174, %v7004_v54  }
 0x661   : > { %2925 = vperm.xlu1 %6173, %v7023_v32  }
 0x662   : > { %6175 = vset.pattern.permute.xlu0 %v6533_v2 }
 0x663   : > { %3058 = vperm.xlu0 %6175, %v7014_v31  }
 0x665   : > { %2929 = vperm.xlu1 %6173, %v7033_v34  }
 0x667   : > { %3070 = vperm.xlu0 %6175, %v7041_v36  }
 0x669   : > { %6176 = vset.pattern.permute.xlu1 %v6533_v2 }
 0x66a   : > { %3062 = vperm.xlu1 %6176, %v7037_v35  }
 0x66e   : > { %3066 = vperm.xlu1 %6176, %v7027_v33  }
 0x6b6   : > { %v6158_v49 = vpop.permute.xlu1 %6157 }
 0x6b7   : > { %v6153_v58 = vpop.permute.xlu0 %6152  ;;  %v6160_v55 = vunpack.i.h.bf16 %v6158_v49  ;;  %v6159_v11 = vunpack.i.l.bf16 %v6158_v49 }
 0x6b8   : > { %v6155_v39 = vunpack.i.h.bf16 %v6153_v58  ;;  %v6154_v41 = vunpack.i.l.bf16 %v6153_v58 }
 0x6b9   : > { %v4961_v60 = vpack.c.bf16 %v6160_v55, %v6159_v11 }
 0x6ba   : > { %v4958_v59 = vpack.c.bf16 %v6155_v39, %v6154_v41  ;;  %v6168_v63 = vpop.permute.xlu1 %6167 }
 0x6bb   : > { %v6163_v37 = vpop.permute.xlu0 %6162  ;;  %v6170_v12 = vunpack.i.h.bf16 %v6168_v63  ;;  %v6169_v14 = vunpack.i.l.bf16 %v6168_v63 }
 0x6bc   : > { %v6165_v61 = vunpack.i.h.bf16 %v6163_v37  ;;  %v6164_v40 = vunpack.i.l.bf16 %v6163_v37  ;;  %5638 = vmatprep.subr.msk.bf16.mxu0 %vm7305_vm2, %v4958_v59 }
 0x6bd   : > { %5639 = vmatpush3.bf16.msk.msra.mxu0 %vm7305_vm2, %v4958_v59  ;;  %v4975_v8 = vpack.c.bf16 %v6170_v12, %v6169_v14 }
 0x6be   : > { %5640 = vmatprep.subr.msk.bf16.mxu0 %vm7305_vm2, %v4961_v60  ;;  %v4972_v5 = vpack.c.bf16 %v6165_v61, %v6164_v40 }
 0x6c1   : > { %5641 = vmatpush3.bf16.msk.msra.mxu0 %vm7305_vm2, %v4961_v60 }
 0x6c2   : > { %5650 = vmatprep.subr.msk.bf16.mxu0 %vm7316_vm6, %v4972_v5 }
 0x6c4   : > { %5643 = vmatmul.mubr.msk.bf16.vlgmr.msra.gmra.mrb[56].mxu0 %vm1710_vm12, %v6294_v6 }
 0x6c5   : > { %5651 = vmatpush3.bf16.msk.msra.mxu0 %vm7316_vm6, %v4972_v5  ;;  %5646 = vmatprep.mubr.msk.bf16.mxu0 %vm1710_vm12, %v6295_v17 }
 0x6c6   : > { %5652 = vmatprep.subr.msk.bf16.mxu0 %vm7316_vm6, %v4975_v8 }
 0x6c9   : > { %5653 = vmatpush3.bf16.msk.msra.mxu0 %vm7316_vm6, %v4975_v8 }
 0x6ca   : > { %5662 = vmatprep.subr.bf16.mxu0 %v7193_v24 }
 0x6cb   : > { %v2725_v57 = vpop.permute.xlu1 %2724 }
 0x6cc   : > { %5647 = vmatmul.mubr.msk.bf16.gmra.mrb[60].mxu0 %vm1710_vm12, %v6296_v16  ;;  %v2721_v30 = vpop.permute.xlu0 %2720 }
 0x6cd   : > { %5654 = vmatprep.mubr.msk.bf16.mxu0 %vm1710_vm12, %v6297_v13 }
 0x6cf   : > { %v2729_v25 = vpop.permute.xlu1 %2728 }
 0x6d0   : > { %v2733_v54 = vpop.permute.xlu0 %2732 }
 0x6d3   : > { %v2737_v29 = vpop.permute.xlu1 %2736 }
 0x6d4   : > { %5655 = vmatmul.mubr.msk.bf16.vlgmr.msra.gmra.mrb[56].mxu0 %vm1710_vm12, %v6298_v19  ;;  %v2741_v35 = vpop.permute.xlu0 %2740 }
 0x6d5   : > { %5663 = vmatpush3.bf16.msra.mxu0 %v7193_v24  ;;  %5658 = vmatprep.mubr.msk.bf16.mxu0 %vm1710_vm12, %v6299_v20 }
 0x6d7   : > { %v2745_v49 = vpop.permute.xlu1 %2744 }
 0x6d8   : > { %v2749_v41 = vpop.permute.xlu0 %2748 }
 0x6dc   : > { %5659 = vmatmul.mubr.msk.bf16.gmra.mrb[60].mxu0 %vm1710_vm12, %v6300_v22 }
 0x6dd   : > { %5664 = vmatprep.mubr.msk.bf16.mxu0 %vm480_vm1, %v6301_v51 }
 0x6e4   : > { %5665 = vmatmul.mubr.msk.bf16.vlgmr.msra.gmra.mrb[56].mxu0 %vm480_vm1, %v6302_v52 }
 0x6e5   : > { %5668 = vmatprep.mubr.msk.bf16.mxu0 %vm480_vm1, %v6303_v62 }
 0x6ec   : > { %5669 = vmatmul.mubr.msk.bf16.gmra.mrb[60].mxu0 %vm480_vm1, %v6304_v47 }
 0x6ed   : > { %5676 = vmatprep.mubr.msk.bf16.mxu0 %vm1710_vm12, %v6305_v50 }
 0x7b7   : > { %v5666_v26 = vpop.f32.mrb[56].mxu0 }
 0x7b8   : > { %v5846_v32 = vadd.f32 %v5666_v26, %v2729_v25  ;;  %v2834_v10 = vpop.f32.mrb[57].mxu0  ;;  %v6307_v26 = vld [vmem:[%s7779_s6 + $0xe0] sm:$0xff]  }
 0x7b9   : > { %v5847_v48 = vadd.f32 %v2834_v10, %v2721_v30  ;;  %v5667_v46 = vpop.f32.mrb[58].mxu0  ;;  %5688 = vmatprep.mubr.msk.bf16.mxu1 %vm1710_vm12, %v6307_v26 }
 0x7ba   : > { %v4999_v31 = vmul.f32 -1.442695, %v5846_v32  ;;  %v5848_v3 = vadd.f32 %v5667_v46, %v2733_v54  ;;  %v2837_v34 = vpop.f32.mrb[59].mxu0  ;;  %v6306_v54 = vld [vmem:[%s7781_s8 + $0x28] sm:$0xff]   ;;  %v2918_v32 = vpop.permute.xlu1 %2917 }
 0x7bb   : > { %v4997_v36 = vmul.f32 -1.442695, %v5847_v48  ;;  %v5849_v4 = vadd.f32 %v2837_v34, %v2725_v57  ;;  %v2922_v48 = vpop.permute.xlu0 %2921 }
 0x7bc   : > { %6375 = vpow2.f32 %v4999_v31  ;;  %v5000_v2 = vmul.f32 -1.442695, %v5848_v3 }
 0x7bd   : > { %6377 = vpow2.f32 %v4997_v36  ;;  %v4998_v33 = vmul.f32 -1.442695, %v5849_v4 }
 0x7be   : > { %6379 = vpow2.f32 %v5000_v2  ;;  %v2926_v10 = vpop.permute.xlu1 %2925 }
 0x7bf   : > { %6381 = vpow2.f32 %v4998_v33  ;;  %v5670_v42 = vpop.f32.mrb[60].mxu0  ;;  %v3059_v34 = vpop.permute.xlu0 %3058 }
 0x7c0   : > { %v2850_v58 = vpop.f32.mrb[61].mxu0  ;;  %v5850_v55 = vadd.f32 %v5670_v42, %v2745_v49 }
 0x7c1   : > { %v5671_v11 = vpop.f32.mrb[62].mxu0  ;;  %v5851_v39 = vadd.f32 %v2850_v58, %v2737_v29 }
 0x7c2   : > { %v2853_v59 = vpop.f32.mrb[63].mxu0  ;;  %v5852_v37 = vadd.f32 %v5671_v11, %v2749_v41  ;;  %6383 = vtanh.f32 %v5850_v55  ;;  %v2930_v46 = vpop.permute.xlu1 %2929 }
 0x7c3   : > { %v5853_v60 = vadd.f32 %v2853_v59, %v2741_v35  ;;  %6385 = vtanh.f32 %v5851_v39 }
 0x7c4   : > { %6387 = vtanh.f32 %v5852_v37  ;;  %v3071_v37 = vpop.permute.xlu0 %3070 }
 0x7c5   : > { %6389 = vtanh.f32 %v5853_v60 }
 0x7c6   : > { %v6376_v61 = vpop.eup %6375  ;;  %v3063_v31 = vpop.permute.xlu1 %3062 }
 0x7c7   : > { %v6378_v40 = vpop.eup %6377  ;;  %v2887_v63 = vadd.f32 1.0, %v6376_v61 }
 0x7c8   : > { %v6380_v12 = vpop.eup %6379  ;;  %v2885_v14 = vadd.f32 1.0, %v6378_v40 }
 0x7c9   : > { %v6382_v5 = vpop.eup %6381  ;;  %6391 = vrcp.f32 %v2887_v63  ;;  %v2888_v6 = vadd.f32 1.0, %v6380_v12 }
 0x7ca   : > { %6393 = vrcp.f32 %v2885_v14  ;;  %v2886_v17 = vadd.f32 1.0, %v6382_v5  ;;  %v3067_v59 = vpop.permute.xlu1 %3066  ;;  %v6308_v5 = vld [vmem:[%s7779_s6 + $0xe8] sm:$0xff]  }
 0x7cb   : > { %6395 = vrcp.f32 %v2888_v6  ;;  %v6309_v6 = vld [vmem:[%s7779_s6 + $0xf0] sm:$0xff]  }
 0x7cc   : > { %6397 = vrcp.f32 %v2886_v17  ;;  %v6384_v8 = vpop.eup %6383  ;;  %v6310_v17 = vld [vmem:[%s7779_s6 + $0xf8] sm:$0xff]  }
 0x7cd   : > { %v6386_v16 = vpop.eup %6385 }
 0x7ce   : > { %v6388_v13 = vpop.eup %6387 }
 0x7cf   : > { %v6390_v19 = vpop.eup %6389 }
 0x7d3   : > { %v6392_v20 = vpop.eup %6391 }
 0x7d4   : > { %v6394_v22 = vpop.eup %6393  ;;  %v2903_v51 = vmul.f32 %v6392_v20, %v6384_v8  ;;  %v6311_v8 = vld [vmem:[%s7779_s6 + $0xc0] sm:$0xff]   ;;  %v7451_v20 = vld [vmem:[%s7784_s11 + $0x10] sm:$0xff] }
 0x7d5   : > { %v6396_v52 = vpop.eup %6395  ;;  %v2901_v62 = vmul.f32 %v6394_v22, %v6386_v16  ;;  %v6542_v16 = vmov 6   ;;  %v7458_v22 = vld [vmem:[%s7784_s11 + $0x18] sm:$0xff] }
 0x7d6   : > { %v6398_v47 = vpop.eup %6397  ;;  %v2904_v50 = vmul.f32 %v6396_v52, %v6388_v13  ;;  %6197 = vset.pattern.permute.xlu1 %v6542_v16  ;;  %6198 = vset.pattern.permute.xlu0 %v6542_v16  ;;  %v7439_v13 = vld [vmem:[%s7784_s11] sm:$0xff] }
 0x7d7   : > { %v2902_v57 = vmul.f32 %v6398_v47, %v6390_v19  ;;  %v7445_v19 = vld [vmem:[%s7784_s11 + $0x8] sm:$0xff] }
 0x7d8   : > { %v2915_v30 = vpack.c.bf16 %v2904_v50, %v2903_v51 }
 0x7d9   : > { %v2914_v25 = vpack.c.bf16 %v2902_v57, %v2901_v62 }
 0x7db   : > { %5672 = vmatprep.subr.bf16.mxu0 %v2914_v25 }
 0x7dc   : > { %5673 = vmatpush3.bf16.msra.mxu0 %v2914_v25 }
 0x7dd   : > { %5674 = vmatprep.subr.bf16.mxu0 %v2915_v30 }
 0x7e0   : > { %5675 = vmatpush3.bf16.msra.mxu0 %v2915_v30 }
 0x7e3   : > { %5677 = vmatmul.mubr.msk.bf16.vlgmr.msra.gmra.mrb[64].mxu0 %vm1710_vm12, %v6306_v54 }
 0x8b6   : > { %v5678_v3 = vpop.f32.mrb[64].mxu0 }
 0x8b7   : > { %v3023_v29 = vadd.f32 %v5678_v3, %v2926_v10  ;;  %v3014_v36 = vpop.f32.mrb[65].mxu0  ;;  %v6313_v3 = vld [vmem:[%s7779_s6 + $0xd0] sm:$0xff]  }
 0x8b8   : > { %v3015_v4 = vadd.f32 %v3014_v36, %v2918_v32  ;;  %v5679_v2 = vpop.f32.mrb[66].mxu0  ;;  %v6316_v36 = vld [vmem:[%s7779_s6 + $0x108] sm:$0xff]  }
 0x8b9   : > { %v3047_v35 = vadd.f32 %v3023_v29, %v7247_v15  ;;  %v3026_v33 = vadd.f32 %v5679_v2, %v2930_v46  ;;  %v3017_v42 = vpop.f32.mrb[67].mxu0  ;;  %v6315_v29 = vld [vmem:[%s7779_s6 + $0x100] sm:$0xff]  }
 0x8ba   : > { %v3045_v49 = vadd.f32 %v3015_v4, %v7249_v23  ;;  %v3018_v58 = vadd.f32 %v3017_v42, %v2922_v48  ;;  %v6317_v4 = vld [vmem:[%s7779_s6 + $0x110] sm:$0xff]   ;;  %v6319_v2 = vld [vmem:[%s7780_s7 + $0x40] sm:$0xff]   ;;  %v6322_v42 = vld [vmem:[%s7780_s7 + $0x58] sm:$0xff]  }
 0x8bb   : > { %v3048_v55 = vadd.f32 %v3026_v33, %v7253_v7  ;;  %v7403_v11 = vmul.f32 0.70710677, %v3047_v35  ;;  %v6320_v35 = vld [vmem:[%s7780_s7 + $0x48] sm:$0xff]   ;;  %v6321_v33 = vld [vmem:[%s7780_s7 + $0x50] sm:$0xff]  }
 0x8bc   : > { %v3046_v39 = vadd.f32 %v3018_v58, %v7255_v9  ;;  %v7406_v41 = vmul.f32 0.70710677, %v3045_v49  ;;  %v6323_v49 = vld [vmem:[%s7781_s8 + $0x30] sm:$0xff]   ;;  %v6324_v58 = vld [vmem:[%s7781_s8 + $0x38] sm:$0xff]  }
 0x8bd   : > { %v7408_v60 = vmul.f32 0.70710677, %v3048_v55  ;;  %v3075_v15 = vadd.f32 %v3067_v59, %v7403_v11  ;;  %5680 = vmatprep.mubr.msk.bf16.mxu0 %vm1710_vm12, %v6323_v49  ;;  %v6325_v55 = vld [vmem:[%s7781_s8 + $0x40] sm:$0xff]  }
 0x8be   : > { %v7410_v61 = vmul.f32 0.70710677, %v3046_v39  ;;  %v3073_v7 = vadd.f32 %v3059_v34, %v7406_v41  ;;  %5681 = vmatmul.mubr.msk.bf16.gmra.mrb[52].mxu0 %vm1710_vm12, %v6324_v58  ;;  %v6543_v39 = vmov 10   ;;  %v6459_v59 = vld [vmem:[%s6998_s20] sm:$0xff] }
 0x8bf   : > { %v3076_v40 = vadd.f32 %v3071_v37, %v7408_v60  ;;  %5734 = vmatprep.mubr.msk.bf16.mxu0 %vm1710_vm12, %v6325_v55  ;;  %v6460_v37 = vld [vmem:[%s6998_s20 + $0x8] sm:$0xff] }
 0x8c0   : > { %v3074_v23 = vadd.f32 %v3063_v31, %v7410_v61  ;;  %v6312_v31 = vld [vmem:[%s7779_s6 + $0xc8] sm:$0xff]  }
 0x8c1   : > { %v6182_v63 = vpack.i.bf16 %v3076_v40, %v3075_v15  ;;  %v3119_v9 = vpack.c.bf16 %v3076_v40, %v3075_v15  ;;  %v6461_v15 = vld [vmem:[%s6998_s20 + $0x10] sm:$0xff]  ;;  %v6462_v40 = vld [vmem:[%s6998_s20 + $0x18] sm:$0xff] }
 0x8c2   : > { %v6177_v12 = vpack.i.bf16 %v3074_v23, %v3073_v7  ;;  %v3118_v14 = vpack.c.bf16 %v3074_v23, %v3073_v7 }
 0x8c3   : > { %6183 = vrot.lane.b32.xlu0 %v6182_v63, %s7802_s26 }
 0x8c4   : > { %6178 = vrot.lane.b32.xlu1 %v6177_v12, %s7802_s26  ;;  %5684 = vmatprep.subr.bf16.mxu1 %v3118_v14 }
 0x8c5   : > { %5685 = vmatpush3.bf16.msra.mxu1 %v3118_v14 }
 0x8c6   : > { %5686 = vmatprep.subr.bf16.mxu1 %v3119_v9 }
 0x8c7   : > { %6193 = vrot.lane.b32.xlu0 %v6182_v63, %s7803_s29 }
 0x8c8   : > { %6188 = vrot.lane.b32.xlu1 %v6177_v12, %s7803_s29  ;;  %s6548_s29 = smov [#allocation2]  }
 0x8c9   : > { %5687 = vmatpush3.bf16.msra.mxu1 %v3119_v9 }
 0x8cb   : > { %3438 = vperm.xlu0 %6198, %v7445_v19  }
 0x8cc   : > { %5689 = vmatmul.mubr.msk.bf16.vlgmr.msra.gmra.mrb[72].mxu1 %vm1710_vm12, %v6308_v5  ;;  %3434 = vperm.xlu1 %6197, %v7439_v13  }
 0x8cd   : > { %5692 = vmatprep.mubr.msk.bf16.mxu1 %vm1710_vm12, %v6309_v6 }
 0x8cf   : > { %3450 = vperm.xlu0 %6198, %v7138_v18  }
 0x8d0   : > { %3442 = vperm.xlu1 %6197, %v7451_v20  }
 0x8d3   : > { %3458 = vperm.xlu0 %6198, %v7295_v44  }
 0x8d4   : > { %5693 = vmatmul.mubr.msk.bf16.gmra.mrb[76].mxu1 %vm1710_vm12, %v6310_v17  ;;  %3446 = vperm.xlu1 %6197, %v7458_v22  }
 0x8d5   : > { %5700 = vmatprep.mubr.msk.bf16.mxu1 %vm1710_vm12, %v6311_v8 }
 0x8d7   : > { %6199 = vset.pattern.permute.xlu0 %v6543_v39 }
 0x8d8   : > { %3454 = vperm.xlu1 %6197, %v7289_v43   ;;  %3631 = vperm.xlu0 %6199, %v7439_v13  }
 0x8dc   : > { %3462 = vperm.xlu1 %6197, %v7301_v45   ;;  %3643 = vperm.xlu0 %6199, %v7458_v22  }
 0x8e0   : > { %6200 = vset.pattern.permute.xlu1 %v6543_v39  ;;  %6202 = vset.pattern.permute.xlu0 %v6535_v38 }
 0x8e1   : > { %3635 = vperm.xlu1 %6200, %v7445_v19   ;;  %3776 = vperm.xlu0 %6202, %v6460_v37  }
 0x8e5   : > { %3639 = vperm.xlu1 %6200, %v7451_v20  }
 0x8e9   : > { %6201 = vset.pattern.permute.xlu1 %v6535_v38 }
 0x8ea   : > { %3772 = vperm.xlu1 %6201, %v6459_v59  }
 0x8ee   : > { %3780 = vperm.xlu1 %6201, %v6461_v15  }
 0x8f2   : > { %3784 = vperm.xlu1 %6201, %v6462_v40  }
 0x935   : > { %v6184_v51 = vpop.permute.xlu0 %6183 }
 0x936   : > { %v6179_v52 = vpop.permute.xlu1 %6178  ;;  %v6186_v62 = vunpack.i.h.bf16 %v6184_v51  ;;  %v6185_v47 = vunpack.i.l.bf16 %v6184_v51 }
 0x937   : > { %v6181_v50 = vunpack.i.h.bf16 %v6179_v52  ;;  %v6180_v57 = vunpack.i.l.bf16 %v6179_v52 }
 0x938   : > { %v5057_v25 = vpack.c.bf16 %v6186_v62, %v6185_v47 }
 0x939   : > { %v5054_v18 = vpack.c.bf16 %v6181_v50, %v6180_v57  ;;  %v6194_v32 = vpop.permute.xlu0 %6193 }
 0x93a   : > { %v6189_v30 = vpop.permute.xlu1 %6188  ;;  %v6196_v10 = vunpack.i.h.bf16 %v6194_v32  ;;  %v6195_v48 = vunpack.i.l.bf16 %v6194_v32 }
 0x93b   : > { %v6191_v54 = vunpack.i.h.bf16 %v6189_v30  ;;  %v6190_v26 = vunpack.i.l.bf16 %v6189_v30  ;;  %5696 = vmatprep.subr.msk.bf16.mxu1 %vm6743_vm3, %v5054_v18 }
 0x93c   : > { %5697 = vmatpush3.bf16.msk.msra.mxu1 %vm6743_vm3, %v5054_v18  ;;  %v5071_v34 = vpack.c.bf16 %v6196_v10, %v6195_v48 }
 0x93d   : > { %5698 = vmatprep.subr.msk.bf16.mxu1 %vm6743_vm3, %v5057_v25  ;;  %v5068_v46 = vpack.c.bf16 %v6191_v54, %v6190_v26 }
 0x940   : > { %5699 = vmatpush3.bf16.msk.msra.mxu1 %vm6743_vm3, %v5057_v25 }
 0x941   : > { %5708 = vmatprep.subr.msk.bf16.mxu1 %vm6756_vm5, %v5068_v46 }
 0x943   : > { %5701 = vmatmul.mubr.msk.bf16.vlgmr.msra.gmra.mrb[72].mxu1 %vm1710_vm12, %v6312_v31 }
 0x944   : > { %5709 = vmatpush3.bf16.msk.msra.mxu1 %vm6756_vm5, %v5068_v46  ;;  %5704 = vmatprep.mubr.msk.bf16.mxu1 %vm1710_vm12, %v6313_v3 }
 0x945   : > { %5710 = vmatprep.subr.msk.bf16.mxu1 %vm6756_vm5, %v5071_v34 }
 0x948   : > { %5711 = vmatpush3.bf16.msk.msra.mxu1 %vm6756_vm5, %v5071_v34 }
 0x949   : > { %5720 = vmatprep.subr.bf16.mxu1 %v7193_v24 }
 0x94a   : > { %v3439_v63 = vpop.permute.xlu0 %3438 }
 0x94b   : > { %5705 = vmatmul.mubr.msk.bf16.gmra.mrb[76].mxu1 %vm1710_vm12, %v6314_v21  ;;  %v3435_v23 = vpop.permute.xlu1 %3434 }
 0x94c   : > { %5712 = vmatprep.mubr.msk.bf16.mxu1 %vm1710_vm12, %v6315_v29 }
 0x94e   : > { %v3451_v51 = vpop.permute.xlu0 %3450 }
 0x94f   : > { %v3443_v7 = vpop.permute.xlu1 %3442 }
 0x952   : > { %v3459_v30 = vpop.permute.xlu0 %3458 }
 0x953   : > { %5713 = vmatmul.mubr.msk.bf16.vlgmr.msra.gmra.mrb[72].mxu1 %vm1710_vm12, %v6316_v36  ;;  %v3447_v12 = vpop.permute.xlu1 %3446 }
 0x954   : > { %5721 = vmatpush3.bf16.msra.mxu1 %v7193_v24  ;;  %5716 = vmatprep.mubr.msk.bf16.mxu1 %vm1710_vm12, %v6317_v4 }
 0x957   : > { %v3455_v50 = vpop.permute.xlu1 %3454 }
 0x95b   : > { %5717 = vmatmul.mubr.msk.bf16.gmra.mrb[76].mxu1 %vm1710_vm12, %v6318_v27  ;;  %v3463_v10 = vpop.permute.xlu1 %3462 }
 0x95c   : > { %5722 = vmatprep.mubr.msk.bf16.mxu1 %vm480_vm1, %v6319_v2 }
 0x963   : > { %5723 = vmatmul.mubr.msk.bf16.vlgmr.msra.gmra.mrb[72].mxu1 %vm480_vm1, %v6320_v35 }
 0x964   : > { %5726 = vmatprep.mubr.msk.bf16.mxu1 %vm480_vm1, %v6321_v33 }
 0x96b   : > { %5727 = vmatmul.mubr.msk.bf16.gmra.mrb[76].mxu1 %vm480_vm1, %v6322_v42 }
 0xa36   : > { %v5724_v14 = vpop.f32.mrb[72].mxu1 }
 0xa37   : > { %v5854_v9 = vadd.f32 %v5724_v14, %v3443_v7  ;;  %v3548_v5 = vpop.f32.mrb[73].mxu1  ;;  %v6326_v14 = vld [vmem:[%s7781_s8 + $0x48] sm:$0xff]  }
 0xa38   : > { %v5855_v6 = vadd.f32 %v3548_v5, %v3435_v23  ;;  %v5725_v17 = vpop.f32.mrb[74].mxu1  ;;  %v6328_v5 = vld [vmem:[%s7781_s8 + $0x58] sm:$0xff]  }
 0xa39   : > { %v5095_v8 = vmul.f32 -1.442695, %v5854_v9  ;;  %v5856_v16 = vadd.f32 %v5725_v17, %v3447_v12  ;;  %v3551_v38 = vpop.f32.mrb[75].mxu1  ;;  %v6327_v9 = vld [vmem:[%s7781_s8 + $0x50] sm:$0xff]   ;;  %v3636_v17 = vpop.permute.xlu1 %3635 }
 0xa3a   : > { %v5093_v52 = vmul.f32 -1.442695, %v5855_v6  ;;  %v5857_v62 = vadd.f32 %v3551_v38, %v3439_v63  ;;  %v6329_v6 = vld [vmem:[%s7779_s6 + $0x140] sm:$0xff]  }
 0xa3b   : > { %6399 = vpow2.f32 %v5095_v8  ;;  %v5096_v47 = vmul.f32 -1.442695, %v5856_v16  ;;  %v3632_v16 = vpop.permute.xlu0 %3631 }
 0xa3c   : > { %6401 = vpow2.f32 %v5093_v52  ;;  %v5094_v57 = vmul.f32 -1.442695, %v5857_v62 }
 0xa3d   : > { %6403 = vpow2.f32 %v5096_v47  ;;  %v3640_v8 = vpop.permute.xlu1 %3639 }
 0xa3e   : > { %6405 = vpow2.f32 %v5094_v57  ;;  %v5728_v18 = vpop.f32.mrb[76].mxu1 }
 0xa3f   : > { %v3564_v25 = vpop.f32.mrb[77].mxu1  ;;  %v5858_v54 = vadd.f32 %v5728_v18, %v3459_v30  ;;  %v3644_v47 = vpop.permute.xlu0 %3643 }
 0xa40   : > { %v5729_v26 = vpop.f32.mrb[78].mxu1  ;;  %v5859_v32 = vadd.f32 %v3564_v25, %v3451_v51 }
 0xa41   : > { %v3567_v48 = vpop.f32.mrb[79].mxu1  ;;  %v5860_v46 = vadd.f32 %v5729_v26, %v3463_v10  ;;  %6407 = vtanh.f32 %v5858_v54  ;;  %v3773_v38 = vpop.permute.xlu1 %3772 }
 0xa42   : > { %v5861_v31 = vadd.f32 %v3567_v48, %v3455_v50  ;;  %6409 = vtanh.f32 %v5859_v32 }
 0xa43   : > { %6411 = vtanh.f32 %v5860_v46 }
 0xa44   : > { %6413 = vtanh.f32 %v5861_v31 }
 0xa45   : > { %v6400_v3 = vpop.eup %6399  ;;  %v3781_v18 = vpop.permute.xlu1 %3780 }
 0xa46   : > { %v6402_v34 = vpop.eup %6401  ;;  %v3601_v21 = vadd.f32 1.0, %v6400_v3 }
 0xa47   : > { %v6404_v29 = vpop.eup %6403  ;;  %v3599_v36 = vadd.f32 1.0, %v6402_v34  ;;  %v3777_v34 = vpop.permute.xlu0 %3776 }
 0xa48   : > { %v6406_v4 = vpop.eup %6405  ;;  %6415 = vrcp.f32 %v3601_v21  ;;  %v3602_v27 = vadd.f32 1.0, %v6404_v29 }
 0xa49   : > { %6417 = vrcp.f32 %v3599_v36  ;;  %v3600_v2 = vadd.f32 1.0, %v6406_v4  ;;  %v3785_v21 = vpop.permute.xlu1 %3784 }
 0xa4a   : > { %6419 = vrcp.f32 %v3602_v27 }
 0xa4b   : > { %6421 = vrcp.f32 %v3600_v2  ;;  %v6408_v35 = vpop.eup %6407 }
 0xa4c   : > { %v6410_v33 = vpop.eup %6409 }
 0xa4d   : > { %v6412_v42 = vpop.eup %6411 }
 0xa4e   : > { %v6414_v49 = vpop.eup %6413 }
 0xa52   : > { %v6416_v58 = vpop.eup %6415 }
 0xa53   : > { %v6418_v55 = vpop.eup %6417  ;;  %v3617_v59 = vmul.f32 %v6416_v58, %v6408_v35  ;;  %v6544_v58 = vmov 7  }
 0xa54   : > { %v6420_v37 = vpop.eup %6419  ;;  %v3615_v15 = vmul.f32 %v6418_v55, %v6410_v33  ;;  %6224 = vset.pattern.permute.xlu1 %v6544_v58  ;;  %6223 = vset.pattern.permute.xlu0 %v6544_v58  ;;  %v7597_v55 = vld [vmem:[%s7784_s11 + $0x20] sm:$0xff] }
 0xa55   : > { %v6422_v40 = vpop.eup %6421  ;;  %v3618_v23 = vmul.f32 %v6420_v37, %v6412_v42 }
 0xa56   : > { %v3616_v7 = vmul.f32 %v6422_v40, %v6414_v49  ;;  %v6333_v49 = vld [vmem:[%s7779_s6 + $0x120] sm:$0xff]  }
 0xa57   : > { %v3629_v63 = vpack.c.bf16 %v3618_v23, %v3617_v59 }
 0xa58   : > { %v3628_v12 = vpack.c.bf16 %v3616_v7, %v3615_v15 }
 0xa5a   : > { %5730 = vmatprep.subr.bf16.mxu0 %v3628_v12 }
 0xa5b   : > { %5731 = vmatpush3.bf16.msra.mxu0 %v3628_v12 }
 0xa5c   : > { %5732 = vmatprep.subr.bf16.mxu0 %v3629_v63 }
 0xa5f   : > { %5733 = vmatpush3.bf16.msra.mxu0 %v3629_v63 }
 0xa62   : > { %5735 = vmatmul.mubr.msk.bf16.vlgmr.msra.gmra.mrb[68].mxu0 %vm1710_vm12, %v6326_v14 }
 0xa63   : > { %5738 = vmatprep.mubr.msk.bf16.mxu0 %vm1710_vm12, %v6327_v9 }
 0xa6a   : > { %5739 = vmatmul.mubr.msk.bf16.gmra.mrb[52].mxu0 %vm1710_vm12, %v6328_v5 }
 0xa6b   : > { %5746 = vmatprep.mubr.msk.bf16.mxu0 %vm1710_vm12, %v6329_v6 }
 0xb35   : > { %v5736_v51 = vpop.f32.mrb[68].mxu0 }
 0xb36   : > { %v3737_v52 = vadd.f32 %v5736_v51, %v3640_v8  ;;  %v3728_v62 = vpop.f32.mrb[69].mxu0  ;;  %v6334_v8 = vld [vmem:[%s7779_s6 + $0x128] sm:$0xff]   ;;  %v6337_v51 = vld [vmem:[%s7779_s6 + $0x160] sm:$0xff]  }
 0xb37   : > { %v3729_v50 = vadd.f32 %v3728_v62, %v3632_v16  ;;  %v5737_v57 = vpop.f32.mrb[70].mxu0  ;;  %v6335_v16 = vld [vmem:[%s7779_s6 + $0x130] sm:$0xff]  }
 0xb38   : > { %v3761_v30 = vadd.f32 %v3737_v52, %v7403_v11  ;;  %v3740_v25 = vadd.f32 %v5737_v57, %v3644_v47  ;;  %v3731_v54 = vpop.f32.mrb[71].mxu0  ;;  %v6338_v52 = vld [vmem:[%s7779_s6 + $0x168] sm:$0xff]   ;;  %v6339_v62 = vld [vmem:[%s7779_s6 + $0x170] sm:$0xff]   ;;  %v6341_v47 = vld [vmem:[%s7780_s7 + $0x60] sm:$0xff]  }
 0xb39   : > { %v3759_v26 = vadd.f32 %v3729_v50, %v7406_v41  ;;  %v3732_v32 = vadd.f32 %v3731_v54, %v3636_v17  ;;  %v6330_v41 = vld [vmem:[%s7779_s6 + $0x148] sm:$0xff]   ;;  %v6344_v57 = vld [vmem:[%s7780_s7 + $0x78] sm:$0xff]  }
 0xb3a   : > { %v3762_v10 = vadd.f32 %v3740_v25, %v7408_v60  ;;  %v3765_v48 = vmul.f32 0.70710677, %v3761_v30  ;;  %v6331_v60 = vld [vmem:[%s7779_s6 + $0x150] sm:$0xff]   ;;  %v6342_v50 = vld [vmem:[%s7780_s7 + $0x68] sm:$0xff]   ;;  %v6545_v30 = vmov 11  }
 0xb3b   : > { %v3763_v46 = vmul.f32 0.70710677, %v3759_v26  ;;  %v3760_v31 = vadd.f32 %v3732_v32, %v7410_v61  ;;  %v6332_v61 = vld [vmem:[%s7779_s6 + $0x158] sm:$0xff]  }
 0xb3c   : > { %v3766_v3 = vmul.f32 0.70710677, %v3762_v10  ;;  %v3789_v36 = vadd.f32 %v3781_v18, %v3765_v48  ;;  %v6345_v18 = vld [vmem:[%s7781_s8 + $0x60] sm:$0xff]  }
 0xb3d   : > { %v3764_v29 = vmul.f32 0.70710677, %v3760_v31  ;;  %v3787_v27 = vadd.f32 %v3773_v38, %v3763_v46 }
 0xb3e   : > { %v3790_v4 = vadd.f32 %v3785_v21, %v3766_v3 }
 0xb3f   : > { %v3788_v2 = vadd.f32 %v3777_v34, %v3764_v29 }
 0xb40   : > { %v6218_v11 = vpack.i.bf16 %v3790_v4, %v3789_v36  ;;  %v3833_v35 = vpack.c.bf16 %v3790_v4, %v3789_v36 }
 0xb41   : > { %v6203_v33 = vpack.i.bf16 %v3788_v2, %v3787_v27  ;;  %v3832_v42 = vpack.c.bf16 %v3788_v2, %v3787_v27 }
 0xb42   : > { %6209 = vrot.lane.b32.xlu1 %v6218_v11, %s7809_s19 }
 0xb43   : > { %6204 = vrot.lane.b32.xlu0 %v6203_v33, %s7809_s19  ;;  %5742 = vmatprep.subr.bf16.mxu0 %v3832_v42  ;;  %s4704_s19 = sshll.u32 %s419_s0, 1 }
 0xb44   : > { %5743 = vmatpush3.bf16.msra.mxu0 %v3832_v42  ;;  %s421_s28 = scalar_lea.vmem [#allocation2], %s4704_s19 }
 0xb45   : > { %5744 = vmatprep.subr.bf16.mxu0 %v3833_v35  ;;  %s4629_s20 = sshll.u32 %s421_s28, 4  ;;  %s7733_s20 = int_to_ptr.vmem [resolvable:$true] %s4629_s20 }
 0xb46   : > { %6219 = vrot.lane.b32.xlu1 %v6218_v11, %s6539_s30  ;;  %s6464_s25 = scalar_lea.vmem %s7733_s20, 32 }
 0xb47   : > { %6214 = vrot.lane.b32.xlu0 %v6203_v33, %s6539_s30  ;;  %p6465_p11 = scmp.ne.s32.totalorder %s7733_s20, %s6464_s25  ;;  %s6468_s30 = sshll.u32 %s6548_s29, 4  ;;  %s6469_s30 = int_to_ptr.vmem [resolvable:$false] %s6468_s30 }
 0xb48   : > { %5745 = vmatpush3.bf16.msra.mxu0 %v3833_v35  ;;  %s6470_s1 = scalar_lea.vmem %s6469_s30, 64  ;;  %p6471_p0 = scmp.lt.s32.totalorder %s7733_s20, %s6469_s30 }
 0xb49   : > { %p6466_p12 = pnand %p6465_p11, %p6652_p5  ;;  %p6472_p1 = scmp.lt.s32.totalorder %s6470_s1, %s6464_s25 }
 0xb4a   : > { %4152 = vperm.xlu1 %6224, %v7445_v19  }
 0xb4b   : > { %5747 = vmatmul.mubr.msk.bf16.vlgmr.msra.gmra.mrb[72].mxu0 %vm1710_vm12, %v6330_v41  ;;  %4148 = vperm.xlu0 %6223, %v7439_v13   ;;  %p6467_p13 = pneg %p6466_p12  ;;  %p6473_p2 = por %p6472_p1, %p6471_p0 }
 0xb4c   : > { %5750 = vmatprep.mubr.msk.bf16.mxu0 %vm1710_vm12, %v6331_v60 }
 0xb4d   : > { %p6474_p3 = pnand %p6473_p2, %p6467_p13 }
 0xb4e   : > { %4156 = vperm.xlu1 %6224, %v7451_v20  }
 0xb4f   : > { %4160 = vperm.xlu0 %6223, %v7458_v22  }
 0xb52   : > { %4164 = vperm.xlu1 %6224, %v7597_v55  }
 0xb53   : > { %5751 = vmatmul.mubr.msk.bf16.gmra.mrb[76].mxu0 %vm1710_vm12, %v6332_v61  ;;  %4168 = vperm.xlu0 %6223, %v7289_v43  }
 0xb54   : > { %5758 = vmatprep.mubr.msk.bf16.mxu0 %vm1710_vm12, %v6333_v49 }
 0xb56   : > { %4172 = vperm.xlu1 %6224, %v7295_v44  }
 0xb57   : > { %4176 = vperm.xlu0 %6223, %v7301_v45  }
 0xb5a   : > { %6225 = vset.pattern.permute.xlu1 %v6537_v28 }
 0xb5b   : > { %6226 = vset.pattern.permute.xlu0 %v6537_v28  ;;  %2217 = vperm.xlu1 %6225, %v7597_v55  }
 0xb5c   : > { %2221 = vperm.xlu0 %6226, %v7289_v43  }
 0xb5f   : > { %6227 = vset.pattern.permute.xlu1 %v6541_v53 }
 0xb60   : > { %2229 = vperm.xlu0 %6226, %v7301_v45   ;;  %2933 = vperm.xlu1 %6227, %v7597_v55  }
 0xb64   : > { %2937 = vperm.xlu1 %6227, %v7289_v43   ;;  %6231 = vset.pattern.permute.xlu0 %v6545_v30 }
 0xb65   : > { %4357 = vperm.xlu0 %6231, %v7597_v55  }
 0xb68   : > { %6228 = vset.pattern.permute.xlu1 %v6543_v39 }
 0xb69   : > { %3651 = vperm.xlu1 %6228, %v7289_v43   ;;  %6232 = vset.pattern.permute.xlu0 %v6543_v39 }
 0xb6a   : > { %3647 = vperm.xlu0 %6232, %v7597_v55  }
 0xb6d   : > { %6229 = vset.pattern.permute.xlu1 %v6537_v28 }
 0xb6e   : > { %2225 = vperm.xlu1 %6229, %v7295_v44   ;;  %3659 = vperm.xlu0 %6232, %v7301_v45  }
 0xb72   : > { %6230 = vset.pattern.permute.xlu1 %v6541_v53 }
 0xb73   : > { %2941 = vperm.xlu1 %6230, %v7295_v44  }
 0xb77   : > { %2945 = vperm.xlu1 %6230, %v7301_v45  }
 0xb7b   : > { %6233 = vset.pattern.permute.xlu1 %v6545_v30 }
 0xb7c   : > { %4361 = vperm.xlu1 %6233, %v7289_v43  }
 0xb80   : > { %6234 = vset.pattern.permute.xlu1 %v6543_v39 }
 0xb81   : > { %3655 = vperm.xlu1 %6234, %v7295_v44  }
 0xb85   : > { %6235 = vset.pattern.permute.xlu1 %v6545_v30 }
 0xb86   : > { %4365 = vperm.xlu1 %6235, %v7295_v44  }
 0xb8a   : > { %4369 = vperm.xlu1 %6235, %v7301_v45  }
 0xbb4   : > { %v6210_v59 = vpop.permute.xlu1 %6209 }
 0xbb5   : > { %v6205_v37 = vpop.permute.xlu0 %6204  ;;  %v6212_v15 = vunpack.i.h.bf16 %v6210_v59  ;;  %v6211_v40 = vunpack.i.l.bf16 %v6210_v59 }
 0xbb6   : > { %v6207_v23 = vunpack.i.h.bf16 %v6205_v37  ;;  %v6206_v7 = vunpack.i.l.bf16 %v6205_v37 }
 0xbb7   : > { %v5153_v14 = vpack.c.bf16 %v6212_v15, %v6211_v40 }
 0xbb8   : > { %v5150_v63 = vpack.c.bf16 %v6207_v23, %v6206_v7  ;;  %v6220_v28 = vpop.permute.xlu1 %6219 }
 0xbb9   : > { %v6215_v12 = vpop.permute.xlu0 %6214  ;;  %v6222_v53 = vunpack.i.h.bf16 %v6220_v28  ;;  %v6221_v6 = vunpack.i.l.bf16 %v6220_v28 }
 0xbba   : > { %v6217_v9 = vunpack.i.h.bf16 %v6215_v12  ;;  %v6216_v5 = vunpack.i.l.bf16 %v6215_v12  ;;  %5754 = vmatprep.subr.msk.bf16.mxu0 %vm7305_vm2, %v5150_v63 }
 0xbbb   : > { %5755 = vmatpush3.bf16.msk.msra.mxu0 %vm7305_vm2, %v5150_v63  ;;  %v5167_v38 = vpack.c.bf16 %v6222_v53, %v6221_v6 }
 0xbbc   : > { %5756 = vmatprep.subr.msk.bf16.mxu0 %vm7305_vm2, %v5153_v14  ;;  %v5164_v17 = vpack.c.bf16 %v6217_v9, %v6216_v5 }
 0xbbf   : > { %5757 = vmatpush3.bf16.msk.msra.mxu0 %vm7305_vm2, %v5153_v14 }
 0xbc0   : > { %5766 = vmatprep.subr.msk.bf16.mxu0 %vm7316_vm6, %v5164_v17 }
 0xbc2   : > { %5759 = vmatmul.mubr.msk.bf16.vlgmr.msra.gmra.mrb[72].mxu0 %vm1710_vm12, %v6334_v8 }
 0xbc3   : > { %5767 = vmatpush3.bf16.msk.msra.mxu0 %vm7316_vm6, %v5164_v17  ;;  %5762 = vmatprep.mubr.msk.bf16.mxu0 %vm1710_vm12, %v6335_v16 }
 0xbc4   : > { %5768 = vmatprep.subr.msk.bf16.mxu0 %vm7316_vm6, %v5167_v38 }
 0xbc7   : > { %5769 = vmatpush3.bf16.msk.msra.mxu0 %vm7316_vm6, %v5167_v38 }
 0xbc8   : > { %5778 = vmatprep.subr.bf16.mxu0 %v7193_v24 }
 0xbc9   : > { %v4153_v25 = vpop.permute.xlu1 %4152 }
 0xbca   : > { %5763 = vmatmul.mubr.msk.bf16.gmra.mrb[76].mxu0 %vm1710_vm12, %v6336_v56  ;;  %v4149_v54 = vpop.permute.xlu0 %4148 }
 0xbcb   : > { %5770 = vmatprep.mubr.msk.bf16.mxu0 %vm1710_vm12, %v6337_v51 }
 0xbcd   : > { %v4157_v26 = vpop.permute.xlu1 %4156 }
 0xbce   : > { %v4161_v32 = vpop.permute.xlu0 %4160 }
 0xbd1   : > { %v4165_v21 = vpop.permute.xlu1 %4164 }
 0xbd2   : > { %5771 = vmatmul.mubr.msk.bf16.vlgmr.msra.gmra.mrb[72].mxu0 %vm1710_vm12, %v6338_v52  ;;  %v4169_v44 = vpop.permute.xlu0 %4168  ;;  %v6346_v52 = vld [vmem:[%s7781_s8 + $0x68] sm:$0xff]  }
 0xbd3   : > { %5779 = vmatpush3.bf16.msra.mxu0 %v7193_v24  ;;  %5774 = vmatprep.mubr.msk.bf16.mxu0 %vm1710_vm12, %v6339_v62  ;;  %v6343_v24 = vld [vmem:[%s7780_s7 + $0x70] sm:$0xff]  }
 0xbd4   : > { %v6347_v62 = vld [vmem:[%s7781_s8 + $0x70] sm:$0xff]  }
 0xbd5   : > { %v4173_v2 = vpop.permute.xlu1 %4172 }
 0xbd6   : > { %v4177_v41 = vpop.permute.xlu0 %4176 }
 0xbda   : > { %5775 = vmatmul.mubr.msk.bf16.gmra.mrb[76].mxu0 %vm1710_vm12, %v6340_v1  ;;  %v6348_v1 = vld [vmem:[%s7781_s8 + $0x78] sm:$0xff]  }
 0xbdb   : > { %5780 = vmatprep.mubr.msk.bf16.mxu0 %vm480_vm1, %v6341_v47  ;;  %v6349_v47 = vld [vmem:[%s7782_s9] sm:$0xff]  }
 0xbdc   : > { %5804 = vmatprep.mubr.msk.bf16.mxu1 %vm1710_vm12, %v6349_v47 }
 0xbe2   : > { %5781 = vmatmul.mubr.msk.bf16.vlgmr.msra.gmra.mrb[72].mxu0 %vm480_vm1, %v6342_v50  ;;  %v6546_v50 = vmov 12  }
 0xbe3   : > { %5784 = vmatprep.mubr.msk.bf16.mxu0 %vm480_vm1, %v6343_v24  ;;  %6237 = vset.pattern.permute.xlu1 %v6546_v50  ;;  %v2218_v24 = vpop.permute.xlu1 %2217 }
 0xbe4   : > { %6236 = vset.pattern.permute.xlu0 %v6546_v50  ;;  %4484 = vperm.xlu1 %6237, %v7445_v19  }
 0xbe5   : > { %4480 = vperm.xlu0 %6236, %v7439_v13  }
 0xbe8   : > { %4488 = vperm.xlu1 %6237, %v7451_v20  }
 0xbe9   : > { %4492 = vperm.xlu0 %6236, %v7458_v22  }
 0xbea   : > { %5785 = vmatmul.mubr.msk.bf16.gmra.mrb[76].mxu0 %vm480_vm1, %v6344_v57  ;;  %v2934_v57 = vpop.permute.xlu1 %2933 }
 0xbeb   : > { %5792 = vmatprep.mubr.msk.bf16.mxu0 %vm1710_vm12, %v6345_v18 }
 0xbee   : > { %v2938_v18 = vpop.permute.xlu1 %2937 }
 0xbf2   : > { %v3652_v30 = vpop.permute.xlu1 %3651 }
 0xcb5   : > { %v5782_v43 = vpop.f32.mrb[72].mxu0 }
 0xcb6   : > { %v5862_v10 = vadd.f32 %v5782_v43, %v4157_v26  ;;  %v4262_v48 = vpop.f32.mrb[73].mxu0  ;;  %v2222_v26 = vpop.permute.xlu0 %2221 }
 0xcb7   : > { %v5863_v46 = vadd.f32 %v4262_v48, %v4149_v54  ;;  %v5783_v39 = vpop.f32.mrb[74].mxu0  ;;  %v5842_v22 = vadd.f32 %v2938_v18, %v2222_v26 }
 0xcb8   : > { %v5191_v31 = vmul.f32 -1.442695, %v5862_v10  ;;  %v5864_v3 = vadd.f32 %v5783_v39, %v4161_v32  ;;  %v4265_v34 = vpop.f32.mrb[75].mxu0 }
 0xcb9   : > { %v5189_v29 = vmul.f32 -1.442695, %v5863_v46  ;;  %v5865_v36 = vadd.f32 %v4265_v34, %v4153_v25  ;;  %v2226_v25 = vpop.permute.xlu1 %2225 }
 0xcba   : > { %6423 = vpow2.f32 %v5191_v31  ;;  %v5192_v4 = vmul.f32 -1.442695, %v5864_v3  ;;  %v2230_v43 = vpop.permute.xlu0 %2229  ;;  %v5834_v31 = vadd.f32 %v2934_v57, %v2218_v24 }
 0xcbb   : > { %6425 = vpow2.f32 %v5189_v29  ;;  %v5190_v45 = vmul.f32 -1.442695, %v5865_v36 }
 0xcbc   : > { %6427 = vpow2.f32 %v5192_v4 }
 0xcbd   : > { %6429 = vpow2.f32 %v5190_v45  ;;  %v5786_v27 = vpop.f32.mrb[76].mxu0  ;;  %v2942_v54 = vpop.permute.xlu1 %2941 }
 0xcbe   : > { %v4278_v11 = vpop.f32.mrb[77].mxu0  ;;  %v5866_v35 = vadd.f32 %v5786_v27, %v4173_v2  ;;  %v4358_v48 = vpop.permute.xlu0 %4357  ;;  %v5830_v19 = vadd.f32 %v2942_v54, %v2226_v25  ;;  %v5843_v2 = vadd.f32 %v5842_v22, %v3652_v30  ;;  %v4564_v30 = vld [vmem:[%s7783_s10] sm:$0xf] }
 0xcbf   : > { %v5787_v33 = vpop.f32.mrb[78].mxu0  ;;  %v5867_v42 = vadd.f32 %v4278_v11, %v4165_v21 }
 0xcc0   : > { %v4281_v60 = vpop.f32.mrb[79].mxu0  ;;  %v5868_v61 = vadd.f32 %v5787_v33, %v4177_v41  ;;  %6431 = vtanh.f32 %v5866_v35 }
 0xcc1   : > { %v5869_v49 = vadd.f32 %v4281_v60, %v4169_v44  ;;  %6433 = vtanh.f32 %v5867_v42  ;;  %v2946_v32 = vpop.permute.xlu1 %2945 }
 0xcc2   : > { %6435 = vtanh.f32 %v5868_v61  ;;  %v3648_v39 = vpop.permute.xlu0 %3647  ;;  %v5838_v20 = vadd.f32 %v2946_v32, %v2230_v43 }
 0xcc3   : > { %6437 = vtanh.f32 %v5869_v49  ;;  %v5835_v45 = vadd.f32 %v5834_v31, %v3648_v39 }
 0xcc4   : > { %v6424_v58 = vpop.eup %6423 }
 0xcc5   : > { %v6426_v55 = vpop.eup %6425  ;;  %v4315_v59 = vadd.f32 1.0, %v6424_v58  ;;  %v4362_v10 = vpop.permute.xlu1 %4361  ;;  %v5836_v42 = vadd.f32 %v5835_v45, %v4358_v48 }
 0xcc6   : > { %v6428_v37 = vpop.eup %6427  ;;  %v4313_v15 = vadd.f32 1.0, %v6426_v55  ;;  %v3660_v29 = vpop.permute.xlu0 %3659  ;;  %v5844_v49 = vadd.f32 %v5843_v2, %v4362_v10 }
 0xcc7   : > { %v6430_v40 = vpop.eup %6429  ;;  %6439 = vrcp.f32 %v4315_v59  ;;  %v4316_v23 = vadd.f32 1.0, %v6428_v37  ;;  %v5839_v27 = vadd.f32 %v5838_v20, %v3660_v29 }
 0xcc8   : > { %6441 = vrcp.f32 %v4313_v15  ;;  %v4314_v7 = vadd.f32 1.0, %v6430_v40 }
 0xcc9   : > { %6443 = vrcp.f32 %v4316_v23  ;;  %v3656_v46 = vpop.permute.xlu1 %3655 }
 0xcca   : > { %6445 = vrcp.f32 %v4314_v7  ;;  %v6432_v63 = vpop.eup %6431  ;;  %v5831_v4 = vadd.f32 %v5830_v19, %v3656_v46 }
 0xccb   : > { %v6434_v12 = vpop.eup %6433 }
 0xccc   : > { %v6436_v14 = vpop.eup %6435 }
 0xccd   : > { %v6438_v9 = vpop.eup %6437  ;;  %v4366_v3 = vpop.permute.xlu1 %4365 }
 0xcce   : > { %v5832_v35 = vadd.f32 %v5831_v4, %v4366_v3 }
 0xcd1   : > { %v6440_v5 = vpop.eup %6439  ;;  %v4370_v11 = vpop.permute.xlu1 %4369 }
 0xcd2   : > { %v6442_v28 = vpop.eup %6441  ;;  %v4331_v53 = vmul.f32 %v6440_v5, %v6432_v63  ;;  %v5840_v41 = vadd.f32 %v5839_v27, %v4370_v11  ;;  %v6547_v5 = vmov 13  }
 0xcd3   : > { %v6444_v6 = vpop.eup %6443  ;;  %v4329_v17 = vmul.f32 %v6442_v28, %v6434_v12  ;;  %6238 = vset.pattern.permute.xlu1 %v6547_v5  ;;  %6239 = vset.pattern.permute.xlu0 %v6547_v5 }
 0xcd4   : > { %v6446_v8 = vpop.eup %6445  ;;  %v4332_v16 = vmul.f32 %v6444_v6, %v6436_v14  ;;  %4568 = vperm.xlu1 %6238, %v7439_v13  }
 0xcd5   : > { %v4330_v38 = vmul.f32 %v6446_v8, %v6438_v9  ;;  %v6350_v9 = vld [vmem:[%s7782_s9 + $0x8] sm:$0xff]   ;;  %v4485_v28 = vpop.permute.xlu1 %4484 }
 0xcd6   : > { %v4343_v56 = vpack.c.bf16 %v4332_v16, %v4331_v53  ;;  %v4481_v53 = vpop.permute.xlu0 %4480 }
 0xcd7   : > { %v4342_v51 = vpack.c.bf16 %v4330_v38, %v4329_v17 }
 0xcd9   : > { %5788 = vmatprep.subr.bf16.mxu0 %v4342_v51  ;;  %v4489_v6 = vpop.permute.xlu1 %4488 }
 0xcda   : > { %5789 = vmatpush3.bf16.msra.mxu0 %v4342_v51  ;;  %v4493_v8 = vpop.permute.xlu0 %4492 }
 0xcdb   : > { %5790 = vmatprep.subr.bf16.mxu0 %v4343_v56 }
 0xcde   : > { %5791 = vmatpush3.bf16.msra.mxu0 %v4343_v56 }
 0xce1   : > { %5793 = vmatmul.mubr.msk.bf16.vlgmr.msra.gmra.mrb[80].mxu0 %vm1710_vm12, %v6346_v52 }
 0xce2   : > { %5796 = vmatprep.mubr.msk.bf16.mxu0 %vm1710_vm12, %v6347_v62 }
 0xce9   : > { %5797 = vmatmul.mubr.msk.bf16.gmra.mrb[52].mxu0 %vm1710_vm12, %v6348_v1 }
 0xd53   : > { %v4569_v25 = vpop.permute.xlu1 %4568 }
 0xdb4   : > { %v5794_v34 = vpop.f32.mrb[80].mxu0 }
 0xdb5   : > { %v4438_v21 = vpop.f32.mrb[81].mxu0 }
 0xdb6   : > { %v5795_v36 = vpop.f32.mrb[82].mxu0 }
 0xdb7   : > { %v4440_v44 = vpop.f32.mrb[83].mxu0 }
 0xdbc   : > { %v5798_v33 = vpop.f32.mrb[52].mxu0 }
 0xdbd   : > { %v5833_v60 = vadd.f32 %v5832_v35, %v5798_v33  ;;  %v4450_v61 = vpop.f32.mrb[53].mxu0 }
 0xdbe   : > { %v5837_v58 = vadd.f32 %v5836_v42, %v4450_v61  ;;  %v5799_v55 = vpop.f32.mrb[54].mxu0 }
 0xdbf   : > { %v5841_v59 = vadd.f32 %v5840_v41, %v5799_v55  ;;  %v4453_v37 = vpop.f32.mrb[55].mxu0  ;;  %v4471_v40 = vmul.f32 0.5, %v5833_v60 }
 0xdc0   : > { %v5845_v15 = vadd.f32 %v5844_v49, %v4453_v37  ;;  %v4469_v7 = vmul.f32 0.5, %v5837_v58 }
 0xdc1   : > { %v4472_v23 = vmul.f32 0.5, %v5841_v59 }
 0xdc2   : > { %v4470_v63 = vmul.f32 0.5, %v5845_v15 }
 0xdc3   : > { %v4478_v12 = vpack.c.bf16 %v4472_v23, %v4471_v40 }
 0xdc4   : > { %v4477_v14 = vpack.c.bf16 %v4470_v63, %v4469_v7 }
 0xdc6   : > { %5800 = vmatprep.subr.bf16.mxu1 %v4477_v14 }
 0xdc7   : > { %5801 = vmatpush3.bf16.msra.mxu1 %v4477_v14 }
 0xdc8   : > { %5802 = vmatprep.subr.bf16.mxu1 %v4478_v12 }
 0xdcb   : > { %5803 = vmatpush3.bf16.msra.mxu1 %v4478_v12 }
 0xdcc   : > { %5808 = vmatprep.subr.bf16.mxu1 %v6528_v0 }
 0xdce   : > { %5805 = vmatmul.mubr.msk.bf16.vlgmr.msra.gmra.mrb[80].mxu1 %vm1710_vm12, %v6350_v9 }
 0xdcf   : > { %5812 = vmatprep.mubr.msk.bf16.mxu1 %vm6529_vm0, %v6528_v0 }
 0xea1   : > { %v5806_v17 = vpop.f32.mrb[80].mxu1 }
 0xea2   : > { %v4545_v16 = vpop.f32.mrb[81].mxu1  ;;  %v4554_v38 = vadd.f32 %v5806_v17, %v4489_v6 }
 0xea3   : > { %v5807_v56 = vpop.f32.mrb[82].mxu1  ;;  %v4546_v51 = vadd.f32 %v4545_v16, %v4481_v53 }
 0xea4   : > { %v4548_v52 = vpop.f32.mrb[83].mxu1  ;;  %v4557_v62 = vadd.f32 %v5807_v56, %v4493_v8  ;;  %v4562_v47 = vmax.f32 %v4554_v38, 0.0 }
 0xea5   : > { %v4549_v1 = vadd.f32 %v4548_v52, %v4485_v28  ;;  %v4560_v24 = vmax.f32 %v4546_v51, 0.0 }
 0xea6   : > { %v4563_v50 = vmax.f32 %v4557_v62, 0.0 }
 0xea7   : > { %v4561_v57 = vmax.f32 %v4549_v1, 0.0 }
 0xea8   : > { %v4566_v18 = vpack.c.bf16 %v4563_v50, %v4562_v47 }
 0xea9   : > { %v4565_v13 = vpack.c.bf16 %v4561_v57, %v4560_v24 }
 0xeab   : > { %5809 = vmatpush3.bf16.msra.mxu1 %v4565_v13 }
 0xeac   : > { %5810 = vmatprep.subr.bf16.mxu1 %v6528_v0 }
 0xeaf   : > { %5811 = vmatpush3.bf16.msra.mxu1 %v4566_v18 }
 0xeb2   : > { %5813 = vmatmul.mubr.msk.bf16.vlgmr.msra.gmra.mrb[84].mxu1 %vm1710_vm12, %v4564_v30 }
 0xf85   : > { %v4608_v54 = vpop.f32.mrb[84].mxu1 }
 0xf86   : > { %v5814_v26 = vpop.f32.mrb[85].mxu1  ;;  %v4609_v32 = vadd.f32 %v4608_v54, %v4569_v25 }
 0xf87   : > { %v4611_v0 = vpop.f32.mrb[86].mxu1 }
 0xf88   : > { %4614 = vst [vmem:[%s421_s28] sm:$0x3] %v4609_v32  ;;  %v5815_v43 = vpop.f32.mrb[87].mxu1 }
 0xf89   : > { %6477 = shalt.err (!%p6474_p3)
}
 0xf8a   : > { %s6478_s0 = scalar_lea.hbm %s7731_s17, 32  ;;  %s6482_s28 = scalar_lea.hbm %s7785_s12, 64 }
 0xf8b   : > { %p6479_p4 = scmp.ne.s32.totalorder %s7731_s17, %s6478_s0  ;;  %p6483_p9 = scmp.lt.u32.totalorder %s7731_s17, %s7785_s12 }
 0xf8c   : > { %p6484_p10 = scmp.lt.u32.totalorder %s6482_s28, %s6478_s0  ;;  %p6486_p12 = scmp.lt.u32.totalorder %s6478_s0, %s7731_s17 }
 0xf8d   : > { %p6480_p7 = pnand %p6479_p4, %p6652_p5 }
 0xf8e   : > { %p6485_p11 = por %p6484_p10, %p6483_p9 }
 0xf8f   : > { %p6481_p8 = pneg %p6480_p7 }
 0xf90   : > { %p6487_p13 = por %p6486_p12, %p6485_p11 }
 0xf92   : > { %p6488_p0 = pnand %p6487_p13, %p6481_p8 }
 0xf94   : > { %6491 = shalt.err (!%p6488_p0)
}
 0xf95   : > { %5978 = dma.vmem_to_hbm [thread:$0]  (%p6652_p5), %s7733_s20, 32, %s7731_s17, %s4616_s18  }
 0xf96 PF: > { %p5984_p1 = scmp.ge.s32.totalorder %s6526_s24, 2  ;;  %s4641_s25 = sand.u32 1, %s6514_s21  }
 0xf97   : > { %s4642_s29 = scalar_lea.sflag [#allocation3], %s4641_s25 }
 0xf98   : > { %p5981_p2 = pnand %p5984_p1, %p6656_p6 }
 0xf9a   : > { %6509 = dma.done.wait (!%p5981_p2), %s4642_s29, 32  }
 0xf9b   : > { %6511 = vsyncadd (!%p5981_p2), %s4642_s29, 4294967264  ;;  %s7810_s30 = sld [smem:[#allocation5_spill]]  ;;  %p22_p3 = scmp.ge.s32.totalorder %s6639_s27, 4  }
 0xf9c   : > { %s7811_s21 = smov %s6518_s22  ;;  %s7812_s22 = smov %s6522_s23 }
 0xf9d   : > { %s7814_s24 = smov %s6639_s27  ;;  %24 = sbr.rel (!%p22_p3) target bundleno = 6 (0x6), region = 129 }
 0xfa1   : > { %s7813_s23 = smov %s7810_s30 }
 0xfa4   :  { %4647 = vsyncpa [#allocation3], 1 }
 0xfa5   :  { %4649 = vsyncpa [#allocation3 + $0x1], 1 }

</bundles_post_ra>
